<compile_context>
chip_gen: v7x
topology: tpu7x:2x2x1
jax: 0.10.0
libtpu: 0.0.40
codegen_flags: <defaults>
</compile_context>

<pallas_src>
import functools
import numpy as np
import jax
import jax.numpy as jnp
from jax.experimental import pallas as pl
from jax.experimental.pallas import tpu as pltpu

# Streaming dtype for matmul/attention operands and inter-kernel activations.
# f32 accumulation everywhere.  Set to jnp.float32 for closer f32 parity.
STREAM_DTYPE = jnp.bfloat16
VMEM_LIMIT = 32 * 1024 * 1024


def _round_up(x, m):
    return ((x + m - 1) // m) * m


def _choose_tile(size, max_tile, align=128):
    """Largest tile (multiple of `align`, <= max_tile) dividing round_up(size, align)."""
    padded = _round_up(size, align)
    if padded <= max_tile:
        return padded
    t = (max_tile // align) * align
    while t >= align:
        if padded % t == 0:
            return t
        t -= align
    return (max_tile // align) * align


def _choose_batch_block(bh, max_blk=8):
    for c in range(min(max_blk, bh), 0, -1):
        if bh % c == 0:
            return c
    return 1


# ----------------------------- in-kernel helpers ----------------------------

def _erf(x):
    # Abramowitz & Stegun 7.1.26 rational approximation (|err| < 1.5e-7).
    # TODO(synk): switch to lax.erf once its Mosaic lowering is confirmed.
    a1, a2, a3, a4, a5 = (0.254829592, -0.284496736, 1.421413741,
                          -1.453152027, 1.061405429)
    p = 0.3275911
    ax = jnp.abs(x)
    t = 1.0 / (1.0 + p * ax)
    poly = ((((a5 * t + a4) * t + a3) * t + a2) * t + a1) * t
    y = 1.0 - poly * jnp.exp(-ax * ax)
    return jnp.where(x < 0, -y, y)


def _gelu_exact(x):
    # nn.GELU() default (erf form).
    return 0.5 * x * (1.0 + _erf(x * 0.7071067811865476))


# ----------------------------- Pallas kernels ------------------------------

def _matmul_kernel(*refs, activation, has_residual, has_ln, single_k,
                   k_valid, ln_eps):
    """o = epilogue(maybe_LN(x) @ w + b) [+ residual], optional K-tiling."""
    idx = 0
    x_ref = refs[idx]; idx += 1
    w_ref = refs[idx]; idx += 1
    b_ref = refs[idx]; idx += 1
    if has_ln:
        g_ref = refs[idx]; idx += 1
        beta_ref = refs[idx]; idx += 1
    if has_residual:
        r_ref = refs[idx]; idx += 1
    o_ref = refs[idx]; idx += 1
    acc_ref = refs[idx] if not single_k else None

    x = x_ref[...]
    if has_ln:
        # LayerNorm prologue over the full (single-step) K axis, stats in f32.
        xf = x.astype(jnp.float32)
        inv_k = 1.0 / k_valid
        mean = jnp.sum(xf, axis=-1, keepdims=True) * inv_k
        xc = xf - mean
        if xf.shape[-1] != k_valid:           # mask zero-padded K columns
            col = jax.lax.broadcasted_iota(jnp.int32, xc.shape, 1)
            xc = jnp.where(col < k_valid, xc, 0.0)
        var = jnp.sum(xc * xc, axis=-1, keepdims=True) * inv_k
        inv = jax.lax.rsqrt(var + ln_eps)
        x = (xc * inv * g_ref[...] + beta_ref[...]).astype(w_ref.dtype)

    part = jnp.dot(x, w_ref[...], preferred_element_type=jnp.float32)

    def epilogue(acc):
        out = acc + b_ref[...]
        if activation == "gelu":
            out = _gelu_exact(out)
        if has_residual:
            out = out + r_ref[...].astype(jnp.float32)
        return out.astype(o_ref.dtype)

    if single_k:
        o_ref[...] = epilogue(part)
    else:
        @pl.when(pl.program_id(2) == 0)
        def _():
            acc_ref[...] = jnp.zeros_like(acc_ref)

        acc_ref[...] += part

        @pl.when(pl.program_id(2) == pl.num_programs(2) - 1)
        def _():
            o_ref[...] = epilogue(acc_ref[...])


def _layernorm_kernel(x_ref, g_ref, b_ref, o_ref, *, eps):
    # Standalone LayerNorm fallback (only used when K > max single-step tile).
    x = x_ref[...].astype(jnp.float32)
    mean = jnp.mean(x, axis=-1, keepdims=True)
    var = jnp.mean((x - mean) ** 2, axis=-1, keepdims=True)
    inv = jax.lax.rsqrt(var + eps)
    o_ref[...] = ((x - mean) * inv * g_ref[...] + b_ref[...]).astype(o_ref.dtype)


def _flash_attn_kernel(q_ref, k_ref, v_ref, o_ref, m_sc, l_sc, acc_sc,
                       *, scale, kv_len, block_kv):
    """Online-softmax attention over kv tiles; multiple heads per step."""
    kv_i = pl.program_id(2)

    @pl.when(kv_i == 0)
    def _():
        m_sc[...] = jnp.full_like(m_sc, -jnp.inf)
        l_sc[...] = jnp.zeros_like(l_sc)
        acc_sc[...] = jnp.zeros_like(acc_sc)

    q = q_ref[...] * jnp.asarray(scale, dtype=q_ref.dtype)   # pre-scale q
    k = k_ref[...]                                           # (Hblk, tkv, Dp)
    v = v_ref[...]
    s = jnp.einsum("bqd,bkd->bqk", q, k,
                   preferred_element_type=jnp.float32)
    # Mask padded kv positions (mask stays in f32).
    kv_pos = kv_i * block_kv + jax.lax.broadcasted_iota(jnp.int32, s.shape, 2)
    s = jnp.where(kv_pos < kv_len, s, -1e30)

    m_new = jnp.maximum(m_sc[...], jnp.max(s, axis=-1, keepdims=True))
    alpha = jnp.exp(m_sc[...] - m_new)
    p = jnp.exp(s - m_new)
    l_sc[...] = alpha * l_sc[...] + jnp.sum(p, axis=-1, keepdims=True)
    acc_sc[...] = alpha * acc_sc[...] + jnp.einsum(
        "bqk,bkd->bqd", p.astype(v.dtype), v,
        preferred_element_type=jnp.float32)
    m_sc[...] = m_new

    @pl.when(kv_i == pl.num_programs(2) - 1)
    def _():
        o_ref[...] = (acc_sc[...] *
                      pl.reciprocal(l_sc[...], approx=True)).astype(o_ref.dtype)


# ----------------------------- kernel wrappers ------------------------------

def pallas_layernorm(x, g, b, eps=1e-5, block_rows=512):
    """Row-tiled standalone LayerNorm fallback. x: [..., E] -> STREAM_DTYPE."""
    lead = x.shape[:-1]
    E = x.shape[-1]
    x2 = x.reshape(-1, E)
    M = x2.shape[0]
    tm = min(block_rows, _round_up(M, 16))
    Mp = _round_up(M, tm)
    xp = jnp.pad(x2.astype(STREAM_DTYPE), ((0, Mp - M), (0, 0)))
    out = pl.pallas_call(
        functools.partial(_layernorm_kernel, eps=eps),
        out_shape=jax.ShapeDtypeStruct((Mp, E), STREAM_DTYPE),
        grid=(Mp // tm,),
        in_specs=[
            pl.BlockSpec((tm, E), lambda i: (i, 0)),
            pl.BlockSpec((1, E), lambda i: (0, 0)),
            pl.BlockSpec((1, E), lambda i: (0, 0)),
        ],
        out_specs=pl.BlockSpec((tm, E), lambda i: (i, 0)),
        compiler_params=pltpu.CompilerParams(
            dimension_semantics=("parallel",),
            vmem_limit_bytes=VMEM_LIMIT),
    )(xp, g.reshape(1, E).astype(jnp.float32), b.reshape(1, E).astype(jnp.float32))
    return out[:M].reshape(*lead, E)


def pallas_linear(x, w, b, *, residual=None, activation=None, ln=None,
                  out_dtype=STREAM_DTYPE, bm=512, bn=512, bk_max=1024):
    """epilogue(maybe_LN(x) @ w + b) [+ residual]; x: [..., K], w: [K, N].

    ln = (gamma, beta, eps) fuses a LayerNorm over K into the matmul prologue
    (requires a single K step, i.e. round_up(K,128) <= bk_max; otherwise we
    fall back to a standalone LN kernel).
    """
    lead = x.shape[:-1]
    K = x.shape[-1]
    N = w.shape[-1]
    Kp_full = _round_up(K, 128)

    if ln is not None and Kp_full > bk_max:
        g, beta, eps = ln
        x = pallas_layernorm(x, g, beta, eps)
        return pallas_linear(x, w, b, residual=residual, activation=activation,
                             out_dtype=out_dtype, bm=bm, bn=bn, bk_max=bk_max)

    x2 = x.reshape(-1, K)
    M = x2.shape[0]

    tm = min(bm, _round_up(M, 16))
    tn = _choose_tile(N, bn, 128)
    tk = Kp_full if Kp_full <= bk_max else _choose_tile(K, bk_max, 128)
    Mp, Np, Kp = _round_up(M, tm), _round_up(N, tn), _round_up(K, tk)
    single_k = (Kp // tk) == 1
    has_ln = ln is not None
    assert not (has_ln and not single_k)

    xp = jnp.pad(x2.astype(STREAM_DTYPE), ((0, Mp - M), (0, Kp - K)))
    wp = jnp.pad(w.astype(STREAM_DTYPE), ((0, Kp - K), (0, Np - N)))
    bp = jnp.pad(b.astype(jnp.float32), (0, Np - N)).reshape(1, Np)

    inputs = [xp, wp, bp]
    in_specs = [
        pl.BlockSpec((tm, tk), lambda i, j, k: (i, k)),
        pl.BlockSpec((tk, tn), lambda i, j, k: (k, j)),
        pl.BlockSpec((1, tn), lambda i, j, k: (0, j)),
    ]
    if has_ln:
        g, beta, _ = ln
        gp = jnp.pad(g.astype(jnp.float32), (0, Kp - K)).reshape(1, Kp)
        betap = jnp.pad(beta.astype(jnp.float32), (0, Kp - K)).reshape(1, Kp)
        inputs += [gp, betap]
        in_specs += [pl.BlockSpec((1, tk), lambda i, j, k: (0, k)),
                     pl.BlockSpec((1, tk), lambda i, j, k: (0, k))]
    if residual is not None:
        r2 = residual.reshape(-1, residual.shape[-1]).astype(STREAM_DTYPE)
        inputs.append(jnp.pad(r2, ((0, Mp - M), (0, Np - N))))
        in_specs.append(pl.BlockSpec((tm, tn), lambda i, j, k: (i, j)))

    scratch = [] if single_k else [pltpu.VMEM((tm, tn), jnp.float32)]

    out = pl.pallas_call(
        functools.partial(
            _matmul_kernel, activation=activation,
            has_residual=residual is not None, has_ln=has_ln,
            single_k=single_k, k_valid=K,
            ln_eps=(ln[2] if has_ln else 1e-5)),
        out_shape=jax.ShapeDtypeStruct((Mp, Np), out_dtype),
        grid=(Mp // tm, Np // tn, Kp // tk),
        in_specs=in_specs,
        out_specs=pl.BlockSpec((tm, tn), lambda i, j, k: (i, j)),
        scratch_shapes=scratch,
        compiler_params=pltpu.CompilerParams(
            dimension_semantics=("parallel", "parallel", "arbitrary"),
            vmem_limit_bytes=VMEM_LIMIT),
    )(*inputs)
    return out[:M, :N].reshape(*lead, N)


def pallas_flash_attention(q, k, v, scale, *, block_t=256, max_head_block=8):
    """softmax(q k^T * scale) v ; q,k,v: [BH, T, hd] -> [BH, T, hd] (bf16)."""
    BH, T, hd = q.shape
    Dp = max(128, _round_up(hd, 128))          # lane-dense head_dim
    t = min(block_t, _round_up(T, 8))          # q / kv tile (multiple of 8)
    Tp = _round_up(T, t)
    hblk = _choose_batch_block(BH, max_head_block)

    def pad(a):
        return jnp.pad(a.astype(STREAM_DTYPE),
                       ((0, 0), (0, Tp - T), (0, Dp - hd)))

    qp, kp, vp = pad(q), pad(k), pad(v)
    out = pl.pallas_call(
        functools.partial(_flash_attn_kernel, scale=scale, kv_len=T,
                          block_kv=t),
        out_shape=jax.ShapeDtypeStruct((BH, Tp, Dp), STREAM_DTYPE),
        grid=(BH // hblk, Tp // t, Tp // t),
        in_specs=[
            pl.BlockSpec((hblk, t, Dp), lambda b, qi, ki: (b, qi, 0)),
            pl.BlockSpec((hblk, t, Dp), lambda b, qi, ki: (b, ki, 0)),
            pl.BlockSpec((hblk, t, Dp), lambda b, qi, ki: (b, ki, 0)),
        ],
        out_specs=pl.BlockSpec((hblk, t, Dp), lambda b, qi, ki: (b, qi, 0)),
        scratch_shapes=[
            pltpu.VMEM((hblk, t, 1), jnp.float32),    # running max m
            pltpu.VMEM((hblk, t, 1), jnp.float32),    # running denom l
            pltpu.VMEM((hblk, t, Dp), jnp.float32),   # output accumulator
        ],
        compiler_params=pltpu.CompilerParams(
            dimension_semantics=("parallel", "parallel", "arbitrary"),
            vmem_limit_bytes=VMEM_LIMIT),
    )(qp, kp, vp)
    return out[:, :T, :hd]


# --------------------------- sincos pos embedding ---------------------------

def _get_1d_sincos(embed_dim, pos):
    omega = np.arange(embed_dim // 2, dtype=np.float32)
    omega /= embed_dim / 2.0
    omega = 1.0 / 10000 ** omega
    pos = pos.reshape(-1)
    out = np.einsum("m,d->md", pos, omega)
    return np.concatenate([np.sin(out), np.cos(out)], axis=1)


def get_2d_sincos_pos_embed(embed_dim, grid_size, cls_token=False):
    grid_h = np.arange(grid_size, dtype=np.float32)
    grid_w = np.arange(grid_size, dtype=np.float32)
    grid = np.meshgrid(grid_w, grid_h)  # w goes first
    grid = np.stack(grid, axis=0).reshape([2, 1, grid_size, grid_size])
    emb_h = _get_1d_sincos(embed_dim // 2, grid[0])
    emb_w = _get_1d_sincos(embed_dim // 2, grid[1])
    pos = np.concatenate([emb_h, emb_w], axis=1)
    if cls_token:
        pos = np.concatenate([np.zeros([1, embed_dim], np.float32), pos], axis=0)
    return pos.astype(np.float32)


# ------------------------------ parameter init ------------------------------

def _xavier(key, fan_in, fan_out, shape=None):
    if shape is None:
        shape = (fan_in, fan_out)
    limit = float(np.sqrt(6.0 / (fan_in + fan_out)))
    return jax.random.uniform(key, shape, jnp.float32, -limit, limit)


def init_block(key, dim, num_heads, ratio):
    hidden = dim * ratio
    ks = jax.random.split(key, 4)
    return dict(
        ln1_g=jnp.ones((dim,), jnp.float32), ln1_b=jnp.zeros((dim,), jnp.float32),
        qkv_w=_xavier(ks[0], dim, 3 * dim), qkv_b=jnp.zeros((3 * dim,), jnp.float32),
        proj_w=_xavier(ks[1], dim, dim), proj_b=jnp.zeros((dim,), jnp.float32),
        ln2_g=jnp.ones((dim,), jnp.float32), ln2_b=jnp.zeros((dim,), jnp.float32),
        fc1_w=_xavier(ks[2], dim, hidden), fc1_b=jnp.zeros((hidden,), jnp.float32),
        fc2_w=_xavier(ks[3], hidden, dim), fc2_b=jnp.zeros((dim,), jnp.float32),
    )


def init_params(key, *, img_dim, num_channels, patch_size,
                enc_embed_dim, enc_ratio, enc_heads, enc_layers,
                dec_embed_dim, dec_ratio, dec_heads, dec_layers):
    num_patches = (img_dim // patch_size) ** 2
    patch_dim = num_channels * patch_size * patch_size
    grid = int(num_patches ** 0.5)

    keys = jax.random.split(key, 6 + enc_layers + dec_layers)
    ki = iter(range(len(keys)))

    enc = dict(
        patch_w=_xavier(keys[next(ki)], patch_dim, enc_embed_dim),
        patch_b=jnp.zeros((enc_embed_dim,), jnp.float32),
        cls_token=0.02 * jax.random.normal(keys[next(ki)], (1, 1, enc_embed_dim), jnp.float32),
        pos_embed=jnp.asarray(
            get_2d_sincos_pos_embed(enc_embed_dim, grid, cls_token=True))[None, :, :],
        blocks=[init_block(keys[next(ki)], enc_embed_dim, enc_heads, enc_ratio)
                for _ in range(enc_layers)],
        norm_g=jnp.ones((enc_embed_dim,), jnp.float32),
        norm_b=jnp.zeros((enc_embed_dim,), jnp.float32),
    )
    dec = dict(
        in_w=_xavier(keys[next(ki)], enc_embed_dim, dec_embed_dim),
        in_b=jnp.zeros((dec_embed_dim,), jnp.float32),
        mask_token=0.02 * jax.random.normal(keys[next(ki)], (1, 1, dec_embed_dim), jnp.float32),
        pos_embed=jnp.asarray(
            get_2d_sincos_pos_embed(dec_embed_dim, grid, cls_token=True))[None, :, :],
        blocks=[init_block(keys[next(ki)], dec_embed_dim, dec_heads, dec_ratio)
                for _ in range(dec_layers)],
        norm_g=jnp.ones((dec_embed_dim,), jnp.float32),
        norm_b=jnp.zeros((dec_embed_dim,), jnp.float32),
        pred_w=_xavier(keys[next(ki)], dec_embed_dim, patch_dim),
        pred_b=jnp.zeros((patch_dim,), jnp.float32),
    )
    return dict(enc=enc, dec=dec)


# ------------------------------ model forward -------------------------------

def block_forward(x, p, num_heads):
    B, T, E = x.shape
    hd = E // num_heads
    # LN1 fused into the qkv matmul prologue.
    qkv = pallas_linear(x, p["qkv_w"], p["qkv_b"],
                        ln=(p["ln1_g"], p["ln1_b"], 1e-5))        # [B,T,3E] bf16
    # TODO(synk): fold this head relayout into BlockSpec index maps.
    qkv = qkv.reshape(B, T, 3, num_heads, hd)
    qkv = jnp.transpose(qkv, (2, 0, 3, 1, 4))                     # [3,B,H,T,hd]
    q, k, v = qkv[0], qkv[1], qkv[2]
    attn = pallas_flash_attention(
        q.reshape(B * num_heads, T, hd),
        k.reshape(B * num_heads, T, hd),
        v.reshape(B * num_heads, T, hd),
        scale=hd ** -0.5)
    attn = attn.reshape(B, num_heads, T, hd).transpose(0, 2, 1, 3).reshape(B, T, E)
    # residual add fused into the proj matmul writeback
    x = pallas_linear(attn, p["proj_w"], p["proj_b"], residual=x)
    # LN2 fused into the fc1 matmul prologue; exact-GELU fused epilogue.
    h = pallas_linear(x, p["fc1_w"], p["fc1_b"], activation="gelu",
                      ln=(p["ln2_g"], p["ln2_b"], 1e-5))
    x = pallas_linear(h, p["fc2_w"], p["fc2_b"], residual=x)
    return x


def encoder_forward(enc, x, mask_key, *, patch_size, num_heads, mask_ratio):
    B, C, H, W = x.shape
    p = patch_size
    # patchify (Conv2d kernel=stride=p  ==  per-patch flatten [C,ph,pw] + matmul)
    patches = x.reshape(B, C, H // p, p, W // p, p)
    patches = jnp.transpose(patches, (0, 2, 4, 1, 3, 5)).reshape(
        B, (H // p) * (W // p), C * p * p)
    N = patches.shape[1]
    E = enc["patch_w"].shape[-1]
    # +pos_embed fused into the patch-embed matmul writeback ("residual" path)
    pos = jnp.broadcast_to(enc["pos_embed"][:, 1:], (B, N, E))
    tok = pallas_linear(patches, enc["patch_w"], enc["patch_b"], residual=pos)

    # random masking (data-dependent argsort/gather stays in JAX glue)
    T = tok.shape[1]
    num_keep = int(T * (1 - mask_ratio))
    noise = jax.random.uniform(mask_key, (B, T))
    perm = jnp.argsort(noise, axis=1)
    undo = jnp.argsort(perm, axis=1)
    keep = perm[:, :num_keep]
    x_masked = jnp.take_along_axis(
        tok, jnp.broadcast_to(keep[:, :, None], (B, num_keep, E)), axis=1)
    mask = jnp.ones((B, T), jnp.float32).at[:, :num_keep].set(0.0)
    mask = jnp.take_along_axis(mask, undo, axis=1)

    cls = (enc["cls_token"] + enc["pos_embed"][:, 0]).astype(tok.dtype)  # [1,1,E]
    cls = jnp.broadcast_to(cls, (B, 1, E))
    h = jnp.concatenate([cls, x_masked], axis=1)
    for bp in enc["blocks"]:
        h = block_forward(h, bp, num_heads)
    # NOTE: final encoder LayerNorm is fused into the decoder input linear.
    return h, mask, undo


def decoder_forward(dec, x, undo, *, num_heads, num_patches, enc_norm):
    B = x.shape[0]
    # encoder-final LN fused into the decoder input projection
    x = pallas_linear(x, dec["in_w"], dec["in_b"],
                      ln=(enc_norm[0], enc_norm[1], 1e-5))        # [B,1+keep,Ed]
    E = x.shape[-1]
    n_mask = num_patches - (x.shape[1] - 1)
    mask_tokens = jnp.broadcast_to(dec["mask_token"], (B, n_mask, E)).astype(x.dtype)
    x_mask = jnp.concatenate([x[:, 1:], mask_tokens], axis=1)     # [B,N,Ed]
    x_mask = jnp.take_along_axis(
        x_mask, jnp.broadcast_to(undo[:, :, None], (B, num_patches, E)), axis=1)
    x = jnp.concatenate([x[:, :1], x_mask], axis=1)               # [B,N+1,Ed]
    x = x + dec["pos_embed"].astype(x.dtype)
    for bp in dec["blocks"]:
        x = block_forward(x, bp, num_heads)
    # decoder-final LN fused into the pred head; pred emits f32, lane-dense N
    x = pallas_linear(x, dec["pred_w"], dec["pred_b"],
                      ln=(dec["norm_g"], dec["norm_b"], 1e-5),
                      out_dtype=jnp.float32)
    return x[:, 1:]


def mae_forward(params, x, mask_key, *, patch_size, enc_heads, dec_heads,
                mask_ratio, num_patches):
    h, mask, undo = encoder_forward(
        params["enc"], x, mask_key,
        patch_size=patch_size, num_heads=enc_heads, mask_ratio=mask_ratio)
    pred = decoder_forward(
        params["dec"], h, undo, num_heads=dec_heads, num_patches=num_patches,
        enc_norm=(params["enc"]["norm_g"], params["enc"]["norm_b"]))
    return pred, mask


# ----------------------------------- main ------------------------------------

if __name__ == "__main__":
    key = jax.random.PRNGKey(0)
    k_param, k_x, k_mask = jax.random.split(key, 3)

    # small config consistent with the module
    B, C, IMG, P = 2, 4, 16, 4
    ENC_E, ENC_R, ENC_H, ENC_L = 32, 2, 4, 2
    DEC_E, DEC_R, DEC_H, DEC_L = 32, 2, 4, 1
    MASK_RATIO = 0.75
    NUM_PATCHES = (IMG // P) ** 2

    params = init_params(
        k_param, img_dim=IMG, num_channels=C, patch_size=P,
        enc_embed_dim=ENC_E, enc_ratio=ENC_R, enc_heads=ENC_H, enc_layers=ENC_L,
        dec_embed_dim=DEC_E, dec_ratio=DEC_R, dec_heads=DEC_H, dec_layers=DEC_L)

    x = jax.random.normal(k_x, (B, C, IMG, IMG), jnp.float32)

    fwd = jax.jit(functools.partial(
        mae_forward, patch_size=P, enc_heads=ENC_H, dec_heads=DEC_H,
        mask_ratio=MASK_RATIO, num_patches=NUM_PATCHES))
    pred, mask = fwd(params, x, k_mask)
    jax.block_until_ready((pred, mask))

    assert pred.shape == (B, NUM_PATCHES, P * P * C)
    assert mask.shape == (B, NUM_PATCHES)
    assert bool(jnp.all(jnp.isfinite(pred)))
    print("KERNEL_OK")
</pallas_src>

<mosaic_0001>
module attributes {stable_mosaic.version = 11 : i64} {
  func.func @_matmul_kernel(%arg0: i32, %arg1: i32, %arg2: i32, %arg3: memref<32x128xbf16, #tpu.memory_space<vmem>>, %arg4: memref<128x128xbf16, #tpu.memory_space<vmem>>, %arg5: memref<1x128xf32, #tpu.memory_space<vmem>>, %arg6: memref<32x128xbf16, #tpu.memory_space<vmem>>, %arg7: memref<32x128xbf16, #tpu.memory_space<vmem>>) attributes {dimension_semantics = [#tpu.dimension_semantics<parallel>, #tpu.dimension_semantics<parallel>, #tpu.dimension_semantics<arbitrary>], iteration_bounds = array<i64: 1, 1, 1>, scalar_prefetch = 0 : i64, scratch_operands = 0 : i64, tpu.core_type = #tpu.core_type<tc>, window_params = [{transform_indices = @transform_0, window_bounds = array<i64: 32, 128>}, {transform_indices = @transform_1, window_bounds = array<i64: 128, 128>}, {transform_indices = @transform_2, window_bounds = array<i64: 1, 128>}, {transform_indices = @transform_3, window_bounds = array<i64: 32, 128>}, {transform_indices = @transform_4, window_bounds = array<i64: 32, 128>}]} {
    %c0 = arith.constant 0 : index
    %c0_0 = arith.constant 0 : index
    %0 = vector.load %arg3[%c0, %c0_0] : memref<32x128xbf16, #tpu.memory_space<vmem>>, vector<32x128xbf16>
    %c0_1 = arith.constant 0 : index
    %c0_2 = arith.constant 0 : index
    %1 = vector.load %arg4[%c0_1, %c0_2] : memref<128x128xbf16, #tpu.memory_space<vmem>>, vector<128x128xbf16>
    %cst = arith.constant dense<0.000000e+00> : vector<32x128xf32>
    %2 = tpu.matmul %0, %1, %cst {dimension_numbers = #tpu.dot_dimension_numbers<[1], [0], [0], [1], [0, 0, 1, 1], [], []>} : vector<32x128xbf16>, vector<128x128xbf16>, vector<32x128xf32> -> vector<32x128xf32>
    %c0_3 = arith.constant 0 : index
    %c0_4 = arith.constant 0 : index
    %3 = vector.load %arg5[%c0_3, %c0_4] : memref<1x128xf32, #tpu.memory_space<vmem>>, vector<1x128xf32>
    %4 = vector.broadcast %3 : vector<1x128xf32> to vector<32x128xf32>
    %5 = arith.addf %2, %4 : vector<32x128xf32>
    %c0_5 = arith.constant 0 : index
    %c0_6 = arith.constant 0 : index
    %6 = vector.load %arg6[%c0_5, %c0_6] : memref<32x128xbf16, #tpu.memory_space<vmem>>, vector<32x128xbf16>
    %7 = arith.extf %6 : vector<32x128xbf16> to vector<32x128xf32>
    %8 = arith.addf %5, %7 : vector<32x128xf32>
    %9 = arith.truncf %8 : vector<32x128xf32> to vector<32x128xbf16>
    %c0_7 = arith.constant 0 : index
    %c0_8 = arith.constant 0 : index
    %10 = vector.load %arg7[%c0_7, %c0_8] : memref<32x128xbf16, #tpu.memory_space<vmem>>, vector<32x128xbf16>
    tpu.vector_store %arg7[%c0_7, %c0_8], %9 {strides = array<i32>} : memref<32x128xbf16, #tpu.memory_space<vmem>>, vector<32x128xbf16>,
    return
  }
  func.func @transform_0(%arg0: i32, %arg1: i32, %arg2: i32) -> (i32, i32) {
    %c0_i32 = arith.constant 0 : i32
    return %arg0, %arg2 : i32, i32
  }
  func.func @transform_1(%arg0: i32, %arg1: i32, %arg2: i32) -> (i32, i32) {
    %c0_i32 = arith.constant 0 : i32
    return %arg2, %arg1 : i32, i32
  }
  func.func @transform_2(%arg0: i32, %arg1: i32, %arg2: i32) -> (i32, i32) {
    %c0_i32 = arith.constant 0 : i32
    %c0_i32_0 = arith.constant 0 : i32
    return %c0_i32, %arg1 : i32, i32
  }
  func.func @transform_3(%arg0: i32, %arg1: i32, %arg2: i32) -> (i32, i32) {
    %c0_i32 = arith.constant 0 : i32
    return %arg0, %arg1 : i32, i32
  }
  func.func @transform_4(%arg0: i32, %arg1: i32, %arg2: i32) -> (i32, i32) {
    %c0_i32 = arith.constant 0 : i32
    return %arg0, %arg1 : i32, i32
  }
}

module attributes {stable_mosaic.version = 11 : i64} {
  func.func @_matmul_kernel(%arg0: i32, %arg1: i32, %arg2: i32, %arg3: memref<16x128xbf16, #tpu.memory_space<vmem>>, %arg4: memref<128x128xbf16, #tpu.memory_space<vmem>>, %arg5: memref<1x128xf32, #tpu.memory_space<vmem>>, %arg6: memref<1x128xf32, #tpu.memory_space<vmem>>, %arg7: memref<1x128xf32, #tpu.memory_space<vmem>>, %arg8: memref<16x128xbf16, #tpu.memory_space<vmem>>) attributes {dimension_semantics = [#tpu.dimension_semantics<parallel>, #tpu.dimension_semantics<parallel>, #tpu.dimension_semantics<arbitrary>], iteration_bounds = array<i64: 1, 1, 1>, scalar_prefetch = 0 : i64, scratch_operands = 0 : i64, tpu.core_type = #tpu.core_type<tc>, window_params = [{transform_indices = @transform_0, window_bounds = array<i64: 16, 128>}, {transform_indices = @transform_1, window_bounds = array<i64: 128, 128>}, {transform_indices = @transform_2, window_bounds = array<i64: 1, 128>}, {transform_indices = @transform_3, window_bounds = array<i64: 1, 128>}, {transform_indices = @transform_4, window_bounds = array<i64: 1, 128>}, {transform_indices = @transform_5, window_bounds = array<i64: 16, 128>}]} {
    %c0 = arith.constant 0 : index
    %c0_0 = arith.constant 0 : index
    %0 = vector.load %arg3[%c0, %c0_0] : memref<16x128xbf16, #tpu.memory_space<vmem>>, vector<16x128xbf16>
    %1 = arith.extf %0 : vector<16x128xbf16> to vector<16x128xf32>
    %cst = arith.constant dense<0.000000e+00> : vector<16xf32>
    %2 = vector.multi_reduction <add>, %1, %cst [1] : vector<16x128xf32> to vector<16xf32>
    %3 = vector.shape_cast %2 : vector<16xf32> to vector<16x1xf32>
    %cst_1 = arith.constant 3.125000e-02 : f32
    %4 = vector.broadcast %cst_1 : f32 to vector<16x1xf32>
    %5 = arith.mulf %3, %4 : vector<16x1xf32>
    %6 = vector.broadcast %5 : vector<16x1xf32> to vector<16x128xf32>
    %7 = arith.subf %1, %6 : vector<16x128xf32>
    %8 = tpu.iota {dimensions = array<i32: 1>} : vector<16x128xi32>
    %c32_i32 = arith.constant 32 : i32
    %9 = vector.broadcast %c32_i32 : i32 to vector<16x128xi32>
    %10 = arith.cmpi slt, %8, %9 : vector<16x128xi32>
    %cst_2 = arith.constant 0.000000e+00 : f32
    %11 = vector.broadcast %cst_2 : f32 to vector<16x128xf32>
    %12 = arith.select %10, %7, %11 : vector<16x128xi1>, vector<16x128xf32>
    %13 = arith.mulf %12, %12 : vector<16x128xf32>
    %cst_3 = arith.constant dense<0.000000e+00> : vector<16xf32>
    %14 = vector.multi_reduction <add>, %13, %cst_3 [1] : vector<16x128xf32> to vector<16xf32>
    %15 = vector.shape_cast %14 : vector<16xf32> to vector<16x1xf32>
    %cst_4 = arith.constant 3.125000e-02 : f32
    %16 = vector.broadcast %cst_4 : f32 to vector<16x1xf32>
    %17 = arith.mulf %15, %16 : vector<16x1xf32>
    %cst_5 = arith.constant 9.99999974E-6 : f32
    %18 = vector.broadcast %cst_5 : f32 to vector<16x1xf32>
    %19 = arith.addf %17, %18 : vector<16x1xf32>
    %20 = math.rsqrt %19 : vector<16x1xf32>
    %21 = vector.broadcast %20 : vector<16x1xf32> to vector<16x128xf32>
    %22 = arith.mulf %12, %21 : vector<16x128xf32>
    %c0_6 = arith.constant 0 : index
    %c0_7 = arith.constant 0 : index
    %23 = vector.load %arg6[%c0_6, %c0_7] : memref<1x128xf32, #tpu.memory_space<vmem>>, vector<1x128xf32>
    %24 = vector.broadcast %23 : vector<1x128xf32> to vector<16x128xf32>
    %25 = arith.mulf %22, %24 : vector<16x128xf32>
    %c0_8 = arith.constant 0 : index
    %c0_9 = arith.constant 0 : index
    %26 = vector.load %arg7[%c0_8, %c0_9] : memref<1x128xf32, #tpu.memory_space<vmem>>, vector<1x128xf32>
    %27 = vector.broadcast %26 : vector<1x128xf32> to vector<16x128xf32>
    %28 = arith.addf %25, %27 : vector<16x128xf32>
    %29 = arith.truncf %28 : vector<16x128xf32> to vector<16x128xbf16>
    %c0_10 = arith.constant 0 : index
    %c0_11 = arith.constant 0 : index
    %30 = vector.load %arg4[%c0_10, %c0_11] : memref<128x128xbf16, #tpu.memory_space<vmem>>, vector<128x128xbf16>
    %cst_12 = arith.constant dense<0.000000e+00> : vector<16x128xf32>
    %31 = tpu.matmul %29, %30, %cst_12 {dimension_numbers = #tpu.dot_dimension_numbers<[1], [0], [0], [1], [0, 0, 1, 1], [], []>} : vector<16x128xbf16>, vector<128x128xbf16>, vector<16x128xf32> -> vector<16x128xf32>
    %c0_13 = arith.constant 0 : index
    %c0_14 = arith.constant 0 : index
    %32 = vector.load %arg5[%c0_13, %c0_14] : memref<1x128xf32, #tpu.memory_space<vmem>>, vector<1x128xf32>
    %33 = vector.broadcast %32 : vector<1x128xf32> to vector<16x128xf32>
    %34 = arith.addf %31, %33 : vector<16x128xf32>
    %35 = arith.truncf %34 : vector<16x128xf32> to vector<16x128xbf16>
    %c0_15 = arith.constant 0 : index
    %c0_16 = arith.constant 0 : index
    %36 = vector.load %arg8[%c0_15, %c0_16] : memref<16x128xbf16, #tpu.memory_space<vmem>>, vector<16x128xbf16>
    tpu.vector_store %arg8[%c0_15, %c0_16], %35 {strides = array<i32>} : memref<16x128xbf16, #tpu.memory_space<vmem>>, vector<16x128xbf16>,
    return
  }
  func.func @transform_0(%arg0: i32, %arg1: i32, %arg2: i32) -> (i32, i32) {
    %c0_i32 = arith.constant 0 : i32
    return %arg0, %arg2 : i32, i32
  }
  func.func @transform_1(%arg0: i32, %arg1: i32, %arg2: i32) -> (i32, i32) {
    %c0_i32 = arith.constant 0 : i32
    return %arg2, %arg1 : i32, i32
  }
  func.func @transform_2(%arg0: i32, %arg1: i32, %arg2: i32) -> (i32, i32) {
    %c0_i32 = arith.constant 0 : i32
    %c0_i32_0 = arith.constant 0 : i32
    return %c0_i32, %arg1 : i32, i32
  }
  func.func @transform_3(%arg0: i32, %arg1: i32, %arg2: i32) -> (i32, i32) {
    %c0_i32 = arith.constant 0 : i32
    %c0_i32_0 = arith.constant 0 : i32
    return %c0_i32, %arg2 : i32, i32
  }
  func.func @transform_4(%arg0: i32, %arg1: i32, %arg2: i32) -> (i32, i32) {
    %c0_i32 = arith.constant 0 : i32
    %c0_i32_0 = arith.constant 0 : i32
    return %c0_i32, %arg2 : i32, i32
  }
  func.func @transform_5(%arg0: i32, %arg1: i32, %arg2: i32) -> (i32, i32) {
    %c0_i32 = arith.constant 0 : i32
    return %arg0, %arg1 : i32, i32
  }
}

module attributes {stable_mosaic.version = 11 : i64} {
  func.func @_flash_attn_kernel(%arg0: i32, %arg1: i32, %arg2: i32, %arg3: memref<8x8x128xbf16, #tpu.memory_space<vmem>>, %arg4: memref<8x8x128xbf16, #tpu.memory_space<vmem>>, %arg5: memref<8x8x128xbf16, #tpu.memory_space<vmem>>, %arg6: memref<8x8x128xbf16, #tpu.memory_space<vmem>>, %arg7: memref<8x8x1xf32, #tpu.memory_space<vmem>>, %arg8: memref<8x8x1xf32, #tpu.memory_space<vmem>>, %arg9: memref<8x8x128xf32, #tpu.memory_space<vmem>>) attributes {dimension_semantics = [#tpu.dimension_semantics<parallel>, #tpu.dimension_semantics<parallel>, #tpu.dimension_semantics<arbitrary>], iteration_bounds = array<i64: 1, 1, 1>, scalar_prefetch = 0 : i64, scratch_operands = 3 : i64, tpu.core_type = #tpu.core_type<tc>, window_params = [{transform_indices = @transform_0, window_bounds = array<i64: 8, 8, 128>}, {transform_indices = @transform_1, window_bounds = array<i64: 8, 8, 128>}, {transform_indices = @transform_2, window_bounds = array<i64: 8, 8, 128>}, {transform_indices = @transform_3, window_bounds = array<i64: 8, 8, 128>}]} {
    %c0_i32 = arith.constant 0 : i32
    %0 = arith.cmpi eq, %arg2, %c0_i32 : i32
    %1 = arith.extui %0 : i1 to i32
    %c0_i32_0 = arith.constant 0 : i32
    %2 = arith.cmpi ne, %1, %c0_i32_0 : i32
    scf.if %2 {
      %cst_37 = arith.constant 0xFF800000 : f32
      %44 = vector.broadcast %cst_37 : f32 to vector<8x8x1xf32>
      %c0_38 = arith.constant 0 : index
      %c0_39 = arith.constant 0 : index
      %c0_40 = arith.constant 0 : index
      %45 = vector.load %arg7[%c0_38, %c0_39, %c0_40] : memref<8x8x1xf32, #tpu.memory_space<vmem>>, vector<8x8x1xf32>
      tpu.vector_store %arg7[%c0_38, %c0_39, %c0_40], %44 {strides = array<i32>} : memref<8x8x1xf32, #tpu.memory_space<vmem>>, vector<8x8x1xf32>,
      %cst_41 = arith.constant 0.000000e+00 : f32
      %46 = vector.broadcast %cst_41 : f32 to vector<8x8x1xf32>
      %c0_42 = arith.constant 0 : index
      %c0_43 = arith.constant 0 : index
      %c0_44 = arith.constant 0 : index
      %47 = vector.load %arg8[%c0_42, %c0_43, %c0_44] : memref<8x8x1xf32, #tpu.memory_space<vmem>>, vector<8x8x1xf32>
      tpu.vector_store %arg8[%c0_42, %c0_43, %c0_44], %46 {strides = array<i32>} : memref<8x8x1xf32, #tpu.memory_space<vmem>>, vector<8x8x1xf32>,
      %cst_45 = arith.constant 0.000000e+00 : f32
      %48 = vector.broadcast %cst_45 : f32 to vector<8x8x128xf32>
      %c0_46 = arith.constant 0 : index
      %c0_47 = arith.constant 0 : index
      %c0_48 = arith.constant 0 : index
      %49 = vector.load %arg9[%c0_46, %c0_47, %c0_48] : memref<8x8x128xf32, #tpu.memory_space<vmem>>, vector<8x8x128xf32>
      tpu.vector_store %arg9[%c0_46, %c0_47, %c0_48], %48 {strides = array<i32>} : memref<8x8x128xf32, #tpu.memory_space<vmem>>, vector<8x8x128xf32>,
    } else {
    }
    %c0 = arith.constant 0 : index
    %c0_1 = arith.constant 0 : index
    %c0_2 = arith.constant 0 : index
    %3 = vector.load %arg3[%c0, %c0_1, %c0_2] : memref<8x8x128xbf16, #tpu.memory_space<vmem>>, vector<8x8x128xbf16>
    %cst = arith.constant 3.535160e-01 : bf16
    %4 = vector.broadcast %cst : bf16 to vector<8x8x128xbf16>
    %5 = arith.mulf %3, %4 : vector<8x8x128xbf16>
    %c0_3 = arith.constant 0 : index
    %c0_4 = arith.constant 0 : index
    %c0_5 = arith.constant 0 : index
    %6 = vector.load %arg4[%c0_3, %c0_4, %c0_5] : memref<8x8x128xbf16, #tpu.memory_space<vmem>>, vector<8x8x128xbf16>
    %c0_6 = arith.constant 0 : index
    %c0_7 = arith.constant 0 : index
    %c0_8 = arith.constant 0 : index
    %7 = vector.load %arg5[%c0_6, %c0_7, %c0_8] : memref<8x8x128xbf16, #tpu.memory_space<vmem>>, vector<8x8x128xbf16>
    "tpu.trace_start"() <{level = 10 : i32, message = "bqd,bkd->bqk"}> : () -> ()
    %cst_9 = arith.constant dense<0.000000e+00> : vector<8x8x8xf32>
    %8 = tpu.matmul %5, %6, %cst_9 {dimension_numbers = #tpu.dot_dimension_numbers<[2], [2], [1], [1], [0, 0, 0, 1, 1, 1], [0], [0]>} : vector<8x8x128xbf16>, vector<8x8x128xbf16>, vector<8x8x8xf32> -> vector<8x8x8xf32>
    "tpu.trace_stop"() : () -> ()
    %c8_i32 = arith.constant 8 : i32
    %9 = arith.muli %arg2, %c8_i32 : i32
    %10 = tpu.iota {dimensions = array<i32: 2>} : vector<8x8x8xi32>
    %11 = vector.broadcast %9 : i32 to vector<8x8x8xi32>
    %12 = arith.addi %11, %10 : vector<8x8x8xi32>
    %c5_i32 = arith.constant 5 : i32
    %13 = vector.broadcast %c5_i32 : i32 to vector<8x8x8xi32>
    %14 = arith.cmpi slt, %12, %13 : vector<8x8x8xi32>
    %cst_10 = arith.constant -1.000000e+30 : f32
    %15 = vector.broadcast %cst_10 : f32 to vector<8x8x8xf32>
    %16 = arith.select %14, %8, %15 : vector<8x8x8xi1>, vector<8x8x8xf32>
    %c0_11 = arith.constant 0 : index
    %c0_12 = arith.constant 0 : index
    %c0_13 = arith.constant 0 : index
    %17 = vector.load %arg7[%c0_11, %c0_12, %c0_13] : memref<8x8x1xf32, #tpu.memory_space<vmem>>, vector<8x8x1xf32>
    %cst_14 = arith.constant dense<0xFF800000> : vector<8x8xf32>
    %18 = vector.multi_reduction <maximumf>, %16, %cst_14 [2] : vector<8x8x8xf32> to vector<8x8xf32>
    %19 = vector.shape_cast %18 : vector<8x8xf32> to vector<8x8x1xf32>
    %20 = arith.maximumf %17, %19 : vector<8x8x1xf32>
    %c0_15 = arith.constant 0 : index
    %c0_16 = arith.constant 0 : index
    %c0_17 = arith.constant 0 : index
    %21 = vector.load %arg7[%c0_15, %c0_16, %c0_17] : memref<8x8x1xf32, #tpu.memory_space<vmem>>, vector<8x8x1xf32>
    %22 = arith.subf %21, %20 : vector<8x8x1xf32>
    %23 = math.exp %22 : vector<8x8x1xf32>
    %24 = vector.broadcast %20 : vector<8x8x1xf32> to vector<8x8x8xf32>
    %25 = arith.subf %16, %24 : vector<8x8x8xf32>
    %26 = math.exp %25 : vector<8x8x8xf32>
    %c0_18 = arith.constant 0 : index
    %c0_19 = arith.constant 0 : index
    %c0_20 = arith.constant 0 : index
    %27 = vector.load %arg8[%c0_18, %c0_19, %c0_20] : memref<8x8x1xf32, #tpu.memory_space<vmem>>, vector<8x8x1xf32>
    %28 = arith.mulf %23, %27 : vector<8x8x1xf32>
    %cst_21 = arith.constant dense<0.000000e+00> : vector<8x8xf32>
    %29 = vector.multi_reduction <add>, %26, %cst_21 [2] : vector<8x8x8xf32> to vector<8x8xf32>
    %30 = vector.shape_cast %29 : vector<8x8xf32> to vector<8x8x1xf32>
    %31 = arith.addf %28, %30 : vector<8x8x1xf32>
    %c0_22 = arith.constant 0 : index
    %c0_23 = arith.constant 0 : index
    %c0_24 = arith.constant 0 : index
    %32 = vector.load %arg8[%c0_22, %c0_23, %c0_24] : memref<8x8x1xf32, #tpu.memory_space<vmem>>, vector<8x8x1xf32>
    tpu.vector_store %arg8[%c0_22, %c0_23, %c0_24], %31 {strides = array<i32>} : memref<8x8x1xf32, #tpu.memory_space<vmem>>, vector<8x8x1xf32>,
    %c0_25 = arith.constant 0 : index
    %c0_26 = arith.constant 0 : index
    %c0_27 = arith.constant 0 : index
    %33 = vector.load %arg9[%c0_25, %c0_26, %c0_27] : memref<8x8x128xf32, #tpu.memory_space<vmem>>, vector<8x8x128xf32>
    %34 = vector.broadcast %23 : vector<8x8x1xf32> to vector<8x8x128xf32>
    %35 = arith.mulf %34, %33 : vector<8x8x128xf32>
    %36 = arith.truncf %26 : vector<8x8x8xf32> to vector<8x8x8xbf16>
    "tpu.trace_start"() <{level = 10 : i32, message = "bqk,bkd->bqd"}> : () -> ()
    %cst_28 = arith.constant dense<0.000000e+00> : vector<8x8x128xf32>
    %37 = tpu.matmul %36, %7, %cst_28 {dimension_numbers = #tpu.dot_dimension_numbers<[2], [1], [1], [2], [0, 0, 0, 1, 1, 2], [0], [0]>} : vector<8x8x8xbf16>, vector<8x8x128xbf16>, vector<8x8x128xf32> -> vector<8x8x128xf32>
    "tpu.trace_stop"() : () -> ()
    %38 = arith.addf %35, %37 : vector<8x8x128xf32>
    %c0_29 = arith.constant 0 : index
    %c0_30 = arith.constant 0 : index
    %c0_31 = arith.constant 0 : index
    %39 = vector.load %arg9[%c0_29, %c0_30, %c0_31] : memref<8x8x128xf32, #tpu.memory_space<vmem>>, vector<8x8x128xf32>
    tpu.vector_store %arg9[%c0_29, %c0_30, %c0_31], %38 {strides = array<i32>} : memref<8x8x128xf32, #tpu.memory_space<vmem>>, vector<8x8x128xf32>,
    %c0_32 = arith.constant 0 : index
    %c0_33 = arith.constant 0 : index
    %c0_34 = arith.constant 0 : index
    %40 = vector.load %arg7[%c0_32, %c0_33, %c0_34] : memref<8x8x1xf32, #tpu.memory_space<vmem>>, vector<8x8x1xf32>
    tpu.vector_store %arg7[%c0_32, %c0_33, %c0_34], %20 {strides = array<i32>} : memref<8x8x1xf32, #tpu.memory_space<vmem>>, vector<8x8x1xf32>,
    %c0_i32_35 = arith.constant 0 : i32
    %41 = arith.cmpi eq, %arg2, %c0_i32_35 : i32
    %42 = arith.extui %41 : i1 to i32
    %c0_i32_36 = arith.constant 0 : i32
    %43 = arith.cmpi ne, %42, %c0_i32_36 : i32
    scf.if %43 {
      %c0_37 = arith.constant 0 : index
      %c0_38 = arith.constant 0 : index
      %c0_39 = arith.constant 0 : index
      %44 = vector.load %arg9[%c0_37, %c0_38, %c0_39] : memref<8x8x128xf32, #tpu.memory_space<vmem>>, vector<8x8x128xf32>
      %c0_40 = arith.constant 0 : index
      %c0_41 = arith.constant 0 : index
      %c0_42 = arith.constant 0 : index
      %45 = vector.load %arg8[%c0_40, %c0_41, %c0_42] : memref<8x8x1xf32, #tpu.memory_space<vmem>>, vector<8x8x1xf32>
      %46 = tpu.reciprocal %45 {approx = true} : vector<8x8x1xf32> -> vector<8x8x1xf32>
      %47 = vector.broadcast %46 : vector<8x8x1xf32> to vector<8x8x128xf32>
      %48 = arith.mulf %44, %47 : vector<8x8x128xf32>
      %49 = arith.truncf %48 : vector<8x8x128xf32> to vector<8x8x128xbf16>
      %c0_43 = arith.constant 0 : index
      %c0_44 = arith.constant 0 : index
      %c0_45 = arith.constant 0 : index
      %50 = vector.load %arg6[%c0_43, %c0_44, %c0_45] : memref<8x8x128xbf16, #tpu.memory_space<vmem>>, vector<8x8x128xbf16>
      tpu.vector_store %arg6[%c0_43, %c0_44, %c0_45], %49 {strides = array<i32>} : memref<8x8x128xbf16, #tpu.memory_space<vmem>>, vector<8x8x128xbf16>,
    } else {
    }
    return
  }
  func.func @transform_0(%arg0: i32, %arg1: i32, %arg2: i32) -> (i32, i32, i32) {
    %c0_i32 = arith.constant 0 : i32
    %c0_i32_0 = arith.constant 0 : i32
    return %arg0, %arg1, %c0_i32 : i32, i32, i32
  }
  func.func @transform_1(%arg0: i32, %arg1: i32, %arg2: i32) -> (i32, i32, i32) {
    %c0_i32 = arith.constant 0 : i32
    %c0_i32_0 = arith.constant 0 : i32
    return %arg0, %arg2, %c0_i32 : i32, i32, i32
  }
  func.func @transform_2(%arg0: i32, %arg1: i32, %arg2: i32) -> (i32, i32, i32) {
    %c0_i32 = arith.constant 0 : i32
    %c0_i32_0 = arith.constant 0 : i32
    return %arg0, %arg2, %c0_i32 : i32, i32, i32
  }
  func.func @transform_3(%arg0: i32, %arg1: i32, %arg2: i32) -> (i32, i32, i32) {
    %c0_i32 = arith.constant 0 : i32
    %c0_i32_0 = arith.constant 0 : i32
    return %arg0, %arg1, %c0_i32 : i32, i32, i32
  }
}

module attributes {stable_mosaic.version = 11 : i64} {
  func.func @_matmul_kernel(%arg0: i32, %arg1: i32, %arg2: i32, %arg3: memref<16x128xbf16, #tpu.memory_space<vmem>>, %arg4: memref<128x128xbf16, #tpu.memory_space<vmem>>, %arg5: memref<1x128xf32, #tpu.memory_space<vmem>>, %arg6: memref<16x128xbf16, #tpu.memory_space<vmem>>, %arg7: memref<16x128xbf16, #tpu.memory_space<vmem>>) attributes {dimension_semantics = [#tpu.dimension_semantics<parallel>, #tpu.dimension_semantics<parallel>, #tpu.dimension_semantics<arbitrary>], iteration_bounds = array<i64: 1, 1, 1>, scalar_prefetch = 0 : i64, scratch_operands = 0 : i64, tpu.core_type = #tpu.core_type<tc>, window_params = [{transform_indices = @transform_0, window_bounds = array<i64: 16, 128>}, {transform_indices = @transform_1, window_bounds = array<i64: 128, 128>}, {transform_indices = @transform_2, window_bounds = array<i64: 1, 128>}, {transform_indices = @transform_3, window_bounds = array<i64: 16, 128>}, {transform_indices = @transform_4, window_bounds = array<i64: 16, 128>}]} {
    %c0 = arith.constant 0 : index
    %c0_0 = arith.constant 0 : index
    %0 = vector.load %arg3[%c0, %c0_0] : memref<16x128xbf16, #tpu.memory_space<vmem>>, vector<16x128xbf16>
    %c0_1 = arith.constant 0 : index
    %c0_2 = arith.constant 0 : index
    %1 = vector.load %arg4[%c0_1, %c0_2] : memref<128x128xbf16, #tpu.memory_space<vmem>>, vector<128x128xbf16>
    %cst = arith.constant dense<0.000000e+00> : vector<16x128xf32>
    %2 = tpu.matmul %0, %1, %cst {dimension_numbers = #tpu.dot_dimension_numbers<[1], [0], [0], [1], [0, 0, 1, 1], [], []>} : vector<16x128xbf16>, vector<128x128xbf16>, vector<16x128xf32> -> vector<16x128xf32>
    %c0_3 = arith.constant 0 : index
    %c0_4 = arith.constant 0 : index
    %3 = vector.load %arg5[%c0_3, %c0_4] : memref<1x128xf32, #tpu.memory_space<vmem>>, vector<1x128xf32>
    %4 = vector.broadcast %3 : vector<1x128xf32> to vector<16x128xf32>
    %5 = arith.addf %2, %4 : vector<16x128xf32>
    %c0_5 = arith.constant 0 : index
    %c0_6 = arith.constant 0 : index
    %6 = vector.load %arg6[%c0_5, %c0_6] : memref<16x128xbf16, #tpu.memory_space<vmem>>, vector<16x128xbf16>
    %7 = arith.extf %6 : vector<16x128xbf16> to vector<16x128xf32>
    %8 = arith.addf %5, %7 : vector<16x128xf32>
    %9 = arith.truncf %8 : vector<16x128xf32> to vector<16x128xbf16>
    %c0_7 = arith.constant 0 : index
    %c0_8 = arith.constant 0 : index
    %10 = vector.load %arg7[%c0_7, %c0_8] : memref<16x128xbf16, #tpu.memory_space<vmem>>, vector<16x128xbf16>
    tpu.vector_store %arg7[%c0_7, %c0_8], %9 {strides = array<i32>} : memref<16x128xbf16, #tpu.memory_space<vmem>>, vector<16x128xbf16>,
    return
  }
  func.func @transform_0(%arg0: i32, %arg1: i32, %arg2: i32) -> (i32, i32) {
    %c0_i32 = arith.constant 0 : i32
    return %arg0, %arg2 : i32, i32
  }
  func.func @transform_1(%arg0: i32, %arg1: i32, %arg2: i32) -> (i32, i32) {
    %c0_i32 = arith.constant 0 : i32
    return %arg2, %arg1 : i32, i32
  }
  func.func @transform_2(%arg0: i32, %arg1: i32, %arg2: i32) -> (i32, i32) {
    %c0_i32 = arith.constant 0 : i32
    %c0_i32_0 = arith.constant 0 : i32
    return %c0_i32, %arg1 : i32, i32
  }
  func.func @transform_3(%arg0: i32, %arg1: i32, %arg2: i32) -> (i32, i32) {
    %c0_i32 = arith.constant 0 : i32
    return %arg0, %arg1 : i32, i32
  }
  func.func @transform_4(%arg0: i32, %arg1: i32, %arg2: i32) -> (i32, i32) {
    %c0_i32 = arith.constant 0 : i32
    return %arg0, %arg1 : i32, i32
  }
}

module attributes {stable_mosaic.version = 11 : i64} {
  func.func @_matmul_kernel(%arg0: i32, %arg1: i32, %arg2: i32, %arg3: memref<16x128xbf16, #tpu.memory_space<vmem>>, %arg4: memref<128x128xbf16, #tpu.memory_space<vmem>>, %arg5: memref<1x128xf32, #tpu.memory_space<vmem>>, %arg6: memref<1x128xf32, #tpu.memory_space<vmem>>, %arg7: memref<1x128xf32, #tpu.memory_space<vmem>>, %arg8: memref<16x128xbf16, #tpu.memory_space<vmem>>) attributes {dimension_semantics = [#tpu.dimension_semantics<parallel>, #tpu.dimension_semantics<parallel>, #tpu.dimension_semantics<arbitrary>], iteration_bounds = array<i64: 1, 1, 1>, scalar_prefetch = 0 : i64, scratch_operands = 0 : i64, tpu.core_type = #tpu.core_type<tc>, window_params = [{transform_indices = @transform_0, window_bounds = array<i64: 16, 128>}, {transform_indices = @transform_1, window_bounds = array<i64: 128, 128>}, {transform_indices = @transform_2, window_bounds = array<i64: 1, 128>}, {transform_indices = @transform_3, window_bounds = array<i64: 1, 128>}, {transform_indices = @transform_4, window_bounds = array<i64: 1, 128>}, {transform_indices = @transform_5, window_bounds = array<i64: 16, 128>}]} {
    %c0 = arith.constant 0 : index
    %c0_0 = arith.constant 0 : index
    %0 = vector.load %arg3[%c0, %c0_0] : memref<16x128xbf16, #tpu.memory_space<vmem>>, vector<16x128xbf16>
    %1 = arith.extf %0 : vector<16x128xbf16> to vector<16x128xf32>
    %cst = arith.constant dense<0.000000e+00> : vector<16xf32>
    %2 = vector.multi_reduction <add>, %1, %cst [1] : vector<16x128xf32> to vector<16xf32>
    %3 = vector.shape_cast %2 : vector<16xf32> to vector<16x1xf32>
    %cst_1 = arith.constant 3.125000e-02 : f32
    %4 = vector.broadcast %cst_1 : f32 to vector<16x1xf32>
    %5 = arith.mulf %3, %4 : vector<16x1xf32>
    %6 = vector.broadcast %5 : vector<16x1xf32> to vector<16x128xf32>
    %7 = arith.subf %1, %6 : vector<16x128xf32>
    %8 = tpu.iota {dimensions = array<i32: 1>} : vector<16x128xi32>
    %c32_i32 = arith.constant 32 : i32
    %9 = vector.broadcast %c32_i32 : i32 to vector<16x128xi32>
    %10 = arith.cmpi slt, %8, %9 : vector<16x128xi32>
    %cst_2 = arith.constant 0.000000e+00 : f32
    %11 = vector.broadcast %cst_2 : f32 to vector<16x128xf32>
    %12 = arith.select %10, %7, %11 : vector<16x128xi1>, vector<16x128xf32>
    %13 = arith.mulf %12, %12 : vector<16x128xf32>
    %cst_3 = arith.constant dense<0.000000e+00> : vector<16xf32>
    %14 = vector.multi_reduction <add>, %13, %cst_3 [1] : vector<16x128xf32> to vector<16xf32>
    %15 = vector.shape_cast %14 : vector<16xf32> to vector<16x1xf32>
    %cst_4 = arith.constant 3.125000e-02 : f32
    %16 = vector.broadcast %cst_4 : f32 to vector<16x1xf32>
    %17 = arith.mulf %15, %16 : vector<16x1xf32>
    %cst_5 = arith.constant 9.99999974E-6 : f32
    %18 = vector.broadcast %cst_5 : f32 to vector<16x1xf32>
    %19 = arith.addf %17, %18 : vector<16x1xf32>
    %20 = math.rsqrt %19 : vector<16x1xf32>
    %21 = vector.broadcast %20 : vector<16x1xf32> to vector<16x128xf32>
    %22 = arith.mulf %12, %21 : vector<16x128xf32>
    %c0_6 = arith.constant 0 : index
    %c0_7 = arith.constant 0 : index
    %23 = vector.load %arg6[%c0_6, %c0_7] : memref<1x128xf32, #tpu.memory_space<vmem>>, vector<1x128xf32>
    %24 = vector.broadcast %23 : vector<1x128xf32> to vector<16x128xf32>
    %25 = arith.mulf %22, %24 : vector<16x128xf32>
    %c0_8 = arith.constant 0 : index
    %c0_9 = arith.constant 0 : index
    %26 = vector.load %arg7[%c0_8, %c0_9] : memref<1x128xf32, #tpu.memory_space<vmem>>, vector<1x128xf32>
    %27 = vector.broadcast %26 : vector<1x128xf32> to vector<16x128xf32>
    %28 = arith.addf %25, %27 : vector<16x128xf32>
    %29 = arith.truncf %28 : vector<16x128xf32> to vector<16x128xbf16>
    %c0_10 = arith.constant 0 : index
    %c0_11 = arith.constant 0 : index
    %30 = vector.load %arg4[%c0_10, %c0_11] : memref<128x128xbf16, #tpu.memory_space<vmem>>, vector<128x128xbf16>
    %cst_12 = arith.constant dense<0.000000e+00> : vector<16x128xf32>
    %31 = tpu.matmul %29, %30, %cst_12 {dimension_numbers = #tpu.dot_dimension_numbers<[1], [0], [0], [1], [0, 0, 1, 1], [], []>} : vector<16x128xbf16>, vector<128x128xbf16>, vector<16x128xf32> -> vector<16x128xf32>
    %c0_13 = arith.constant 0 : index
    %c0_14 = arith.constant 0 : index
    %32 = vector.load %arg5[%c0_13, %c0_14] : memref<1x128xf32, #tpu.memory_space<vmem>>, vector<1x128xf32>
    %33 = vector.broadcast %32 : vector<1x128xf32> to vector<16x128xf32>
    %34 = arith.addf %31, %33 : vector<16x128xf32>
    %cst_15 = arith.constant 5.000000e-01 : f32
    %35 = vector.broadcast %cst_15 : f32 to vector<16x128xf32>
    %36 = arith.mulf %35, %34 : vector<16x128xf32>
    %cst_16 = arith.constant 0.707106769 : f32
    %37 = vector.broadcast %cst_16 : f32 to vector<16x128xf32>
    %38 = arith.mulf %34, %37 : vector<16x128xf32>
    %39 = math.absf %38 : vector<16x128xf32>
    %cst_17 = arith.constant 0.327591091 : f32
    %40 = vector.broadcast %cst_17 : f32 to vector<16x128xf32>
    %41 = arith.mulf %40, %39 : vector<16x128xf32>
    %cst_18 = arith.constant 1.000000e+00 : f32
    %42 = vector.broadcast %cst_18 : f32 to vector<16x128xf32>
    %43 = arith.addf %42, %41 : vector<16x128xf32>
    %cst_19 = arith.constant 1.000000e+00 : f32
    %44 = vector.broadcast %cst_19 : f32 to vector<16x128xf32>
    %45 = arith.divf %44, %43 : vector<16x128xf32>
    %cst_20 = arith.constant 1.06140542 : f32
    %46 = vector.broadcast %cst_20 : f32 to vector<16x128xf32>
    %47 = arith.mulf %46, %45 : vector<16x128xf32>
    %cst_21 = arith.constant -1.45315206 : f32
    %48 = vector.broadcast %cst_21 : f32 to vector<16x128xf32>
    %49 = arith.addf %47, %48 : vector<16x128xf32>
    %50 = arith.mulf %49, %45 : vector<16x128xf32>
    %cst_22 = arith.constant 1.42141378 : f32
    %51 = vector.broadcast %cst_22 : f32 to vector<16x128xf32>
    %52 = arith.addf %50, %51 : vector<16x128xf32>
    %53 = arith.mulf %52, %45 : vector<16x128xf32>
    %cst_23 = arith.constant -0.284496725 : f32
    %54 = vector.broadcast %cst_23 : f32 to vector<16x128xf32>
    %55 = arith.addf %53, %54 : vector<16x128xf32>
    %56 = arith.mulf %55, %45 : vector<16x128xf32>
    %cst_24 = arith.constant 0.254829586 : f32
    %57 = vector.broadcast %cst_24 : f32 to vector<16x128xf32>
    %58 = arith.addf %56, %57 : vector<16x128xf32>
    %59 = arith.mulf %58, %45 : vector<16x128xf32>
    %cst_25 = arith.constant 0.000000e+00 : f32
    %60 = vector.broadcast %cst_25 : f32 to vector<16x128xf32>
    %61 = arith.subf %60, %39 : vector<16x128xf32>
    %62 = arith.mulf %61, %39 : vector<16x128xf32>
    %63 = math.exp %62 : vector<16x128xf32>
    %64 = arith.mulf %59, %63 : vector<16x128xf32>
    %cst_26 = arith.constant 1.000000e+00 : f32
    %65 = vector.broadcast %cst_26 : f32 to vector<16x128xf32>
    %66 = arith.subf %65, %64 : vector<16x128xf32>
    %cst_27 = arith.constant 0.000000e+00 : f32
    %67 = vector.broadcast %cst_27 : f32 to vector<16x128xf32>
    %68 = arith.cmpf olt, %38, %67 : vector<16x128xf32>
    %cst_28 = arith.constant 0.000000e+00 : f32
    %69 = vector.broadcast %cst_28 : f32 to vector<16x128xf32>
    %70 = arith.subf %69, %66 : vector<16x128xf32>
    %71 = arith.select %68, %70, %66 : vector<16x128xi1>, vector<16x128xf32>
    %cst_29 = arith.constant 1.000000e+00 : f32
    %72 = vector.broadcast %cst_29 : f32 to vector<16x128xf32>
    %73 = arith.addf %72, %71 : vector<16x128xf32>
    %74 = arith.mulf %36, %73 : vector<16x128xf32>
    %75 = arith.truncf %74 : vector<16x128xf32> to vector<16x128xbf16>
    %c0_30 = arith.constant 0 : index
    %c0_31 = arith.constant 0 : index
    %76 = vector.load %arg8[%c0_30, %c0_31] : memref<16x128xbf16, #tpu.memory_space<vmem>>, vector<16x128xbf16>
    tpu.vector_store %arg8[%c0_30, %c0_31], %75 {strides = array<i32>} : memref<16x128xbf16, #tpu.memory_space<vmem>>, vector<16x128xbf16>,
    return
  }
  func.func @transform_0(%arg0: i32, %arg1: i32, %arg2: i32) -> (i32, i32) {
    %c0_i32 = arith.constant 0 : i32
    return %arg0, %arg2 : i32, i32
  }
  func.func @transform_1(%arg0: i32, %arg1: i32, %arg2: i32) -> (i32, i32) {
    %c0_i32 = arith.constant 0 : i32
    return %arg2, %arg1 : i32, i32
  }
  func.func @transform_2(%arg0: i32, %arg1: i32, %arg2: i32) -> (i32, i32) {
    %c0_i32 = arith.constant 0 : i32
    %c0_i32_0 = arith.constant 0 : i32
    return %c0_i32, %arg1 : i32, i32
  }
  func.func @transform_3(%arg0: i32, %arg1: i32, %arg2: i32) -> (i32, i32) {
    %c0_i32 = arith.constant 0 : i32
    %c0_i32_0 = arith.constant 0 : i32
    return %c0_i32, %arg2 : i32, i32
  }
  func.func @transform_4(%arg0: i32, %arg1: i32, %arg2: i32) -> (i32, i32) {
    %c0_i32 = arith.constant 0 : i32
    %c0_i32_0 = arith.constant 0 : i32
    return %c0_i32, %arg2 : i32, i32
  }
  func.func @transform_5(%arg0: i32, %arg1: i32, %arg2: i32) -> (i32, i32) {
    %c0_i32 = arith.constant 0 : i32
    return %arg0, %arg1 : i32, i32
  }
}

module attributes {stable_mosaic.version = 11 : i64} {
  func.func @_matmul_kernel(%arg0: i32, %arg1: i32, %arg2: i32, %arg3: memref<48x128xbf16, #tpu.memory_space<vmem>>, %arg4: memref<128x128xbf16, #tpu.memory_space<vmem>>, %arg5: memref<1x128xf32, #tpu.memory_space<vmem>>, %arg6: memref<1x128xf32, #tpu.memory_space<vmem>>, %arg7: memref<1x128xf32, #tpu.memory_space<vmem>>, %arg8: memref<48x128xbf16, #tpu.memory_space<vmem>>) attributes {dimension_semantics = [#tpu.dimension_semantics<parallel>, #tpu.dimension_semantics<parallel>, #tpu.dimension_semantics<arbitrary>], iteration_bounds = array<i64: 1, 1, 1>, scalar_prefetch = 0 : i64, scratch_operands = 0 : i64, tpu.core_type = #tpu.core_type<tc>, window_params = [{transform_indices = @transform_0, window_bounds = array<i64: 48, 128>}, {transform_indices = @transform_1, window_bounds = array<i64: 128, 128>}, {transform_indices = @transform_2, window_bounds = array<i64: 1, 128>}, {transform_indices = @transform_3, window_bounds = array<i64: 1, 128>}, {transform_indices = @transform_4, window_bounds = array<i64: 1, 128>}, {transform_indices = @transform_5, window_bounds = array<i64: 48, 128>}]} {
    %c0 = arith.constant 0 : index
    %c0_0 = arith.constant 0 : index
    %0 = vector.load %arg3[%c0, %c0_0] : memref<48x128xbf16, #tpu.memory_space<vmem>>, vector<48x128xbf16>
    %1 = arith.extf %0 : vector<48x128xbf16> to vector<48x128xf32>
    %cst = arith.constant dense<0.000000e+00> : vector<48xf32>
    %2 = vector.multi_reduction <add>, %1, %cst [1] : vector<48x128xf32> to vector<48xf32>
    %3 = vector.shape_cast %2 : vector<48xf32> to vector<48x1xf32>
    %cst_1 = arith.constant 3.125000e-02 : f32
    %4 = vector.broadcast %cst_1 : f32 to vector<48x1xf32>
    %5 = arith.mulf %3, %4 : vector<48x1xf32>
    %6 = vector.broadcast %5 : vector<48x1xf32> to vector<48x128xf32>
    %7 = arith.subf %1, %6 : vector<48x128xf32>
    %8 = tpu.iota {dimensions = array<i32: 1>} : vector<48x128xi32>
    %c32_i32 = arith.constant 32 : i32
    %9 = vector.broadcast %c32_i32 : i32 to vector<48x128xi32>
    %10 = arith.cmpi slt, %8, %9 : vector<48x128xi32>
    %cst_2 = arith.constant 0.000000e+00 : f32
    %11 = vector.broadcast %cst_2 : f32 to vector<48x128xf32>
    %12 = arith.select %10, %7, %11 : vector<48x128xi1>, vector<48x128xf32>
    %13 = arith.mulf %12, %12 : vector<48x128xf32>
    %cst_3 = arith.constant dense<0.000000e+00> : vector<48xf32>
    %14 = vector.multi_reduction <add>, %13, %cst_3 [1] : vector<48x128xf32> to vector<48xf32>
    %15 = vector.shape_cast %14 : vector<48xf32> to vector<48x1xf32>
    %cst_4 = arith.constant 3.125000e-02 : f32
    %16 = vector.broadcast %cst_4 : f32 to vector<48x1xf32>
    %17 = arith.mulf %15, %16 : vector<48x1xf32>
    %cst_5 = arith.constant 9.99999974E-6 : f32
    %18 = vector.broadcast %cst_5 : f32 to vector<48x1xf32>
    %19 = arith.addf %17, %18 : vector<48x1xf32>
    %20 = math.rsqrt %19 : vector<48x1xf32>
    %21 = vector.broadcast %20 : vector<48x1xf32> to vector<48x128xf32>
    %22 = arith.mulf %12, %21 : vector<48x128xf32>
    %c0_6 = arith.constant 0 : index
    %c0_7 = arith.constant 0 : index
    %23 = vector.load %arg6[%c0_6, %c0_7] : memref<1x128xf32, #tpu.memory_space<vmem>>, vector<1x128xf32>
    %24 = vector.broadcast %23 : vector<1x128xf32> to vector<48x128xf32>
    %25 = arith.mulf %22, %24 : vector<48x128xf32>
    %c0_8 = arith.constant 0 : index
    %c0_9 = arith.constant 0 : index
    %26 = vector.load %arg7[%c0_8, %c0_9] : memref<1x128xf32, #tpu.memory_space<vmem>>, vector<1x128xf32>
    %27 = vector.broadcast %26 : vector<1x128xf32> to vector<48x128xf32>
    %28 = arith.addf %25, %27 : vector<48x128xf32>
    %29 = arith.truncf %28 : vector<48x128xf32> to vector<48x128xbf16>
    %c0_10 = arith.constant 0 : index
    %c0_11 = arith.constant 0 : index
    %30 = vector.load %arg4[%c0_10, %c0_11] : memref<128x128xbf16, #tpu.memory_space<vmem>>, vector<128x128xbf16>
    %cst_12 = arith.constant dense<0.000000e+00> : vector<48x128xf32>
    %31 = tpu.matmul %29, %30, %cst_12 {dimension_numbers = #tpu.dot_dimension_numbers<[1], [0], [0], [1], [0, 0, 1, 1], [], []>} : vector<48x128xbf16>, vector<128x128xbf16>, vector<48x128xf32> -> vector<48x128xf32>
    %c0_13 = arith.constant 0 : index
    %c0_14 = arith.constant 0 : index
    %32 = vector.load %arg5[%c0_13, %c0_14] : memref<1x128xf32, #tpu.memory_space<vmem>>, vector<1x128xf32>
    %33 = vector.broadcast %32 : vector<1x128xf32> to vector<48x128xf32>
    %34 = arith.addf %31, %33 : vector<48x128xf32>
    %35 = arith.truncf %34 : vector<48x128xf32> to vector<48x128xbf16>
    %c0_15 = arith.constant 0 : index
    %c0_16 = arith.constant 0 : index
    %36 = vector.load %arg8[%c0_15, %c0_16] : memref<48x128xbf16, #tpu.memory_space<vmem>>, vector<48x128xbf16>
    tpu.vector_store %arg8[%c0_15, %c0_16], %35 {strides = array<i32>} : memref<48x128xbf16, #tpu.memory_space<vmem>>, vector<48x128xbf16>,
    return
  }
  func.func @transform_0(%arg0: i32, %arg1: i32, %arg2: i32) -> (i32, i32) {
    %c0_i32 = arith.constant 0 : i32
    return %arg0, %arg2 : i32, i32
  }
  func.func @transform_1(%arg0: i32, %arg1: i32, %arg2: i32) -> (i32, i32) {
    %c0_i32 = arith.constant 0 : i32
    return %arg2, %arg1 : i32, i32
  }
  func.func @transform_2(%arg0: i32, %arg1: i32, %arg2: i32) -> (i32, i32) {
    %c0_i32 = arith.constant 0 : i32
    %c0_i32_0 = arith.constant 0 : i32
    return %c0_i32, %arg1 : i32, i32
  }
  func.func @transform_3(%arg0: i32, %arg1: i32, %arg2: i32) -> (i32, i32) {
    %c0_i32 = arith.constant 0 : i32
    %c0_i32_0 = arith.constant 0 : i32
    return %c0_i32, %arg2 : i32, i32
  }
  func.func @transform_4(%arg0: i32, %arg1: i32, %arg2: i32) -> (i32, i32) {
    %c0_i32 = arith.constant 0 : i32
    %c0_i32_0 = arith.constant 0 : i32
    return %c0_i32, %arg2 : i32, i32
  }
  func.func @transform_5(%arg0: i32, %arg1: i32, %arg2: i32) -> (i32, i32) {
    %c0_i32 = arith.constant 0 : i32
    return %arg0, %arg1 : i32, i32
  }
}

module attributes {stable_mosaic.version = 11 : i64} {
  func.func @_flash_attn_kernel(%arg0: i32, %arg1: i32, %arg2: i32, %arg3: memref<8x24x128xbf16, #tpu.memory_space<vmem>>, %arg4: memref<8x24x128xbf16, #tpu.memory_space<vmem>>, %arg5: memref<8x24x128xbf16, #tpu.memory_space<vmem>>, %arg6: memref<8x24x128xbf16, #tpu.memory_space<vmem>>, %arg7: memref<8x24x1xf32, #tpu.memory_space<vmem>>, %arg8: memref<8x24x1xf32, #tpu.memory_space<vmem>>, %arg9: memref<8x24x128xf32, #tpu.memory_space<vmem>>) attributes {dimension_semantics = [#tpu.dimension_semantics<parallel>, #tpu.dimension_semantics<parallel>, #tpu.dimension_semantics<arbitrary>], iteration_bounds = array<i64: 1, 1, 1>, scalar_prefetch = 0 : i64, scratch_operands = 3 : i64, tpu.core_type = #tpu.core_type<tc>, window_params = [{transform_indices = @transform_0, window_bounds = array<i64: 8, 24, 128>}, {transform_indices = @transform_1, window_bounds = array<i64: 8, 24, 128>}, {transform_indices = @transform_2, window_bounds = array<i64: 8, 24, 128>}, {transform_indices = @transform_3, window_bounds = array<i64: 8, 24, 128>}]} {
    %c0_i32 = arith.constant 0 : i32
    %0 = arith.cmpi eq, %arg2, %c0_i32 : i32
    %1 = arith.extui %0 : i1 to i32
    %c0_i32_0 = arith.constant 0 : i32
    %2 = arith.cmpi ne, %1, %c0_i32_0 : i32
    scf.if %2 {
      %cst_37 = arith.constant 0xFF800000 : f32
      %44 = vector.broadcast %cst_37 : f32 to vector<8x24x1xf32>
      %c0_38 = arith.constant 0 : index
      %c0_39 = arith.constant 0 : index
      %c0_40 = arith.constant 0 : index
      %45 = vector.load %arg7[%c0_38, %c0_39, %c0_40] : memref<8x24x1xf32, #tpu.memory_space<vmem>>, vector<8x24x1xf32>
      tpu.vector_store %arg7[%c0_38, %c0_39, %c0_40], %44 {strides = array<i32>} : memref<8x24x1xf32, #tpu.memory_space<vmem>>, vector<8x24x1xf32>,
      %cst_41 = arith.constant 0.000000e+00 : f32
      %46 = vector.broadcast %cst_41 : f32 to vector<8x24x1xf32>
      %c0_42 = arith.constant 0 : index
      %c0_43 = arith.constant 0 : index
      %c0_44 = arith.constant 0 : index
      %47 = vector.load %arg8[%c0_42, %c0_43, %c0_44] : memref<8x24x1xf32, #tpu.memory_space<vmem>>, vector<8x24x1xf32>
      tpu.vector_store %arg8[%c0_42, %c0_43, %c0_44], %46 {strides = array<i32>} : memref<8x24x1xf32, #tpu.memory_space<vmem>>, vector<8x24x1xf32>,
      %cst_45 = arith.constant 0.000000e+00 : f32
      %48 = vector.broadcast %cst_45 : f32 to vector<8x24x128xf32>
      %c0_46 = arith.constant 0 : index
      %c0_47 = arith.constant 0 : index
      %c0_48 = arith.constant 0 : index
      %49 = vector.load %arg9[%c0_46, %c0_47, %c0_48] : memref<8x24x128xf32, #tpu.memory_space<vmem>>, vector<8x24x128xf32>
      tpu.vector_store %arg9[%c0_46, %c0_47, %c0_48], %48 {strides = array<i32>} : memref<8x24x128xf32, #tpu.memory_space<vmem>>, vector<8x24x128xf32>,
    } else {
    }
    %c0 = arith.constant 0 : index
    %c0_1 = arith.constant 0 : index
    %c0_2 = arith.constant 0 : index
    %3 = vector.load %arg3[%c0, %c0_1, %c0_2] : memref<8x24x128xbf16, #tpu.memory_space<vmem>>, vector<8x24x128xbf16>
    %cst = arith.constant 3.535160e-01 : bf16
    %4 = vector.broadcast %cst : bf16 to vector<8x24x128xbf16>
    %5 = arith.mulf %3, %4 : vector<8x24x128xbf16>
    %c0_3 = arith.constant 0 : index
    %c0_4 = arith.constant 0 : index
    %c0_5 = arith.constant 0 : index
    %6 = vector.load %arg4[%c0_3, %c0_4, %c0_5] : memref<8x24x128xbf16, #tpu.memory_space<vmem>>, vector<8x24x128xbf16>
    %c0_6 = arith.constant 0 : index
    %c0_7 = arith.constant 0 : index
    %c0_8 = arith.constant 0 : index
    %7 = vector.load %arg5[%c0_6, %c0_7, %c0_8] : memref<8x24x128xbf16, #tpu.memory_space<vmem>>, vector<8x24x128xbf16>
    "tpu.trace_start"() <{level = 10 : i32, message = "bqd,bkd->bqk"}> : () -> ()
    %cst_9 = arith.constant dense<0.000000e+00> : vector<8x24x24xf32>
    %8 = tpu.matmul %5, %6, %cst_9 {dimension_numbers = #tpu.dot_dimension_numbers<[2], [2], [1], [1], [0, 0, 0, 1, 1, 1], [0], [0]>} : vector<8x24x128xbf16>, vector<8x24x128xbf16>, vector<8x24x24xf32> -> vector<8x24x24xf32>
    "tpu.trace_stop"() : () -> ()
    %c24_i32 = arith.constant 24 : i32
    %9 = arith.muli %arg2, %c24_i32 : i32
    %10 = tpu.iota {dimensions = array<i32: 2>} : vector<8x24x24xi32>
    %11 = vector.broadcast %9 : i32 to vector<8x24x24xi32>
    %12 = arith.addi %11, %10 : vector<8x24x24xi32>
    %c17_i32 = arith.constant 17 : i32
    %13 = vector.broadcast %c17_i32 : i32 to vector<8x24x24xi32>
    %14 = arith.cmpi slt, %12, %13 : vector<8x24x24xi32>
    %cst_10 = arith.constant -1.000000e+30 : f32
    %15 = vector.broadcast %cst_10 : f32 to vector<8x24x24xf32>
    %16 = arith.select %14, %8, %15 : vector<8x24x24xi1>, vector<8x24x24xf32>
    %c0_11 = arith.constant 0 : index
    %c0_12 = arith.constant 0 : index
    %c0_13 = arith.constant 0 : index
    %17 = vector.load %arg7[%c0_11, %c0_12, %c0_13] : memref<8x24x1xf32, #tpu.memory_space<vmem>>, vector<8x24x1xf32>
    %cst_14 = arith.constant dense<0xFF800000> : vector<8x24xf32>
    %18 = vector.multi_reduction <maximumf>, %16, %cst_14 [2] : vector<8x24x24xf32> to vector<8x24xf32>
    %19 = vector.shape_cast %18 : vector<8x24xf32> to vector<8x24x1xf32>
    %20 = arith.maximumf %17, %19 : vector<8x24x1xf32>
    %c0_15 = arith.constant 0 : index
    %c0_16 = arith.constant 0 : index
    %c0_17 = arith.constant 0 : index
    %21 = vector.load %arg7[%c0_15, %c0_16, %c0_17] : memref<8x24x1xf32, #tpu.memory_space<vmem>>, vector<8x24x1xf32>
    %22 = arith.subf %21, %20 : vector<8x24x1xf32>
    %23 = math.exp %22 : vector<8x24x1xf32>
    %24 = vector.broadcast %20 : vector<8x24x1xf32> to vector<8x24x24xf32>
    %25 = arith.subf %16, %24 : vector<8x24x24xf32>
    %26 = math.exp %25 : vector<8x24x24xf32>
    %c0_18 = arith.constant 0 : index
    %c0_19 = arith.constant 0 : index
    %c0_20 = arith.constant 0 : index
    %27 = vector.load %arg8[%c0_18, %c0_19, %c0_20] : memref<8x24x1xf32, #tpu.memory_space<vmem>>, vector<8x24x1xf32>
    %28 = arith.mulf %23, %27 : vector<8x24x1xf32>
    %cst_21 = arith.constant dense<0.000000e+00> : vector<8x24xf32>
    %29 = vector.multi_reduction <add>, %26, %cst_21 [2] : vector<8x24x24xf32> to vector<8x24xf32>
    %30 = vector.shape_cast %29 : vector<8x24xf32> to vector<8x24x1xf32>
    %31 = arith.addf %28, %30 : vector<8x24x1xf32>
    %c0_22 = arith.constant 0 : index
    %c0_23 = arith.constant 0 : index
    %c0_24 = arith.constant 0 : index
    %32 = vector.load %arg8[%c0_22, %c0_23, %c0_24] : memref<8x24x1xf32, #tpu.memory_space<vmem>>, vector<8x24x1xf32>
    tpu.vector_store %arg8[%c0_22, %c0_23, %c0_24], %31 {strides = array<i32>} : memref<8x24x1xf32, #tpu.memory_space<vmem>>, vector<8x24x1xf32>,
    %c0_25 = arith.constant 0 : index
    %c0_26 = arith.constant 0 : index
    %c0_27 = arith.constant 0 : index
    %33 = vector.load %arg9[%c0_25, %c0_26, %c0_27] : memref<8x24x128xf32, #tpu.memory_space<vmem>>, vector<8x24x128xf32>
    %34 = vector.broadcast %23 : vector<8x24x1xf32> to vector<8x24x128xf32>
    %35 = arith.mulf %34, %33 : vector<8x24x128xf32>
    %36 = arith.truncf %26 : vector<8x24x24xf32> to vector<8x24x24xbf16>
    "tpu.trace_start"() <{level = 10 : i32, message = "bqk,bkd->bqd"}> : () -> ()
    %cst_28 = arith.constant dense<0.000000e+00> : vector<8x24x128xf32>
    %37 = tpu.matmul %36, %7, %cst_28 {dimension_numbers = #tpu.dot_dimension_numbers<[2], [1], [1], [2], [0, 0, 0, 1, 1, 2], [0], [0]>} : vector<8x24x24xbf16>, vector<8x24x128xbf16>, vector<8x24x128xf32> -> vector<8x24x128xf32>
    "tpu.trace_stop"() : () -> ()
    %38 = arith.addf %35, %37 : vector<8x24x128xf32>
    %c0_29 = arith.constant 0 : index
    %c0_30 = arith.constant 0 : index
    %c0_31 = arith.constant 0 : index
    %39 = vector.load %arg9[%c0_29, %c0_30, %c0_31] : memref<8x24x128xf32, #tpu.memory_space<vmem>>, vector<8x24x128xf32>
    tpu.vector_store %arg9[%c0_29, %c0_30, %c0_31], %38 {strides = array<i32>} : memref<8x24x128xf32, #tpu.memory_space<vmem>>, vector<8x24x128xf32>,
    %c0_32 = arith.constant 0 : index
    %c0_33 = arith.constant 0 : index
    %c0_34 = arith.constant 0 : index
    %40 = vector.load %arg7[%c0_32, %c0_33, %c0_34] : memref<8x24x1xf32, #tpu.memory_space<vmem>>, vector<8x24x1xf32>
    tpu.vector_store %arg7[%c0_32, %c0_33, %c0_34], %20 {strides = array<i32>} : memref<8x24x1xf32, #tpu.memory_space<vmem>>, vector<8x24x1xf32>,
    %c0_i32_35 = arith.constant 0 : i32
    %41 = arith.cmpi eq, %arg2, %c0_i32_35 : i32
    %42 = arith.extui %41 : i1 to i32
    %c0_i32_36 = arith.constant 0 : i32
    %43 = arith.cmpi ne, %42, %c0_i32_36 : i32
    scf.if %43 {
      %c0_37 = arith.constant 0 : index
      %c0_38 = arith.constant 0 : index
      %c0_39 = arith.constant 0 : index
      %44 = vector.load %arg9[%c0_37, %c0_38, %c0_39] : memref<8x24x128xf32, #tpu.memory_space<vmem>>, vector<8x24x128xf32>
      %c0_40 = arith.constant 0 : index
      %c0_41 = arith.constant 0 : index
      %c0_42 = arith.constant 0 : index
      %45 = vector.load %arg8[%c0_40, %c0_41, %c0_42] : memref<8x24x1xf32, #tpu.memory_space<vmem>>, vector<8x24x1xf32>
      %46 = tpu.reciprocal %45 {approx = true} : vector<8x24x1xf32> -> vector<8x24x1xf32>
      %47 = vector.broadcast %46 : vector<8x24x1xf32> to vector<8x24x128xf32>
      %48 = arith.mulf %44, %47 : vector<8x24x128xf32>
      %49 = arith.truncf %48 : vector<8x24x128xf32> to vector<8x24x128xbf16>
      %c0_43 = arith.constant 0 : index
      %c0_44 = arith.constant 0 : index
      %c0_45 = arith.constant 0 : index
      %50 = vector.load %arg6[%c0_43, %c0_44, %c0_45] : memref<8x24x128xbf16, #tpu.memory_space<vmem>>, vector<8x24x128xbf16>
      tpu.vector_store %arg6[%c0_43, %c0_44, %c0_45], %49 {strides = array<i32>} : memref<8x24x128xbf16, #tpu.memory_space<vmem>>, vector<8x24x128xbf16>,
    } else {
    }
    return
  }
  func.func @transform_0(%arg0: i32, %arg1: i32, %arg2: i32) -> (i32, i32, i32) {
    %c0_i32 = arith.constant 0 : i32
    %c0_i32_0 = arith.constant 0 : i32
    return %arg0, %arg1, %c0_i32 : i32, i32, i32
  }
  func.func @transform_1(%arg0: i32, %arg1: i32, %arg2: i32) -> (i32, i32, i32) {
    %c0_i32 = arith.constant 0 : i32
    %c0_i32_0 = arith.constant 0 : i32
    return %arg0, %arg2, %c0_i32 : i32, i32, i32
  }
  func.func @transform_2(%arg0: i32, %arg1: i32, %arg2: i32) -> (i32, i32, i32) {
    %c0_i32 = arith.constant 0 : i32
    %c0_i32_0 = arith.constant 0 : i32
    return %arg0, %arg2, %c0_i32 : i32, i32, i32
  }
  func.func @transform_3(%arg0: i32, %arg1: i32, %arg2: i32) -> (i32, i32, i32) {
    %c0_i32 = arith.constant 0 : i32
    %c0_i32_0 = arith.constant 0 : i32
    return %arg0, %arg1, %c0_i32 : i32, i32, i32
  }
}

module attributes {stable_mosaic.version = 11 : i64} {
  func.func @_matmul_kernel(%arg0: i32, %arg1: i32, %arg2: i32, %arg3: memref<48x128xbf16, #tpu.memory_space<vmem>>, %arg4: memref<128x128xbf16, #tpu.memory_space<vmem>>, %arg5: memref<1x128xf32, #tpu.memory_space<vmem>>, %arg6: memref<1x128xf32, #tpu.memory_space<vmem>>, %arg7: memref<1x128xf32, #tpu.memory_space<vmem>>, %arg8: memref<48x128xbf16, #tpu.memory_space<vmem>>) attributes {dimension_semantics = [#tpu.dimension_semantics<parallel>, #tpu.dimension_semantics<parallel>, #tpu.dimension_semantics<arbitrary>], iteration_bounds = array<i64: 1, 1, 1>, scalar_prefetch = 0 : i64, scratch_operands = 0 : i64, tpu.core_type = #tpu.core_type<tc>, window_params = [{transform_indices = @transform_0, window_bounds = array<i64: 48, 128>}, {transform_indices = @transform_1, window_bounds = array<i64: 128, 128>}, {transform_indices = @transform_2, window_bounds = array<i64: 1, 128>}, {transform_indices = @transform_3, window_bounds = array<i64: 1, 128>}, {transform_indices = @transform_4, window_bounds = array<i64: 1, 128>}, {transform_indices = @transform_5, window_bounds = array<i64: 48, 128>}]} {
    %c0 = arith.constant 0 : index
    %c0_0 = arith.constant 0 : index
    %0 = vector.load %arg3[%c0, %c0_0] : memref<48x128xbf16, #tpu.memory_space<vmem>>, vector<48x128xbf16>
    %1 = arith.extf %0 : vector<48x128xbf16> to vector<48x128xf32>
    %cst = arith.constant dense<0.000000e+00> : vector<48xf32>
    %2 = vector.multi_reduction <add>, %1, %cst [1] : vector<48x128xf32> to vector<48xf32>
    %3 = vector.shape_cast %2 : vector<48xf32> to vector<48x1xf32>
    %cst_1 = arith.constant 3.125000e-02 : f32
    %4 = vector.broadcast %cst_1 : f32 to vector<48x1xf32>
    %5 = arith.mulf %3, %4 : vector<48x1xf32>
    %6 = vector.broadcast %5 : vector<48x1xf32> to vector<48x128xf32>
    %7 = arith.subf %1, %6 : vector<48x128xf32>
    %8 = tpu.iota {dimensions = array<i32: 1>} : vector<48x128xi32>
    %c32_i32 = arith.constant 32 : i32
    %9 = vector.broadcast %c32_i32 : i32 to vector<48x128xi32>
    %10 = arith.cmpi slt, %8, %9 : vector<48x128xi32>
    %cst_2 = arith.constant 0.000000e+00 : f32
    %11 = vector.broadcast %cst_2 : f32 to vector<48x128xf32>
    %12 = arith.select %10, %7, %11 : vector<48x128xi1>, vector<48x128xf32>
    %13 = arith.mulf %12, %12 : vector<48x128xf32>
    %cst_3 = arith.constant dense<0.000000e+00> : vector<48xf32>
    %14 = vector.multi_reduction <add>, %13, %cst_3 [1] : vector<48x128xf32> to vector<48xf32>
    %15 = vector.shape_cast %14 : vector<48xf32> to vector<48x1xf32>
    %cst_4 = arith.constant 3.125000e-02 : f32
    %16 = vector.broadcast %cst_4 : f32 to vector<48x1xf32>
    %17 = arith.mulf %15, %16 : vector<48x1xf32>
    %cst_5 = arith.constant 9.99999974E-6 : f32
    %18 = vector.broadcast %cst_5 : f32 to vector<48x1xf32>
    %19 = arith.addf %17, %18 : vector<48x1xf32>
    %20 = math.rsqrt %19 : vector<48x1xf32>
    %21 = vector.broadcast %20 : vector<48x1xf32> to vector<48x128xf32>
    %22 = arith.mulf %12, %21 : vector<48x128xf32>
    %c0_6 = arith.constant 0 : index
    %c0_7 = arith.constant 0 : index
    %23 = vector.load %arg6[%c0_6, %c0_7] : memref<1x128xf32, #tpu.memory_space<vmem>>, vector<1x128xf32>
    %24 = vector.broadcast %23 : vector<1x128xf32> to vector<48x128xf32>
    %25 = arith.mulf %22, %24 : vector<48x128xf32>
    %c0_8 = arith.constant 0 : index
    %c0_9 = arith.constant 0 : index
    %26 = vector.load %arg7[%c0_8, %c0_9] : memref<1x128xf32, #tpu.memory_space<vmem>>, vector<1x128xf32>
    %27 = vector.broadcast %26 : vector<1x128xf32> to vector<48x128xf32>
    %28 = arith.addf %25, %27 : vector<48x128xf32>
    %29 = arith.truncf %28 : vector<48x128xf32> to vector<48x128xbf16>
    %c0_10 = arith.constant 0 : index
    %c0_11 = arith.constant 0 : index
    %30 = vector.load %arg4[%c0_10, %c0_11] : memref<128x128xbf16, #tpu.memory_space<vmem>>, vector<128x128xbf16>
    %cst_12 = arith.constant dense<0.000000e+00> : vector<48x128xf32>
    %31 = tpu.matmul %29, %30, %cst_12 {dimension_numbers = #tpu.dot_dimension_numbers<[1], [0], [0], [1], [0, 0, 1, 1], [], []>} : vector<48x128xbf16>, vector<128x128xbf16>, vector<48x128xf32> -> vector<48x128xf32>
    %c0_13 = arith.constant 0 : index
    %c0_14 = arith.constant 0 : index
    %32 = vector.load %arg5[%c0_13, %c0_14] : memref<1x128xf32, #tpu.memory_space<vmem>>, vector<1x128xf32>
    %33 = vector.broadcast %32 : vector<1x128xf32> to vector<48x128xf32>
    %34 = arith.addf %31, %33 : vector<48x128xf32>
    %cst_15 = arith.constant 5.000000e-01 : f32
    %35 = vector.broadcast %cst_15 : f32 to vector<48x128xf32>
    %36 = arith.mulf %35, %34 : vector<48x128xf32>
    %cst_16 = arith.constant 0.707106769 : f32
    %37 = vector.broadcast %cst_16 : f32 to vector<48x128xf32>
    %38 = arith.mulf %34, %37 : vector<48x128xf32>
    %39 = math.absf %38 : vector<48x128xf32>
    %cst_17 = arith.constant 0.327591091 : f32
    %40 = vector.broadcast %cst_17 : f32 to vector<48x128xf32>
    %41 = arith.mulf %40, %39 : vector<48x128xf32>
    %cst_18 = arith.constant 1.000000e+00 : f32
    %42 = vector.broadcast %cst_18 : f32 to vector<48x128xf32>
    %43 = arith.addf %42, %41 : vector<48x128xf32>
    %cst_19 = arith.constant 1.000000e+00 : f32
    %44 = vector.broadcast %cst_19 : f32 to vector<48x128xf32>
    %45 = arith.divf %44, %43 : vector<48x128xf32>
    %cst_20 = arith.constant 1.06140542 : f32
    %46 = vector.broadcast %cst_20 : f32 to vector<48x128xf32>
    %47 = arith.mulf %46, %45 : vector<48x128xf32>
    %cst_21 = arith.constant -1.45315206 : f32
    %48 = vector.broadcast %cst_21 : f32 to vector<48x128xf32>
    %49 = arith.addf %47, %48 : vector<48x128xf32>
    %50 = arith.mulf %49, %45 : vector<48x128xf32>
    %cst_22 = arith.constant 1.42141378 : f32
    %51 = vector.broadcast %cst_22 : f32 to vector<48x128xf32>
    %52 = arith.addf %50, %51 : vector<48x128xf32>
    %53 = arith.mulf %52, %45 : vector<48x128xf32>
    %cst_23 = arith.constant -0.284496725 : f32
    %54 = vector.broadcast %cst_23 : f32 to vector<48x128xf32>
    %55 = arith.addf %53, %54 : vector<48x128xf32>
    %56 = arith.mulf %55, %45 : vector<48x128xf32>
    %cst_24 = arith.constant 0.254829586 : f32
    %57 = vector.broadcast %cst_24 : f32 to vector<48x128xf32>
    %58 = arith.addf %56, %57 : vector<48x128xf32>
    %59 = arith.mulf %58, %45 : vector<48x128xf32>
    %cst_25 = arith.constant 0.000000e+00 : f32
    %60 = vector.broadcast %cst_25 : f32 to vector<48x128xf32>
    %61 = arith.subf %60, %39 : vector<48x128xf32>
    %62 = arith.mulf %61, %39 : vector<48x128xf32>
    %63 = math.exp %62 : vector<48x128xf32>
    %64 = arith.mulf %59, %63 : vector<48x128xf32>
    %cst_26 = arith.constant 1.000000e+00 : f32
    %65 = vector.broadcast %cst_26 : f32 to vector<48x128xf32>
    %66 = arith.subf %65, %64 : vector<48x128xf32>
    %cst_27 = arith.constant 0.000000e+00 : f32
    %67 = vector.broadcast %cst_27 : f32 to vector<48x128xf32>
    %68 = arith.cmpf olt, %38, %67 : vector<48x128xf32>
    %cst_28 = arith.constant 0.000000e+00 : f32
    %69 = vector.broadcast %cst_28 : f32 to vector<48x128xf32>
    %70 = arith.subf %69, %66 : vector<48x128xf32>
    %71 = arith.select %68, %70, %66 : vector<48x128xi1>, vector<48x128xf32>
    %cst_29 = arith.constant 1.000000e+00 : f32
    %72 = vector.broadcast %cst_29 : f32 to vector<48x128xf32>
    %73 = arith.addf %72, %71 : vector<48x128xf32>
    %74 = arith.mulf %36, %73 : vector<48x128xf32>
    %75 = arith.truncf %74 : vector<48x128xf32> to vector<48x128xbf16>
    %c0_30 = arith.constant 0 : index
    %c0_31 = arith.constant 0 : index
    %76 = vector.load %arg8[%c0_30, %c0_31] : memref<48x128xbf16, #tpu.memory_space<vmem>>, vector<48x128xbf16>
    tpu.vector_store %arg8[%c0_30, %c0_31], %75 {strides = array<i32>} : memref<48x128xbf16, #tpu.memory_space<vmem>>, vector<48x128xbf16>,
    return
  }
  func.func @transform_0(%arg0: i32, %arg1: i32, %arg2: i32) -> (i32, i32) {
    %c0_i32 = arith.constant 0 : i32
    return %arg0, %arg2 : i32, i32
  }
  func.func @transform_1(%arg0: i32, %arg1: i32, %arg2: i32) -> (i32, i32) {
    %c0_i32 = arith.constant 0 : i32
    return %arg2, %arg1 : i32, i32
  }
  func.func @transform_2(%arg0: i32, %arg1: i32, %arg2: i32) -> (i32, i32) {
    %c0_i32 = arith.constant 0 : i32
    %c0_i32_0 = arith.constant 0 : i32
    return %c0_i32, %arg1 : i32, i32
  }
  func.func @transform_3(%arg0: i32, %arg1: i32, %arg2: i32) -> (i32, i32) {
    %c0_i32 = arith.constant 0 : i32
    %c0_i32_0 = arith.constant 0 : i32
    return %c0_i32, %arg2 : i32, i32
  }
  func.func @transform_4(%arg0: i32, %arg1: i32, %arg2: i32) -> (i32, i32) {
    %c0_i32 = arith.constant 0 : i32
    %c0_i32_0 = arith.constant 0 : i32
    return %c0_i32, %arg2 : i32, i32
  }
  func.func @transform_5(%arg0: i32, %arg1: i32, %arg2: i32) -> (i32, i32) {
    %c0_i32 = arith.constant 0 : i32
    return %arg0, %arg1 : i32, i32
  }
}

module attributes {stable_mosaic.version = 11 : i64} {
  func.func @_matmul_kernel(%arg0: i32, %arg1: i32, %arg2: i32, %arg3: memref<48x128xbf16, #tpu.memory_space<vmem>>, %arg4: memref<128x128xbf16, #tpu.memory_space<vmem>>, %arg5: memref<1x128xf32, #tpu.memory_space<vmem>>, %arg6: memref<48x128xbf16, #tpu.memory_space<vmem>>, %arg7: memref<48x128xbf16, #tpu.memory_space<vmem>>) attributes {dimension_semantics = [#tpu.dimension_semantics<parallel>, #tpu.dimension_semantics<parallel>, #tpu.dimension_semantics<arbitrary>], iteration_bounds = array<i64: 1, 1, 1>, scalar_prefetch = 0 : i64, scratch_operands = 0 : i64, tpu.core_type = #tpu.core_type<tc>, window_params = [{transform_indices = @transform_0, window_bounds = array<i64: 48, 128>}, {transform_indices = @transform_1, window_bounds = array<i64: 128, 128>}, {transform_indices = @transform_2, window_bounds = array<i64: 1, 128>}, {transform_indices = @transform_3, window_bounds = array<i64: 48, 128>}, {transform_indices = @transform_4, window_bounds = array<i64: 48, 128>}]} {
    %c0 = arith.constant 0 : index
    %c0_0 = arith.constant 0 : index
    %0 = vector.load %arg3[%c0, %c0_0] : memref<48x128xbf16, #tpu.memory_space<vmem>>, vector<48x128xbf16>
    %c0_1 = arith.constant 0 : index
    %c0_2 = arith.constant 0 : index
    %1 = vector.load %arg4[%c0_1, %c0_2] : memref<128x128xbf16, #tpu.memory_space<vmem>>, vector<128x128xbf16>
    %cst = arith.constant dense<0.000000e+00> : vector<48x128xf32>
    %2 = tpu.matmul %0, %1, %cst {dimension_numbers = #tpu.dot_dimension_numbers<[1], [0], [0], [1], [0, 0, 1, 1], [], []>} : vector<48x128xbf16>, vector<128x128xbf16>, vector<48x128xf32> -> vector<48x128xf32>
    %c0_3 = arith.constant 0 : index
    %c0_4 = arith.constant 0 : index
    %3 = vector.load %arg5[%c0_3, %c0_4] : memref<1x128xf32, #tpu.memory_space<vmem>>, vector<1x128xf32>
    %4 = vector.broadcast %3 : vector<1x128xf32> to vector<48x128xf32>
    %5 = arith.addf %2, %4 : vector<48x128xf32>
    %c0_5 = arith.constant 0 : index
    %c0_6 = arith.constant 0 : index
    %6 = vector.load %arg6[%c0_5, %c0_6] : memref<48x128xbf16, #tpu.memory_space<vmem>>, vector<48x128xbf16>
    %7 = arith.extf %6 : vector<48x128xbf16> to vector<48x128xf32>
    %8 = arith.addf %5, %7 : vector<48x128xf32>
    %9 = arith.truncf %8 : vector<48x128xf32> to vector<48x128xbf16>
    %c0_7 = arith.constant 0 : index
    %c0_8 = arith.constant 0 : index
    %10 = vector.load %arg7[%c0_7, %c0_8] : memref<48x128xbf16, #tpu.memory_space<vmem>>, vector<48x128xbf16>
    tpu.vector_store %arg7[%c0_7, %c0_8], %9 {strides = array<i32>} : memref<48x128xbf16, #tpu.memory_space<vmem>>, vector<48x128xbf16>,
    return
  }
  func.func @transform_0(%arg0: i32, %arg1: i32, %arg2: i32) -> (i32, i32) {
    %c0_i32 = arith.constant 0 : i32
    return %arg0, %arg2 : i32, i32
  }
  func.func @transform_1(%arg0: i32, %arg1: i32, %arg2: i32) -> (i32, i32) {
    %c0_i32 = arith.constant 0 : i32
    return %arg2, %arg1 : i32, i32
  }
  func.func @transform_2(%arg0: i32, %arg1: i32, %arg2: i32) -> (i32, i32) {
    %c0_i32 = arith.constant 0 : i32
    %c0_i32_0 = arith.constant 0 : i32
    return %c0_i32, %arg1 : i32, i32
  }
  func.func @transform_3(%arg0: i32, %arg1: i32, %arg2: i32) -> (i32, i32) {
    %c0_i32 = arith.constant 0 : i32
    return %arg0, %arg1 : i32, i32
  }
  func.func @transform_4(%arg0: i32, %arg1: i32, %arg2: i32) -> (i32, i32) {
    %c0_i32 = arith.constant 0 : i32
    return %arg0, %arg1 : i32, i32
  }
}

module attributes {stable_mosaic.version = 11 : i64} {
  func.func @_matmul_kernel(%arg0: i32, %arg1: i32, %arg2: i32, %arg3: memref<48x128xbf16, #tpu.memory_space<vmem>>, %arg4: memref<128x128xbf16, #tpu.memory_space<vmem>>, %arg5: memref<1x128xf32, #tpu.memory_space<vmem>>, %arg6: memref<1x128xf32, #tpu.memory_space<vmem>>, %arg7: memref<1x128xf32, #tpu.memory_space<vmem>>, %arg8: memref<48x128xf32, #tpu.memory_space<vmem>>) attributes {dimension_semantics = [#tpu.dimension_semantics<parallel>, #tpu.dimension_semantics<parallel>, #tpu.dimension_semantics<arbitrary>], iteration_bounds = array<i64: 1, 1, 1>, scalar_prefetch = 0 : i64, scratch_operands = 0 : i64, tpu.core_type = #tpu.core_type<tc>, window_params = [{transform_indices = @transform_0, window_bounds = array<i64: 48, 128>}, {transform_indices = @transform_1, window_bounds = array<i64: 128, 128>}, {transform_indices = @transform_2, window_bounds = array<i64: 1, 128>}, {transform_indices = @transform_3, window_bounds = array<i64: 1, 128>}, {transform_indices = @transform_4, window_bounds = array<i64: 1, 128>}, {transform_indices = @transform_5, window_bounds = array<i64: 48, 128>}]} {
    %c0 = arith.constant 0 : index
    %c0_0 = arith.constant 0 : index
    %0 = vector.load %arg3[%c0, %c0_0] : memref<48x128xbf16, #tpu.memory_space<vmem>>, vector<48x128xbf16>
    %1 = arith.extf %0 : vector<48x128xbf16> to vector<48x128xf32>
    %cst = arith.constant dense<0.000000e+00> : vector<48xf32>
    %2 = vector.multi_reduction <add>, %1, %cst [1] : vector<48x128xf32> to vector<48xf32>
    %3 = vector.shape_cast %2 : vector<48xf32> to vector<48x1xf32>
    %cst_1 = arith.constant 3.125000e-02 : f32
    %4 = vector.broadcast %cst_1 : f32 to vector<48x1xf32>
    %5 = arith.mulf %3, %4 : vector<48x1xf32>
    %6 = vector.broadcast %5 : vector<48x1xf32> to vector<48x128xf32>
    %7 = arith.subf %1, %6 : vector<48x128xf32>
    %8 = tpu.iota {dimensions = array<i32: 1>} : vector<48x128xi32>
    %c32_i32 = arith.constant 32 : i32
    %9 = vector.broadcast %c32_i32 : i32 to vector<48x128xi32>
    %10 = arith.cmpi slt, %8, %9 : vector<48x128xi32>
    %cst_2 = arith.constant 0.000000e+00 : f32
    %11 = vector.broadcast %cst_2 : f32 to vector<48x128xf32>
    %12 = arith.select %10, %7, %11 : vector<48x128xi1>, vector<48x128xf32>
    %13 = arith.mulf %12, %12 : vector<48x128xf32>
    %cst_3 = arith.constant dense<0.000000e+00> : vector<48xf32>
    %14 = vector.multi_reduction <add>, %13, %cst_3 [1] : vector<48x128xf32> to vector<48xf32>
    %15 = vector.shape_cast %14 : vector<48xf32> to vector<48x1xf32>
    %cst_4 = arith.constant 3.125000e-02 : f32
    %16 = vector.broadcast %cst_4 : f32 to vector<48x1xf32>
    %17 = arith.mulf %15, %16 : vector<48x1xf32>
    %cst_5 = arith.constant 9.99999974E-6 : f32
    %18 = vector.broadcast %cst_5 : f32 to vector<48x1xf32>
    %19 = arith.addf %17, %18 : vector<48x1xf32>
    %20 = math.rsqrt %19 : vector<48x1xf32>
    %21 = vector.broadcast %20 : vector<48x1xf32> to vector<48x128xf32>
    %22 = arith.mulf %12, %21 : vector<48x128xf32>
    %c0_6 = arith.constant 0 : index
    %c0_7 = arith.constant 0 : index
    %23 = vector.load %arg6[%c0_6, %c0_7] : memref<1x128xf32, #tpu.memory_space<vmem>>, vector<1x128xf32>
    %24 = vector.broadcast %23 : vector<1x128xf32> to vector<48x128xf32>
    %25 = arith.mulf %22, %24 : vector<48x128xf32>
    %c0_8 = arith.constant 0 : index
    %c0_9 = arith.constant 0 : index
    %26 = vector.load %arg7[%c0_8, %c0_9] : memref<1x128xf32, #tpu.memory_space<vmem>>, vector<1x128xf32>
    %27 = vector.broadcast %26 : vector<1x128xf32> to vector<48x128xf32>
    %28 = arith.addf %25, %27 : vector<48x128xf32>
    %29 = arith.truncf %28 : vector<48x128xf32> to vector<48x128xbf16>
    %c0_10 = arith.constant 0 : index
    %c0_11 = arith.constant 0 : index
    %30 = vector.load %arg4[%c0_10, %c0_11] : memref<128x128xbf16, #tpu.memory_space<vmem>>, vector<128x128xbf16>
    %cst_12 = arith.constant dense<0.000000e+00> : vector<48x128xf32>
    %31 = tpu.matmul %29, %30, %cst_12 {dimension_numbers = #tpu.dot_dimension_numbers<[1], [0], [0], [1], [0, 0, 1, 1], [], []>} : vector<48x128xbf16>, vector<128x128xbf16>, vector<48x128xf32> -> vector<48x128xf32>
    %c0_13 = arith.constant 0 : index
    %c0_14 = arith.constant 0 : index
    %32 = vector.load %arg5[%c0_13, %c0_14] : memref<1x128xf32, #tpu.memory_space<vmem>>, vector<1x128xf32>
    %33 = vector.broadcast %32 : vector<1x128xf32> to vector<48x128xf32>
    %34 = arith.addf %31, %33 : vector<48x128xf32>
    %c0_15 = arith.constant 0 : index
    %c0_16 = arith.constant 0 : index
    %35 = vector.load %arg8[%c0_15, %c0_16] : memref<48x128xf32, #tpu.memory_space<vmem>>, vector<48x128xf32>
    tpu.vector_store %arg8[%c0_15, %c0_16], %34 {strides = array<i32>} : memref<48x128xf32, #tpu.memory_space<vmem>>, vector<48x128xf32>,
    return
  }
  func.func @transform_0(%arg0: i32, %arg1: i32, %arg2: i32) -> (i32, i32) {
    %c0_i32 = arith.constant 0 : i32
    return %arg0, %arg2 : i32, i32
  }
  func.func @transform_1(%arg0: i32, %arg1: i32, %arg2: i32) -> (i32, i32) {
    %c0_i32 = arith.constant 0 : i32
    return %arg2, %arg1 : i32, i32
  }
  func.func @transform_2(%arg0: i32, %arg1: i32, %arg2: i32) -> (i32, i32) {
    %c0_i32 = arith.constant 0 : i32
    %c0_i32_0 = arith.constant 0 : i32
    return %c0_i32, %arg1 : i32, i32
  }
  func.func @transform_3(%arg0: i32, %arg1: i32, %arg2: i32) -> (i32, i32) {
    %c0_i32 = arith.constant 0 : i32
    %c0_i32_0 = arith.constant 0 : i32
    return %c0_i32, %arg2 : i32, i32
  }
  func.func @transform_4(%arg0: i32, %arg1: i32, %arg2: i32) -> (i32, i32) {
    %c0_i32 = arith.constant 0 : i32
    %c0_i32_0 = arith.constant 0 : i32
    return %c0_i32, %arg2 : i32, i32
  }
  func.func @transform_5(%arg0: i32, %arg1: i32, %arg2: i32) -> (i32, i32) {
    %c0_i32 = arith.constant 0 : i32
    return %arg0, %arg1 : i32, i32
  }
}

</mosaic_0001>

<bundles_post_ra>
// kernel: mae_forward.18
= control target key start
LH: loop header
LB: loop body
LE: loop exit
PB: predicated region body
PF: predicated region fallthrough
CT: control target
= control target key end

     0   :  { %s339_s1 = inlined_call_operand.vmem [shape: bf16[128,128], index: 1, kind: input, shape index: {}]   ;;  %s340_s0 = inlined_call_operand.vmem [shape: bf16[32,128], index: 0, kind: input, shape index: {}]   ;;  %s341_s2 = inlined_call_operand.vmem [shape: f32[1,128], index: 2, kind: input, shape index: {}]   ;;  %s342_s3 = inlined_call_operand.vmem [shape: bf16[32,128], index: 3, kind: input, shape index: {}]   ;;  %s343_s4 = inlined_call_operand.vmem [shape: bf16[32,128], index: 4, kind: output, shape index: {}]  }
   0x1   :  { %v259_v0 = vld [vmem:[%s339_s1] sm:$0xff]   ;;  %v260_v1 = vld [vmem:[%s339_s1 + $0x8] sm:$0xff]   ;;  %v261_v2 = vld [vmem:[%s339_s1 + $0x10] sm:$0xff]  }
   0x2   :  { %239 = vmatprep.subr.bf16.mxu0 %v259_v0  ;;  %v262_v3 = vld [vmem:[%s339_s1 + $0x18] sm:$0xff]   ;;  %v267_v4 = vld [vmem:[%s340_s0] sm:$0xff]   ;;  %v264_v6 = vld [vmem:[%s339_s1 + $0x28] sm:$0xff]  }
   0x3   :  { %240 = vmatpush3.bf16.msra.mxu0 %v259_v0  ;;  %255 = vmatprep.mubr.bf16.mxu0 %v267_v4  ;;  %v263_v5 = vld [vmem:[%s339_s1 + $0x20] sm:$0xff]   ;;  %v265_v7 = vld [vmem:[%s339_s1 + $0x30] sm:$0xff]   ;;  %v266_v8 = vld [vmem:[%s339_s1 + $0x38] sm:$0xff]  }
   0x4   :  { %241 = vmatprep.subr.bf16.mxu0 %v260_v1  ;;  %v268_v9 = vld [vmem:[%s340_s0 + $0x8] sm:$0xff]   ;;  %v190_v10 = vld [vmem:[%s341_s2] ss:$0 sm:$0xff] }
   0x5   :  { %v227_v11 = vld [vmem:[%s342_s3 + $0x8] sm:$0xff]   ;;  %v210_v12 = vld [vmem:[%s342_s3] sm:$0xff]  }
   0x6   :  { %v215_v15 = vunpack.c.l.bf16 %v227_v11  ;;  %v216_v17 = vunpack.c.h.bf16 %v227_v11  ;;  %v211_v19 = vunpack.c.l.bf16 %v210_v12  ;;  %v212_v21 = vunpack.c.h.bf16 %v210_v12 }
   0x7   :  { %242 = vmatpush3.bf16.msra.mxu0 %v260_v1 }
   0x8   :  { %243 = vmatprep.subr.bf16.mxu0 %v261_v2 }
   0xb   :  { %244 = vmatpush3.bf16.msra.mxu0 %v261_v2 }
   0xc   :  { %245 = vmatprep.subr.bf16.mxu0 %v262_v3 }
   0xf   :  { %246 = vmatpush3.bf16.msra.mxu0 %v262_v3 }
  0x10   :  { %247 = vmatprep.subr.bf16.mxu0 %v263_v5 }
  0x13   :  { %248 = vmatpush3.bf16.msra.mxu0 %v263_v5 }
  0x14   :  { %249 = vmatprep.subr.bf16.mxu0 %v264_v6 }
  0x17   :  { %250 = vmatpush3.bf16.msra.mxu0 %v264_v6 }
  0x18   :  { %251 = vmatprep.subr.bf16.mxu0 %v265_v7 }
  0x1b   :  { %252 = vmatpush3.bf16.msra.mxu0 %v265_v7 }
  0x1c   :  { %253 = vmatprep.subr.bf16.mxu0 %v266_v8 }
  0x1f   :  { %254 = vmatpush3.bf16.msra.mxu0 %v266_v8 }
  0x22   :  { %256 = vmatmul.mubr.bf16.vlgmr.msra.gmra.mrb[0].mxu0 %v268_v9 }
  0xf5   :  { %v257_v13 = vpop.f32.mrb[0].mxu0 }
  0xf6   :  { %v148_v14 = vadd.f32 %v257_v13, %v190_v10  ;;  %v139_v16 = vpop.f32.mrb[1].mxu0 }
  0xf7   :  { %v140_v18 = vadd.f32 %v190_v10, %v139_v16  ;;  %v258_v20 = vpop.f32.mrb[2].mxu0 }
  0xf8   :  { %v151_v22 = vadd.f32 %v258_v20, %v190_v10  ;;  %v142_v23 = vpop.f32.mrb[3].mxu0  ;;  %v164_v25 = vadd.f32 %v215_v15, %v148_v14 }
  0xf9   :  { %v143_v24 = vadd.f32 %v190_v10, %v142_v23  ;;  %v162_v27 = vadd.f32 %v211_v19, %v140_v18 }
  0xfa   :  { %v165_v26 = vadd.f32 %v216_v17, %v151_v22 }
  0xfb   :  { %v163_v28 = vadd.f32 %v212_v21, %v143_v24 }
  0xfc   :  { %v225_v29 = vpack.c.bf16 %v165_v26, %v164_v25 }
  0xfd   :  { %v220_v30 = vpack.c.bf16 %v163_v28, %v162_v27 }
  0xfe   :  { %228 = vst [vmem:[%s343_s4 + $0x8] sm:$0xff] %v225_v29  }
  0xff   :  { %221 = vst [vmem:[%s343_s4] sm:$0xff] %v220_v30  }

// kernel: mae_forward.19
= control target key start
LH: loop header
LB: loop body
LE: loop exit
PB: predicated region body
PF: predicated region fallthrough
CT: control target
= control target key end

     0   :  { %v264_v3 = vmov 0.0   ;;  %v33_v5 = vlaneseq  ;;  %vm265_vm1 = vmmov 0   ;;  %s335_s0 = inlined_call_operand.vmem [shape: bf16[16,128], index: 0, kind: input, shape index: {}]   ;;  %s336_s1 = inlined_call_operand.vmem [shape: bf16[128,128], index: 1, kind: input, shape index: {}]   ;;  %s337_s3 = inlined_call_operand.vmem [shape: f32[1,128], index: 3, kind: input, shape index: {}]   ;;  %s338_s4 = inlined_call_operand.vmem [shape: f32[1,128], index: 4, kind: input, shape index: {}]   ;;  %s339_s2 = inlined_call_operand.vmem [shape: f32[1,128], index: 2, kind: input, shape index: {}]   ;;  %s340_s5 = inlined_call_operand.vmem [shape: bf16[16,128], index: 5, kind: output, shape index: {}]  }
   0x1   :  { %v213_v0 = vld [vmem:[%s335_s0] sm:$0xff]   ;;  %230 = vmatprep.subr.bf16.mxu0 %v264_v3  ;;  %v253_v17 = vld [vmem:[%s336_s1 + $0x8] sm:$0xff]   ;;  %v254_v18 = vld [vmem:[%s336_s1 + $0x10] sm:$0xff]   ;;  %246 = vmatprep.mubr.msk.bf16.mxu0 %vm265_vm1, %v264_v3 }
   0x2   :  { %v214_v1 = vunpack.c.l.bf16 %v213_v0  ;;  %v215_v2 = vunpack.c.h.bf16 %v213_v0  ;;  %v252_v4 = vld [vmem:[%s336_s1] sm:$0xff]   ;;  %v34_v6 = vand.u32 127, %v33_v5  ;;  %v255_v19 = vld [vmem:[%s336_s1 + $0x18] sm:$0xff]   ;;  %v257_v21 = vld [vmem:[%s336_s1 + $0x28] sm:$0xff]  }
   0x3   :  { %231 = vmatpush3.bf16.msra.mxu0 %v252_v4  ;;  %v256_v20 = vld [vmem:[%s336_s1 + $0x20] sm:$0xff]   ;;  %v258_v22 = vld [vmem:[%s336_s1 + $0x30] sm:$0xff]   ;;  %v259_v23 = vld [vmem:[%s336_s1 + $0x38] sm:$0xff]  }
   0x4   :  { %25 = vadd.xlane.f32.xlu0 %v214_v1  ;;  %232 = vmatprep.subr.bf16.mxu0 %v264_v3  ;;  %vm35_vm0 = vcmp.lt.s32.totalorder %v34_v6, 32  ;;  %v197_v32 = vld [vmem:[%s337_s3] ss:$0 sm:$0xff] }
   0x5   :  { %v198_v36 = vld [vmem:[%s338_s4] ss:$0 sm:$0xff] }
   0x6   :  { %v199_v41 = vld [vmem:[%s339_s2] ss:$0 sm:$0xff] }
   0x7   :  { %233 = vmatpush3.bf16.msra.mxu0 %v253_v17 }
   0x8   :  { %27 = vadd.xlane.f32.xlu0 %v215_v2  ;;  %234 = vmatprep.subr.bf16.mxu0 %v264_v3 }
   0xb   :  { %235 = vmatpush3.bf16.msra.mxu0 %v254_v18 }
   0xc   :  { %236 = vmatprep.subr.bf16.mxu0 %v264_v3 }
   0xf   :  { %237 = vmatpush3.bf16.msra.mxu0 %v255_v19 }
  0x10   :  { %238 = vmatprep.subr.bf16.mxu0 %v264_v3 }
  0x13   :  { %239 = vmatpush3.bf16.msra.mxu0 %v256_v20 }
  0x14   :  { %240 = vmatprep.subr.bf16.mxu0 %v264_v3 }
  0x17   :  { %241 = vmatpush3.bf16.msra.mxu0 %v257_v21 }
  0x18   :  { %242 = vmatprep.subr.bf16.mxu0 %v264_v3 }
  0x1b   :  { %243 = vmatpush3.bf16.msra.mxu0 %v258_v22 }
  0x1c   :  { %244 = vmatprep.subr.bf16.mxu0 %v264_v3 }
  0x1f   :  { %245 = vmatpush3.bf16.msra.mxu0 %v259_v23 }
  0x91   :  { %v26_v7 = vpop.xlane.xlu0 %25 }
  0x92   :  { %v29_v8 = vmul.f32 0.03125, %v26_v7 }
  0x94   :  { %v31_v9 = vsub.f32 %v214_v1, %v29_v8 }
  0x95   :  { %v28_v10 = vpop.xlane.xlu0 %27 }
  0x96   :  { %v30_v11 = vmul.f32 0.03125, %v28_v10  ;;  %v36_v12 = vsel %vm35_vm0, %v31_v9, 0.0 }
  0x97   :  { %v38_v13 = vmul.f32 %v36_v12, %v36_v12 }
  0x98   :  { %v32_v14 = vsub.f32 %v215_v2, %v30_v11 }
  0x99   :  { %40 = vadd.xlane.f32.xlu1 %v38_v13 }
  0x9a   :  { %v37_v15 = vsel %vm35_vm0, %v32_v14, 0.0 }
  0x9b   :  { %v39_v16 = vmul.f32 %v37_v15, %v37_v15 }
  0x9d   :  { %42 = vadd.xlane.f32.xlu1 %v39_v16 }
 0x126   :  { %v41_v24 = vpop.xlane.xlu1 %40 }
 0x127   :  { %v44_v25 = vmul.f32 0.03125, %v41_v24 }
 0x129   :  { %v46_v26 = vadd.f32 1e-05, %v44_v25 }
 0x12a   :  { %v43_v27 = vpop.xlane.xlu1 %42 }
 0x12b   :  { %260 = vrsqrt.f32 %v46_v26  ;;  %v45_v28 = vmul.f32 0.03125, %v43_v27 }
 0x12d   :  { %v47_v29 = vadd.f32 1e-05, %v45_v28 }
 0x12f   :  { %262 = vrsqrt.f32 %v47_v29 }
 0x135   :  { %v261_v30 = vpop.eup %260 }
 0x136   :  { %v50_v31 = vmul.f32 %v261_v30, %v36_v12 }
 0x138   :  { %v59_v35 = vmul.f32 %v197_v32, %v50_v31 }
 0x139   :  { %v263_v33 = vpop.eup %262 }
 0x13a   :  { %v51_v34 = vmul.f32 %v263_v33, %v37_v15  ;;  %v68_v38 = vadd.f32 %v198_v36, %v59_v35 }
 0x13c   :  { %v60_v37 = vmul.f32 %v197_v32, %v51_v34 }
 0x13e   :  { %v69_v39 = vadd.f32 %v198_v36, %v60_v37 }
 0x140   :  { %v70_v40 = vpack.c.bf16 %v69_v39, %v68_v38 }
 0x142   :  { %247 = vmatmul.mubr.bf16.vlgmr.msra.gmra.mrb[0].mxu0 %v70_v40 }
 0x215   :  { %v176_v42 = vpop.f32.mrb[0].mxu0 }
 0x216   :  { %v248_v43 = vpop.f32.mrb[1].mxu0  ;;  %v177_v45 = vadd.f32 %v199_v41, %v176_v42 }
 0x217   :  { %v179_v44 = vpop.f32.mrb[2].mxu0 }
 0x218   :  { %v180_v46 = vadd.f32 %v199_v41, %v179_v44  ;;  %v249_v47 = vpop.f32.mrb[3].mxu0 }
 0x21a   :  { %v219_v48 = vpack.c.bf16 %v180_v46, %v177_v45 }
 0x21c   :  { %220 = vst [vmem:[%s340_s5] sm:$0xff] %v219_v48  }

// kernel: mae_forward.21
= control target key start
LH: loop header
LB: loop body
LE: loop exit
PB: predicated region body
PF: predicated region fallthrough
CT: control target
= control target key end

     0   :  { %v221_v0 = vmov 0.0   ;;  %vm222_vm0 = vmmov 0   ;;  %s284_s1 = inlined_call_operand.vmem [shape: bf16[128,128], index: 1, kind: input, shape index: {}]   ;;  %s285_s0 = inlined_call_operand.vmem [shape: bf16[16,128], index: 0, kind: input, shape index: {}]   ;;  %s286_s2 = inlined_call_operand.vmem [shape: f32[1,128], index: 2, kind: input, shape index: {}]   ;;  %s287_s3 = inlined_call_operand.vmem [shape: bf16[16,128], index: 3, kind: input, shape index: {}]   ;;  %s288_s4 = inlined_call_operand.vmem [shape: bf16[16,128], index: 4, kind: output, shape index: {}]  }
   0x1   :  { %190 = vmatprep.subr.bf16.mxu0 %v221_v0  ;;  %v212_v1 = vld [vmem:[%s284_s1] sm:$0xff]   ;;  %206 = vmatprep.mubr.msk.bf16.mxu0 %vm222_vm0, %v221_v0  ;;  %v213_v2 = vld [vmem:[%s284_s1 + $0x8] sm:$0xff]   ;;  %v214_v3 = vld [vmem:[%s284_s1 + $0x10] sm:$0xff]  }
   0x2   :  { %191 = vmatpush3.bf16.msra.mxu0 %v212_v1  ;;  %v215_v4 = vld [vmem:[%s284_s1 + $0x18] sm:$0xff]   ;;  %v216_v5 = vld [vmem:[%s284_s1 + $0x20] sm:$0xff]   ;;  %v217_v6 = vld [vmem:[%s284_s1 + $0x28] sm:$0xff]  }
   0x3   :  { %192 = vmatprep.subr.bf16.mxu0 %v221_v0  ;;  %v218_v7 = vld [vmem:[%s284_s1 + $0x30] sm:$0xff]   ;;  %v219_v8 = vld [vmem:[%s284_s1 + $0x38] sm:$0xff]   ;;  %v220_v9 = vld [vmem:[%s285_s0] sm:$0xff]  }
   0x4   :  { %v158_v10 = vld [vmem:[%s286_s2] ss:$0 sm:$0xff] }
   0x5   :  { %v173_v11 = vld [vmem:[%s287_s3] sm:$0xff]  }
   0x6   :  { %193 = vmatpush3.bf16.msra.mxu0 %v213_v2  ;;  %v174_v14 = vunpack.c.l.bf16 %v173_v11  ;;  %v175_v16 = vunpack.c.h.bf16 %v173_v11 }
   0x7   :  { %194 = vmatprep.subr.bf16.mxu0 %v221_v0 }
   0xa   :  { %195 = vmatpush3.bf16.msra.mxu0 %v214_v3 }
   0xb   :  { %196 = vmatprep.subr.bf16.mxu0 %v221_v0 }
   0xe   :  { %197 = vmatpush3.bf16.msra.mxu0 %v215_v4 }
   0xf   :  { %198 = vmatprep.subr.bf16.mxu0 %v221_v0 }
  0x12   :  { %199 = vmatpush3.bf16.msra.mxu0 %v216_v5 }
  0x13   :  { %200 = vmatprep.subr.bf16.mxu0 %v221_v0 }
  0x16   :  { %201 = vmatpush3.bf16.msra.mxu0 %v217_v6 }
  0x17   :  { %202 = vmatprep.subr.bf16.mxu0 %v221_v0 }
  0x1a   :  { %203 = vmatpush3.bf16.msra.mxu0 %v218_v7 }
  0x1b   :  { %204 = vmatprep.subr.bf16.mxu0 %v221_v0 }
  0x1e   :  { %205 = vmatpush3.bf16.msra.mxu0 %v219_v8 }
  0x21   :  { %207 = vmatmul.mubr.bf16.vlgmr.msra.gmra.mrb[0].mxu0 %v220_v9 }
  0xf4   :  { %v131_v12 = vpop.f32.mrb[0].mxu0 }
  0xf5   :  { %v132_v13 = vadd.f32 %v158_v10, %v131_v12  ;;  %v208_v15 = vpop.f32.mrb[1].mxu0 }
  0xf6   :  { %v134_v17 = vpop.f32.mrb[2].mxu0 }
  0xf7   :  { %v135_v18 = vadd.f32 %v158_v10, %v134_v17  ;;  %v209_v19 = vpop.f32.mrb[3].mxu0  ;;  %v142_v20 = vadd.f32 %v174_v14, %v132_v13 }
  0xf9   :  { %v143_v21 = vadd.f32 %v175_v16, %v135_v18 }
  0xfb   :  { %v179_v22 = vpack.c.bf16 %v143_v21, %v142_v20 }
  0xfd   :  { %180 = vst [vmem:[%s288_s4] sm:$0xff] %v179_v22  }

// kernel: mae_forward.20
= control target key start
LH: loop header
LB: loop body
LE: loop exit
PB: predicated region body
PF: predicated region fallthrough
CT: control target
= control target key end

     0   :  { %v1362_v0 = vmov 0.0   ;;  %vm1363_vm0 = vmmov 0   ;;  %vm20_vm1 = vcmask 7168   ;;  %v1364_v25 = vmov -inf   ;;  %s1735_s1 = inlined_call_operand.vmem [shape: bf16[8,8,128], index: 1, kind: input, shape index: {}]   ;;  %s1736_s0 = inlined_call_operand.vmem [shape: bf16[8,8,128], index: 0, kind: input, shape index: {}]   ;;  %s1737_s2 = inlined_call_operand.vmem [shape: bf16[8,8,128], index: 2, kind: input, shape index: {}]   ;;  %s1738_s3 = inlined_call_operand.vmem [shape: bf16[8,8,128], index: 3, kind: output, shape index: {}]  }
   0x1   :  { %1212 = vmatprep.subr.bf16.mxu0 %v1362_v0  ;;  %v61_v1 = vld [vmem:[%s1735_s1] sm:$0xf]  ;;  %1218 = vmatprep.subr.bf16.mxu1 %v1362_v0  ;;  %v62_v2 = vld [vmem:[%s1735_s1 + $0x4] sm:$0xf]  ;;  %v63_v7 = vld [vmem:[%s1735_s1 + $0x8] sm:$0xf]  ;;  %v398_v26 = vlaneseq }
   0x2   :  { %1213 = vmatpush3.bf16.xpose.msra.mxu0 %v61_v1  ;;  %1219 = vmatpush3.bf16.xpose.msra.mxu1 %v62_v2  ;;  %v45_v3 = vld [vmem:[%s1736_s0] sm:$0xf]  ;;  %v46_v4 = vld [vmem:[%s1736_s0 + $0x4] sm:$0xf]  ;;  %v64_v8 = vld [vmem:[%s1735_s1 + $0xc] sm:$0xf] }
   0x3   :  { %1214 = vmatprep.mubr.msk.bf16.mxu0 %vm1363_vm0, %v1362_v0  ;;  %1224 = vmatprep.subr.bf16.mxu0 %v1362_v0  ;;  %v53_v5 = vmul.bf16 1052065461, %v45_v3  ;;  %v54_v6 = vmul.bf16 1052065461, %v46_v4  ;;  %v47_v9 = vld [vmem:[%s1736_s0 + $0x8] sm:$0xf] }
   0x4   :  { %1220 = vmatprep.mubr.msk.bf16.mxu1 %vm1363_vm0, %v1362_v0  ;;  %1230 = vmatprep.subr.bf16.mxu1 %v1362_v0  ;;  %v48_v10 = vld [vmem:[%s1736_s0 + $0xc] sm:$0xf]  ;;  %v55_v11 = vmul.bf16 1052065461, %v47_v9  ;;  %v65_v13 = vld [vmem:[%s1735_s1 + $0x10] sm:$0xf] }
   0x5   :  { %v56_v12 = vmul.bf16 1052065461, %v48_v10  ;;  %v66_v14 = vld [vmem:[%s1735_s1 + $0x14] sm:$0xf]  ;;  %v49_v15 = vld [vmem:[%s1736_s0 + $0x10] sm:$0xf] }
   0x6   :  { %v50_v16 = vld [vmem:[%s1736_s0 + $0x14] sm:$0xf]  ;;  %v57_v17 = vmul.bf16 1052065461, %v49_v15  ;;  %v67_v19 = vld [vmem:[%s1735_s1 + $0x18] sm:$0xf] }
   0x7   :  { %v58_v18 = vmul.bf16 1052065461, %v50_v16  ;;  %v68_v20 = vld [vmem:[%s1735_s1 + $0x1c] sm:$0xf]  ;;  %v51_v21 = vld [vmem:[%s1736_s0 + $0x18] sm:$0xf] }
   0x8   :  { %v52_v22 = vld [vmem:[%s1736_s0 + $0x1c] sm:$0xf]  ;;  %v59_v23 = vmul.bf16 1052065461, %v51_v21  ;;  %21 = vst.msk [vmem:[#allocation2] sm:$0xff] %vm20_vm1, %v1364_v25  ;;  %22 = vst.msk [vmem:[#allocation2 + $0x8] sm:$0xff] %vm20_vm1, %v1364_v25 }
   0x9   :  { %1215 = vmatmul.mubr.bf16.vlgmr.msra.gmra.mrb[0].mxu0 %v53_v5  ;;  %1221 = vmatmul.mubr.bf16.vlgmr.msra.gmra.mrb[0].mxu1 %v54_v6  ;;  %v60_v24 = vmul.bf16 1052065461, %v52_v22  ;;  %23 = vst.msk [vmem:[#allocation2 + $0x10] sm:$0xff] %vm20_vm1, %v1364_v25  ;;  %24 = vst.msk [vmem:[#allocation2 + $0x18] sm:$0xff] %vm20_vm1, %v1364_v25  ;;  %v399_v27 = vand.u32 127, %v398_v26  ;;  %vm419_vm3 = vcmask 64512  }
   0xa   :  { %1225 = vmatpush3.bf16.xpose.msra.mxu0 %v63_v7  ;;  %1231 = vmatpush3.bf16.xpose.msra.mxu1 %v64_v8  ;;  %25 = vst.msk [vmem:[#allocation2 + $0x20] sm:$0xff] %vm20_vm1, %v1364_v25  ;;  %26 = vst.msk [vmem:[#allocation2 + $0x28] sm:$0xff] %vm20_vm1, %v1364_v25  ;;  %v1365_v1 = vmov 0   ;;  %vm664_vm4 = vcmask 1043456  }
   0xb   :  { %1226 = vmatprep.mubr.msk.bf16.mxu0 %vm1363_vm0, %v1362_v0  ;;  %1236 = vmatprep.subr.bf16.mxu0 %v1362_v0  ;;  %27 = vst.msk [vmem:[#allocation2 + $0x30] sm:$0xff] %vm20_vm1, %v1364_v25  ;;  %28 = vst.msk [vmem:[#allocation2 + $0x38] sm:$0xff] %vm20_vm1, %v1364_v25  ;;  %vm402_vm2 = vcmp.lt.s32.totalorder %v399_v27, 5 }
   0xc   :  { %1232 = vmatprep.mubr.msk.bf16.mxu1 %vm1363_vm0, %v1362_v0  ;;  %1242 = vmatprep.subr.bf16.mxu1 %v1362_v0  ;;  %29 = vst.msk [vmem:[#allocation3] sm:$0xff] %vm20_vm1, %v1362_v0  ;;  %30 = vst.msk [vmem:[#allocation3 + $0x8] sm:$0xff] %vm20_vm1, %v1362_v0 }
   0xd   :  { %31 = vst.msk [vmem:[#allocation3 + $0x10] sm:$0xff] %vm20_vm1, %v1362_v0  ;;  %32 = vst.msk [vmem:[#allocation3 + $0x18] sm:$0xff] %vm20_vm1, %v1362_v0  ;;  %1312 = vset.pattern.permute.xlu0 %v1365_v1  ;;  %1313 = vset.pattern.permute.xlu1 %v1365_v1  ;;  %v75_v1 = vld [vmem:[%s1737_s2 + $0x18] sm:$0xf] }
   0xe   :  { %33 = vst.msk [vmem:[#allocation3 + $0x20] sm:$0xff] %vm20_vm1, %v1362_v0  ;;  %34 = vst.msk [vmem:[#allocation3 + $0x28] sm:$0xff] %vm20_vm1, %v1362_v0 }
   0xf   :  { %35 = vst.msk [vmem:[#allocation3 + $0x30] sm:$0xff] %vm20_vm1, %v1362_v0  ;;  %36 = vst.msk [vmem:[#allocation3 + $0x38] sm:$0xff] %vm20_vm1, %v1362_v0 }
  0x10   :  { %v1543_v21 = vld [vmem:[#allocation2 + $0x10] sm:$0xff]  ;;  %v1553_v25 = vld [vmem:[#allocation2 + $0x18] sm:$0xff] }
  0x11   :  { %1227 = vmatmul.mubr.bf16.vlgmr.msra.gmra.mrb[4].mxu0 %v55_v11  ;;  %1233 = vmatmul.mubr.bf16.vlgmr.msra.gmra.mrb[4].mxu1 %v56_v12 }
  0x12   :  { %1237 = vmatpush3.bf16.xpose.msra.mxu0 %v65_v13  ;;  %1243 = vmatpush3.bf16.xpose.msra.mxu1 %v66_v14  ;;  %v1528_v14 = vld [vmem:[#allocation2] sm:$0xff] }
  0x13   :  { %1238 = vmatprep.mubr.msk.bf16.mxu0 %vm1363_vm0, %v1362_v0  ;;  %1248 = vmatprep.subr.bf16.mxu0 %v1362_v0 }
  0x14   :  { %1244 = vmatprep.mubr.msk.bf16.mxu1 %vm1363_vm0, %v1362_v0  ;;  %1254 = vmatprep.subr.bf16.mxu1 %v1362_v0 }
  0x19   :  { %1239 = vmatmul.mubr.bf16.vlgmr.msra.gmra.mrb[8].mxu0 %v57_v17  ;;  %1245 = vmatmul.mubr.bf16.vlgmr.msra.gmra.mrb[8].mxu1 %v58_v18  ;;  %v1533_v17 = vld [vmem:[#allocation2 + $0x8] sm:$0xff] }
  0x1a   :  { %1249 = vmatpush3.bf16.xpose.msra.mxu0 %v67_v19  ;;  %1255 = vmatpush3.bf16.xpose.msra.mxu1 %v68_v20 }
  0x1b   :  { %1250 = vmatprep.mubr.msk.bf16.mxu0 %vm1363_vm0, %v1362_v0  ;;  %1256 = vmatprep.mubr.msk.bf16.mxu1 %vm1363_vm0, %v1362_v0 }
  0x1c   :  { %1260 = vmatprep.subr.bf16.mxu0 %v1362_v0  ;;  %1266 = vmatprep.subr.bf16.mxu1 %v1362_v0 }
  0x21   :  { %1251 = vmatmul.mubr.bf16.vlgmr.msra.gmra.mrb[12].mxu0 %v59_v23  ;;  %1257 = vmatmul.mubr.bf16.vlgmr.msra.gmra.mrb[12].mxu1 %v60_v24 }
  0x22   :  { %1262 = vmatprep.mubr.msk.bf16.mxu0 %vm1363_vm0, %v1362_v0  ;;  %1268 = vmatprep.mubr.msk.bf16.mxu1 %vm1363_vm0, %v1362_v0 }
  0xdc   :  { %v111_v28 = vpop.f32.mrb[0].mxu0  ;;  %v151_v29 = vpop.f32.mrb[0].mxu1 }
  0xdd   :  { %v1489_v30 = vsel %vm402_vm2, %v111_v28, -1e+30  ;;  %v1216_v31 = vpop.f32.mrb[1].mxu0  ;;  %v1492_v32 = vsel %vm402_vm2, %v151_v29, -1e+30  ;;  %v1222_v33 = vpop.f32.mrb[1].mxu1 }
  0xde   :  { %v114_v34 = vpop.f32.mrb[2].mxu0  ;;  %v420_v35 = vsel %vm419_vm3, %v1489_v30, -inf  ;;  %v154_v36 = vpop.f32.mrb[2].mxu1  ;;  %v423_v39 = vsel %vm419_vm3, %v1492_v32, -inf  ;;  %v1563_v29 = vld [vmem:[#allocation2 + $0x20] sm:$0xff]  ;;  %v1565_v31 = vld [vmem:[#allocation2 + $0x28] sm:$0xff] }
  0xdf   :  { %421 = vmax.xlane.f32.xlu0 %v420_v35  ;;  %v1217_v37 = vpop.f32.mrb[3].mxu0  ;;  %v1223_v38 = vpop.f32.mrb[3].mxu1  ;;  %v69_v34 = vld [vmem:[%s1737_s2] sm:$0xf] }
  0xe0   :  { %v666_v37 = vsel %vm664_vm4, %v69_v34, 0 }
  0xe1   :  { %1261 = vmatpush3.bf16.msra.mxu0 %v666_v37 }
  0xe2   :  { %1272 = vmatprep.subr.bf16.mxu0 %v1362_v0 }
  0xe3   :  { %424 = vmax.xlane.f32.xlu0 %v423_v39 }
  0xe4   :  { %v191_v40 = vpop.f32.mrb[4].mxu0  ;;  %v231_v41 = vpop.f32.mrb[4].mxu1 }
  0xe5   :  { %v1499_v42 = vsel %vm402_vm2, %v191_v40, -1e+30  ;;  %v1228_v43 = vpop.f32.mrb[5].mxu0  ;;  %v1502_v44 = vsel %vm402_vm2, %v231_v41, -1e+30  ;;  %v1234_v45 = vpop.f32.mrb[5].mxu1 }
  0xe6   :  { %v194_v46 = vpop.f32.mrb[6].mxu0  ;;  %v426_v47 = vsel %vm419_vm3, %v1499_v42, -inf  ;;  %v234_v48 = vpop.f32.mrb[6].mxu1  ;;  %v429_v51 = vsel %vm419_vm3, %v1502_v44, -inf  ;;  %v70_v43 = vld [vmem:[%s1737_s2 + $0x4] sm:$0xf] }
  0xe7   :  { %427 = vmax.xlane.f32.xlu1 %v426_v47  ;;  %v1229_v49 = vpop.f32.mrb[7].mxu0  ;;  %v1235_v50 = vpop.f32.mrb[7].mxu1  ;;  %v712_v45 = vsel %vm664_vm4, %v70_v43, 0  ;;  %v1596_v46 = vld [vmem:[#allocation2 + $0x30] sm:$0xff]  ;;  %v1598_v47 = vld [vmem:[#allocation2 + $0x38] sm:$0xff] }
  0xe8   :  { %1267 = vmatpush3.bf16.msra.mxu1 %v712_v45  ;;  %v71_v48 = vld [vmem:[%s1737_s2 + $0x8] sm:$0xf] }
  0xe9   :  { %1278 = vmatprep.subr.bf16.mxu1 %v1362_v0 }
  0xeb   :  { %430 = vmax.xlane.f32.xlu1 %v429_v51  ;;  %v758_v51 = vsel %vm664_vm4, %v71_v48, 0 }
  0xec   :  { %v271_v52 = vpop.f32.mrb[8].mxu0  ;;  %v311_v53 = vpop.f32.mrb[8].mxu1 }
  0xed   :  { %v1509_v54 = vsel %vm402_vm2, %v271_v52, -1e+30  ;;  %v1240_v55 = vpop.f32.mrb[9].mxu0  ;;  %v1512_v56 = vsel %vm402_vm2, %v311_v53, -1e+30  ;;  %v1246_v57 = vpop.f32.mrb[9].mxu1 }
  0xee   :  { %v274_v58 = vpop.f32.mrb[10].mxu0  ;;  %v432_v59 = vsel %vm419_vm3, %v1509_v54, -inf  ;;  %v314_v60 = vpop.f32.mrb[10].mxu1  ;;  %v435_v61 = vsel %vm419_vm3, %v1512_v56, -inf }
  0xef   :  { %433 = vmax.xlane.f32.xlu0 %v432_v59  ;;  %v1241_v62 = vpop.f32.mrb[11].mxu0  ;;  %v1247_v63 = vpop.f32.mrb[11].mxu1  ;;  %436 = vmax.xlane.f32.xlu1 %v435_v61  ;;  %v72_v58 = vld [vmem:[%s1737_s2 + $0xc] sm:$0xf]  ;;  %v73_v60 = vld [vmem:[%s1737_s2 + $0x10] sm:$0xf] }
  0xf0   :  { %v804_v59 = vsel %vm664_vm4, %v72_v58, 0  ;;  %v850_v61 = vsel %vm664_vm4, %v73_v60, 0  ;;  %v74_v62 = vld [vmem:[%s1737_s2 + $0x14] sm:$0xf] }
  0xf1   :  { %v1634_v63 = vsel %vm664_vm4, %v74_v62, 0 }
  0xf4   :  { %v351_v2 = vpop.f32.mrb[12].mxu0  ;;  %v391_v3 = vpop.f32.mrb[12].mxu1 }
  0xf5   :  { %v1519_v4 = vsel %vm402_vm2, %v351_v2, -1e+30  ;;  %v1252_v5 = vpop.f32.mrb[13].mxu0  ;;  %v1522_v6 = vsel %vm402_vm2, %v391_v3, -1e+30  ;;  %v1258_v7 = vpop.f32.mrb[13].mxu1 }
  0xf6   :  { %v354_v8 = vpop.f32.mrb[14].mxu0  ;;  %v438_v9 = vsel %vm419_vm3, %v1519_v4, -inf  ;;  %v394_v10 = vpop.f32.mrb[14].mxu1  ;;  %v441_v11 = vsel %vm419_vm3, %v1522_v6, -inf  ;;  %v1640_v2 = vsel %vm664_vm4, %v75_v1, 0 }
  0xf7   :  { %439 = vmax.xlane.f32.xlu0 %v438_v9  ;;  %v1253_v12 = vpop.f32.mrb[15].mxu0  ;;  %v1259_v13 = vpop.f32.mrb[15].mxu1  ;;  %442 = vmax.xlane.f32.xlu1 %v441_v11  ;;  %v76_v3 = vld [vmem:[%s1737_s2 + $0x1c] sm:$0xf] }
  0xf8   :  { %v1646_v5 = vsel %vm664_vm4, %v76_v3, 0 }
 0x16c   :  { %v422_v15 = vpop.xlane.xlu0 %421 }
 0x16d   :  { %v1531_v16 = vmax.f32 %v1528_v14, %v422_v15 }
 0x16f   :  { %v452_v18 = vsub.f32 %v1528_v14, %v1531_v16  ;;  %1046 = vst.msk [vmem:[#allocation2] sm:$0xff] %vm20_vm1, %v1531_v16  ;;  %478 = vperm.xlu0 %1312, %v1531_v16  }
 0x170   :  { %v425_v19 = vpop.xlane.xlu0 %424 }
 0x171   :  { %v1541_v20 = vmax.f32 %v1533_v17, %v425_v19 }
 0x173   :  { %v453_v22 = vsub.f32 %v1533_v17, %v1541_v20  ;;  %1047 = vst.msk [vmem:[#allocation2 + $0x8] sm:$0xff] %vm20_vm1, %v1541_v20  ;;  %483 = vperm.xlu1 %1313, %v1541_v20  }
 0x174   :  { %v428_v23 = vpop.xlane.xlu1 %427 }
 0x175   :  { %v1551_v24 = vmax.f32 %v1543_v21, %v428_v23 }
 0x177   :  { %v454_v26 = vsub.f32 %v1543_v21, %v1551_v24  ;;  %1048 = vst.msk [vmem:[#allocation2 + $0x10] sm:$0xff] %vm20_vm1, %v1551_v24  ;;  %488 = vperm.xlu1 %1313, %v1551_v24  }
 0x178   :  { %v431_v27 = vpop.xlane.xlu1 %430 }
 0x179   :  { %v1561_v28 = vmax.f32 %v1553_v25, %v431_v27 }
 0x17b   :  { %v455_v33 = vsub.f32 %v1553_v25, %v1561_v28  ;;  %1049 = vst.msk [vmem:[#allocation2 + $0x18] sm:$0xff] %vm20_vm1, %v1561_v28  ;;  %493 = vperm.xlu1 %1313, %v1561_v28  }
 0x17c   :  { %v434_v35 = vpop.xlane.xlu0 %433  ;;  %v437_v36 = vpop.xlane.xlu1 %436 }
 0x17d   :  { %v1577_v38 = vmax.f32 %v1563_v29, %v434_v35  ;;  %v1580_v39 = vmax.f32 %v1565_v31, %v437_v36 }
 0x17f   :  { %v456_v40 = vsub.f32 %v1563_v29, %v1577_v38  ;;  %1050 = vst.msk [vmem:[#allocation2 + $0x20] sm:$0xff] %vm20_vm1, %v1577_v38  ;;  %498 = vperm.xlu1 %1313, %v1577_v38   ;;  %v457_v41 = vsub.f32 %v1565_v31, %v1580_v39  ;;  %1051 = vst.msk [vmem:[#allocation2 + $0x28] sm:$0xff] %vm20_vm1, %v1580_v39  ;;  %v540_v31 = vld [vmem:[#allocation3] sm:$0xff] }
 0x181   :  { %v468_v17 = vmul.f32 1.442695, %v456_v40  ;;  %v470_v14 = vmul.f32 1.442695, %v457_v41 }
 0x183   :  { %503 = vperm.xlu1 %1313, %v1580_v39   ;;  %v541_v39 = vld [vmem:[#allocation3 + $0x8] sm:$0xff] }
 0x184   :  { %v440_v49 = vpop.xlane.xlu0 %439  ;;  %v443_v50 = vpop.xlane.xlu1 %442 }
 0x185   :  { %v1607_v52 = vmax.f32 %v1596_v46, %v440_v49  ;;  %v1610_v53 = vmax.f32 %v1598_v47, %v443_v50 }
 0x187   :  { %v458_v55 = vsub.f32 %v1596_v46, %v1607_v52  ;;  %1052 = vst.msk [vmem:[#allocation2 + $0x30] sm:$0xff] %vm20_vm1, %v1607_v52  ;;  %508 = vperm.xlu1 %1313, %v1607_v52   ;;  %v459_v57 = vsub.f32 %v1598_v47, %v1610_v53  ;;  %1053 = vst.msk [vmem:[#allocation2 + $0x38] sm:$0xff] %vm20_vm1, %v1610_v53  ;;  %v542_v47 = vld [vmem:[#allocation3 + $0x10] sm:$0xff] }
 0x189   :  { %v472_v16 = vmul.f32 1.442695, %v458_v55 }
 0x18b   :  { %513 = vperm.xlu1 %1313, %v1610_v53  }
 0x1ee   :  { %v479_v7 = vpop.permute.xlu0 %478 }
 0x1ef   :  { %v516_v8 = vsub.f32 %v1489_v30, %v479_v7 }
 0x1f1   :  { %v524_v9 = vmul.f32 1.442695, %v516_v8 }
 0x1f2   :  { %v484_v10 = vpop.permute.xlu1 %483 }
 0x1f3   :  { %1314 = vpow2.f32 %v524_v9  ;;  %v517_v11 = vsub.f32 %v1492_v32, %v484_v10 }
 0x1f5   :  { %v526_v12 = vmul.f32 1.442695, %v517_v11 }
 0x1f6   :  { %v489_v13 = vpop.permute.xlu1 %488 }
 0x1f7   :  { %1316 = vpow2.f32 %v526_v12  ;;  %v518_v15 = vsub.f32 %v1499_v42, %v489_v13 }
 0x1f9   :  { %v528_v19 = vmul.f32 1.442695, %v518_v15 }
 0x1fa   :  { %v494_v23 = vpop.permute.xlu1 %493 }
 0x1fb   :  { %1318 = vpow2.f32 %v528_v19  ;;  %v519_v27 = vsub.f32 %v1502_v44, %v494_v23 }
 0x1fd   :  { %v1315_v34 = vpop.eup %1314  ;;  %v530_v35 = vmul.f32 1.442695, %v519_v27  ;;  %v464_v27 = vmul.f32 1.442695, %v454_v26 }
 0x1fe   :  { %v499_v36 = vpop.permute.xlu1 %498  ;;  %v556_v30 = vsel %vm419_vm3, %v1315_v34, 0.0  ;;  %v653_v37 = vpack.c.bf16 %v1315_v34, %v1315_v34  ;;  %v466_v34 = vmul.f32 1.442695, %v455_v33 }
 0x1ff   :  { %1320 = vpow2.f32 %v530_v35  ;;  %v520_v43 = vsub.f32 %v1509_v54, %v499_v36  ;;  %557 = vadd.xlane.f32.xlu1 %v556_v30 }
 0x200   :  { %1263 = vmatmul.mubr.msk.bf16.vlgmr.msra.gmra.mrb[16].mxu0 %vm419_vm3, %v653_v37 }
 0x201   :  { %v1317_v32 = vpop.eup %1316  ;;  %v532_v45 = vmul.f32 1.442695, %v520_v43  ;;  %1273 = vmatpush3.bf16.msra.mxu0 %v758_v51  ;;  %1274 = vmatprep.mubr.msk.bf16.mxu0 %vm1363_vm0, %v1362_v0  ;;  %v544_v43 = vld [vmem:[#allocation3 + $0x20] sm:$0xff] }
 0x202   :  { %v504_v42 = vpop.permute.xlu1 %503  ;;  %v559_v44 = vsel %vm419_vm3, %v1317_v32, 0.0  ;;  %v654_v48 = vpack.c.bf16 %v1317_v32, %v1317_v32  ;;  %1284 = vmatprep.subr.bf16.mxu0 %v1362_v0 }
 0x203   :  { %1322 = vpow2.f32 %v532_v45  ;;  %v521_v49 = vsub.f32 %v1512_v56, %v504_v42  ;;  %560 = vadd.xlane.f32.xlu0 %v559_v44 }
 0x204   :  { %1269 = vmatmul.mubr.msk.bf16.vlgmr.msra.gmra.mrb[16].mxu1 %vm419_vm3, %v654_v48  ;;  %v545_v48 = vld [vmem:[#allocation3 + $0x28] sm:$0xff] }
 0x205   :  { %v1319_v54 = vpop.eup %1318  ;;  %v534_v50 = vmul.f32 1.442695, %v521_v49  ;;  %1279 = vmatpush3.bf16.msra.mxu1 %v804_v59  ;;  %1280 = vmatprep.mubr.msk.bf16.mxu1 %vm1363_vm0, %v1362_v0 }
 0x206   :  { %v509_v51 = vpop.permute.xlu1 %508  ;;  %v562_v58 = vsel %vm419_vm3, %v1319_v54, 0.0  ;;  %v655_v60 = vpack.c.bf16 %v1319_v54, %v1319_v54  ;;  %1290 = vmatprep.subr.bf16.mxu1 %v1362_v0 }
 0x207   :  { %1324 = vpow2.f32 %v534_v50  ;;  %v522_v62 = vsub.f32 %v1519_v4, %v509_v51  ;;  %563 = vadd.xlane.f32.xlu0 %v562_v58  ;;  %v546_v58 = vld [vmem:[#allocation3 + $0x30] sm:$0xff] }
 0x208   :  { %1275 = vmatmul.mubr.msk.bf16.vlgmr.msra.gmra.mrb[20].mxu0 %vm419_vm3, %v655_v60 }
 0x209   :  { %v1321_v56 = vpop.eup %1320  ;;  %v536_v1 = vmul.f32 1.442695, %v522_v62  ;;  %1285 = vmatpush3.bf16.msra.mxu0 %v850_v61  ;;  %1286 = vmatprep.mubr.msk.bf16.mxu0 %vm1363_vm0, %v1362_v0 }
 0x20a   :  { %v514_v59 = vpop.permute.xlu1 %513  ;;  %v565_v3 = vsel %vm419_vm3, %v1321_v56, 0.0  ;;  %v656_v7 = vpack.c.bf16 %v1321_v56, %v1321_v56  ;;  %1296 = vmatprep.subr.bf16.mxu0 %v1362_v0 }
 0x20b   :  { %1326 = vpow2.f32 %v536_v1  ;;  %v523_v8 = vsub.f32 %v1522_v6, %v514_v59  ;;  %566 = vadd.xlane.f32.xlu1 %v565_v3  ;;  %v547_v3 = vld [vmem:[#allocation3 + $0x38] sm:$0xff] }
 0x20c   :  { %1281 = vmatmul.mubr.msk.bf16.vlgmr.msra.gmra.mrb[20].mxu1 %vm419_vm3, %v656_v7 }
 0x20d   :  { %v1323_v4 = vpop.eup %1322  ;;  %v538_v9 = vmul.f32 1.442695, %v523_v8  ;;  %1291 = vmatpush3.bf16.msra.mxu1 %v1634_v63  ;;  %1292 = vmatprep.mubr.msk.bf16.mxu1 %vm1363_vm0, %v1362_v0 }
 0x20e   :  { %v568_v61 = vsel %vm419_vm3, %v1323_v4, 0.0  ;;  %v657_v10 = vpack.c.bf16 %v1323_v4, %v1323_v4  ;;  %1302 = vmatprep.subr.bf16.mxu1 %v1362_v0 }
 0x20f   :  { %1328 = vpow2.f32 %v538_v9  ;;  %569 = vadd.xlane.f32.xlu0 %v568_v61 }
 0x210   :  { %1287 = vmatmul.mubr.msk.bf16.vlgmr.msra.gmra.mrb[24].mxu0 %vm419_vm3, %v657_v10 }
 0x211   :  { %v1325_v6 = vpop.eup %1324  ;;  %1297 = vmatpush3.bf16.msra.mxu0 %v1640_v2  ;;  %1298 = vmatprep.mubr.msk.bf16.mxu0 %vm1363_vm0, %v1362_v0 }
 0x212   :  { %v571_v63 = vsel %vm419_vm3, %v1325_v6, 0.0  ;;  %v658_v11 = vpack.c.bf16 %v1325_v6, %v1325_v6 }
 0x213   :  { %572 = vadd.xlane.f32.xlu1 %v571_v63 }
 0x214   :  { %1293 = vmatmul.mubr.msk.bf16.vlgmr.msra.gmra.mrb[24].mxu1 %vm419_vm3, %v658_v11 }
 0x215   :  { %v1327_v12 = vpop.eup %1326  ;;  %1303 = vmatpush3.bf16.msra.mxu1 %v1646_v5  ;;  %1304 = vmatprep.mubr.msk.bf16.mxu1 %vm1363_vm0, %v1362_v0  ;;  %v462_v5 = vmul.f32 1.442695, %v453_v22  ;;  %v460_v0 = vmul.f32 1.442695, %v452_v18  ;;  %v474_v18 = vmul.f32 1.442695, %v459_v57 }
 0x216   :  { %v574_v13 = vsel %vm419_vm3, %v1327_v12, 0.0  ;;  %v659_v15 = vpack.c.bf16 %v1327_v12, %v1327_v12  ;;  %v543_v57 = vld [vmem:[#allocation3 + $0x18] sm:$0xff] }
 0x217   :  { %575 = vadd.xlane.f32.xlu0 %v574_v13  ;;  %1330 = vpow2.f32 %v462_v5 }
 0x218   :  { %1299 = vmatmul.mubr.msk.bf16.vlgmr.msra.gmra.mrb[28].mxu0 %vm419_vm3, %v659_v15  ;;  %1332 = vpow2.f32 %v460_v0 }
 0x219   :  { %v1329_v2 = vpop.eup %1328  ;;  %1334 = vpow2.f32 %v464_v27 }
 0x21a   :  { %v577_v19 = vsel %vm419_vm3, %v1329_v2, 0.0  ;;  %v660_v23 = vpack.c.bf16 %v1329_v2, %v1329_v2  ;;  %1336 = vpow2.f32 %v466_v34 }
 0x21b   :  { %578 = vadd.xlane.f32.xlu1 %v577_v19  ;;  %1338 = vpow2.f32 %v468_v17 }
 0x21c   :  { %1305 = vmatmul.mubr.msk.bf16.vlgmr.msra.gmra.mrb[28].mxu1 %vm419_vm3, %v660_v23  ;;  %1340 = vpow2.f32 %v470_v14 }
 0x21d   :  { %1342 = vpow2.f32 %v472_v16 }
 0x21e   :  { %1344 = vpow2.f32 %v474_v18 }
 0x221   :  { %v1331_v20 = vpop.eup %1330 }
 0x222   :  { %v1333_v21 = vpop.eup %1332  ;;  %v549_v41 = vmul.f32 %v1331_v20, %v541_v39 }
 0x223   :  { %v1335_v22 = vpop.eup %1334  ;;  %v548_v33 = vmul.f32 %v1333_v21, %v540_v31 }
 0x224   :  { %v1337_v24 = vpop.eup %1336  ;;  %v550_v53 = vmul.f32 %v1335_v22, %v542_v47 }
 0x225   :  { %v1339_v25 = vpop.eup %1338  ;;  %v551_v30 = vmul.f32 %v1337_v24, %v543_v57 }
 0x226   :  { %v1341_v26 = vpop.eup %1340  ;;  %v552_v42 = vmul.f32 %v1339_v25, %v544_v43 }
 0x227   :  { %v1343_v28 = vpop.eup %1342  ;;  %v553_v50 = vmul.f32 %v1341_v26, %v545_v48 }
 0x228   :  { %v1345_v29 = vpop.eup %1344  ;;  %v554_v1 = vmul.f32 %v1343_v28, %v546_v58 }
 0x229   :  { %v555_v9 = vmul.f32 %v1345_v29, %v547_v3 }
 0x22c   :  { %612 = vperm.xlu1 %1313, %v1331_v20  }
 0x22d   :  { %607 = vperm.xlu0 %1312, %v1333_v21  }
 0x230   :  { %617 = vperm.xlu1 %1313, %v1335_v22  }
 0x231   :  { %622 = vperm.xlu0 %1312, %v1337_v24  }
 0x234   :  { %627 = vperm.xlu1 %1313, %v1339_v25  }
 0x235   :  { %632 = vperm.xlu0 %1312, %v1341_v26  }
 0x238   :  { %637 = vperm.xlu1 %1313, %v1343_v28  }
 0x239   :  { %642 = vperm.xlu0 %1312, %v1345_v29  }
 0x28c   :  { %v558_v38 = vpop.xlane.xlu1 %557 }
 0x28d   :  { %v580_v40 = vadd.f32 %v558_v38, %v548_v33 }
 0x28f   :  { %589 = vst.msk [vmem:[#allocation3] sm:$0xff] %vm20_vm1, %v580_v40 }
 0x290   :  { %v561_v46 = vpop.xlane.xlu0 %560 }
 0x291   :  { %v581_v52 = vadd.f32 %v561_v46, %v549_v41 }
 0x293   :  { %590 = vst.msk [vmem:[#allocation3 + $0x8] sm:$0xff] %vm20_vm1, %v581_v52 }
 0x294   :  { %v564_v55 = vpop.xlane.xlu0 %563 }
 0x295   :  { %v582_v35 = vadd.f32 %v564_v55, %v550_v53 }
 0x296   :  { %v1065_v36 = vld [vmem:[#allocation3] sm:$0xff] }
 0x297   :  { %591 = vst.msk [vmem:[#allocation3 + $0x10] sm:$0xff] %vm20_vm1, %v582_v35  ;;  %1346 = vrcp.f32 %v1065_v36 }
 0x298   :  { %v567_v37 = vpop.xlane.xlu1 %566 }
 0x299   :  { %v583_v32 = vadd.f32 %v567_v37, %v551_v30 }
 0x29a   :  { %v1066_v45 = vld [vmem:[#allocation3 + $0x8] sm:$0xff] }
 0x29b   :  { %592 = vst.msk [vmem:[#allocation3 + $0x18] sm:$0xff] %vm20_vm1, %v583_v32  ;;  %1348 = vrcp.f32 %v1066_v45 }
 0x29c   :  { %v570_v44 = vpop.xlane.xlu0 %569 }
 0x29d   :  { %v584_v49 = vadd.f32 %v570_v44, %v552_v42 }
 0x29e   :  { %v1067_v54 = vld [vmem:[#allocation3 + $0x10] sm:$0xff] }
 0x29f   :  { %593 = vst.msk [vmem:[#allocation3 + $0x20] sm:$0xff] %vm20_vm1, %v584_v49  ;;  %1350 = vrcp.f32 %v1067_v54 }
 0x2a0   :  { %v573_v51 = vpop.xlane.xlu1 %572 }
 0x2a1   :  { %v1347_v60 = vpop.eup %1346  ;;  %v585_v62 = vadd.f32 %v573_v51, %v553_v50 }
 0x2a2   :  { %1083 = vperm.xlu1 %1313, %v1347_v60   ;;  %v1068_v56 = vld [vmem:[#allocation3 + $0x18] sm:$0xff] }
 0x2a3   :  { %594 = vst.msk [vmem:[#allocation3 + $0x28] sm:$0xff] %vm20_vm1, %v585_v62  ;;  %1352 = vrcp.f32 %v1068_v56 }
 0x2a4   :  { %v576_v59 = vpop.xlane.xlu0 %575 }
 0x2a5   :  { %v1349_v7 = vpop.eup %1348  ;;  %v586_v8 = vadd.f32 %v576_v59, %v554_v1 }
 0x2a6   :  { %1088 = vperm.xlu0 %1312, %v1349_v7   ;;  %v1069_v4 = vld [vmem:[#allocation3 + $0x20] sm:$0xff] }
 0x2a7   :  { %595 = vst.msk [vmem:[#allocation3 + $0x30] sm:$0xff] %vm20_vm1, %v586_v8  ;;  %1354 = vrcp.f32 %v1069_v4 }
 0x2a8   :  { %v579_v61 = vpop.xlane.xlu1 %578 }
 0x2a9   :  { %v1351_v10 = vpop.eup %1350  ;;  %v587_v6 = vadd.f32 %v579_v61, %v555_v9 }
 0x2aa   :  { %1093 = vperm.xlu1 %1313, %v1351_v10   ;;  %v1070_v63 = vld [vmem:[#allocation3 + $0x28] sm:$0xff] }
 0x2ab   :  { %596 = vst.msk [vmem:[#allocation3 + $0x38] sm:$0xff] %vm20_vm1, %v587_v6  ;;  %1356 = vrcp.f32 %v1070_v63 }
 0x2ac   :  { %v613_v43 = vpop.permute.xlu1 %612  ;;  %v608_v32 = vpop.permute.xlu0 %607 }
 0x2ad   :  { %v1353_v11 = vpop.eup %1352  ;;  %v646_v50 = vmul.f32 0.0, %v613_v43  ;;  %v645_v51 = vmul.f32 0.0, %v608_v32 }
 0x2ae   :  { %1098 = vperm.xlu0 %1312, %v1353_v11   ;;  %v1071_v12 = vld [vmem:[#allocation3 + $0x30] sm:$0xff] }
 0x2af   :  { %1358 = vrcp.f32 %v1071_v12 }
 0x2b0   :  { %v618_v45 = vpop.permute.xlu1 %617  ;;  %v623_v42 = vpop.permute.xlu0 %622 }
 0x2b1   :  { %v1355_v13 = vpop.eup %1354  ;;  %v647_v7 = vmul.f32 0.0, %v618_v45  ;;  %v648_v8 = vmul.f32 0.0, %v623_v42 }
 0x2b2   :  { %1103 = vperm.xlu1 %1313, %v1355_v13   ;;  %v1072_v15 = vld [vmem:[#allocation3 + $0x38] sm:$0xff] }
 0x2b3   :  { %1360 = vrcp.f32 %v1072_v15 }
 0x2b4   :  { %v628_v44 = vpop.permute.xlu1 %627  ;;  %v633_v48 = vpop.permute.xlu0 %632 }
 0x2b5   :  { %v1357_v2 = vpop.eup %1356  ;;  %v649_v12 = vmul.f32 0.0, %v628_v44  ;;  %v650_v13 = vmul.f32 0.0, %v633_v48 }
 0x2b6   :  { %1108 = vperm.xlu0 %1312, %v1357_v2  }
 0x2b8   :  { %v638_v49 = vpop.permute.xlu1 %637  ;;  %v643_v54 = vpop.permute.xlu0 %642 }
 0x2b9   :  { %v1359_v19 = vpop.eup %1358 }
 0x2ba   :  { %1113 = vperm.xlu1 %1313, %v1359_v19  }
 0x2bd   :  { %v1361_v23 = vpop.eup %1360 }
 0x2be   :  { %1118 = vperm.xlu0 %1312, %v1361_v23  }
 0x2d3   :  { %v702_v5 = vpop.f32.mrb[16].mxu0 }
 0x2d4   :  { %v1264_v0 = vpop.f32.mrb[17].mxu0  ;;  %v1030_v60 = vadd.f32 %v702_v5, %v645_v51 }
 0x2d5   :  { %v705_v27 = vpop.f32.mrb[18].mxu0 }
 0x2d6   :  { %v1265_v34 = vpop.f32.mrb[19].mxu0 }
 0x2d7   :  { %v748_v17 = vpop.f32.mrb[16].mxu1  ;;  %v651_v34 = vmul.f32 0.0, %v638_v49 }
 0x2d8   :  { %v1270_v14 = vpop.f32.mrb[17].mxu1  ;;  %v1031_v62 = vadd.f32 %v748_v17, %v646_v50  ;;  %v652_v17 = vmul.f32 0.0, %v643_v54 }
 0x2d9   :  { %v751_v16 = vpop.f32.mrb[18].mxu1 }
 0x2da   :  { %v1271_v18 = vpop.f32.mrb[19].mxu1 }
 0x2db   :  { %v794_v20 = vpop.f32.mrb[20].mxu0 }
 0x2dc   :  { %v1276_v21 = vpop.f32.mrb[21].mxu0  ;;  %v1032_v9 = vadd.f32 %v794_v20, %v647_v7 }
 0x2dd   :  { %v797_v22 = vpop.f32.mrb[22].mxu0 }
 0x2de   :  { %v1277_v24 = vpop.f32.mrb[23].mxu0 }
 0x2df   :  { %v840_v25 = vpop.f32.mrb[20].mxu1 }
 0x2e0   :  { %v1282_v26 = vpop.f32.mrb[21].mxu1  ;;  %v1033_v61 = vadd.f32 %v840_v25, %v648_v8 }
 0x2e1   :  { %v843_v28 = vpop.f32.mrb[22].mxu1 }
 0x2e2   :  { %v1283_v29 = vpop.f32.mrb[23].mxu1 }
 0x2e3   :  { %v886_v31 = vpop.f32.mrb[24].mxu0 }
 0x2e4   :  { %v1288_v33 = vpop.f32.mrb[25].mxu0  ;;  %v1034_v2 = vadd.f32 %v886_v31, %v649_v12 }
 0x2e5   :  { %v889_v38 = vpop.f32.mrb[26].mxu0 }
 0x2e6   :  { %v1289_v39 = vpop.f32.mrb[27].mxu0 }
 0x2e7   :  { %v932_v40 = vpop.f32.mrb[24].mxu1 }
 0x2e8   :  { %v1294_v41 = vpop.f32.mrb[25].mxu1  ;;  %v1035_v19 = vadd.f32 %v932_v40, %v650_v13 }
 0x2e9   :  { %v935_v46 = vpop.f32.mrb[26].mxu1 }
 0x2ea   :  { %v1295_v47 = vpop.f32.mrb[27].mxu1 }
 0x2eb   :  { %v978_v52 = vpop.f32.mrb[28].mxu0 }
 0x2ec   :  { %v1300_v53 = vpop.f32.mrb[29].mxu0  ;;  %v1036_v16 = vadd.f32 %v978_v52, %v651_v34 }
 0x2ed   :  { %v981_v55 = vpop.f32.mrb[30].mxu0 }
 0x2ee   :  { %v1301_v57 = vpop.f32.mrb[31].mxu0 }
 0x2ef   :  { %v1024_v35 = vpop.f32.mrb[28].mxu1 }
 0x2f0   :  { %v1306_v36 = vpop.f32.mrb[29].mxu1  ;;  %v1037_v18 = vadd.f32 %v1024_v35, %v652_v17 }
 0x2f1   :  { %v1027_v30 = vpop.f32.mrb[30].mxu1 }
 0x2f2   :  { %v1307_v37 = vpop.f32.mrb[31].mxu1 }
 0x321   :  { %v1084_v58 = vpop.permute.xlu1 %1083 }
 0x322   :  { %v1121_v1 = vmul.f32 %v1084_v58, %v1030_v60 }
 0x325   :  { %v1089_v56 = vpop.permute.xlu0 %1088 }
 0x326   :  { %v1122_v59 = vmul.f32 %v1089_v56, %v1031_v62 }
 0x328   :  { %v1160_v3 = vpack.c.bf16 %v1122_v59, %v1121_v1 }
 0x329   :  { %v1094_v4 = vpop.permute.xlu1 %1093 }
 0x32a   :  { %1161 = vst [vmem:[%s1738_s3] sm:$0xff] %v1160_v3   ;;  %v1123_v6 = vmul.f32 %v1094_v4, %v1032_v9 }
 0x32d   :  { %v1099_v10 = vpop.permute.xlu0 %1098 }
 0x32e   :  { %v1124_v63 = vmul.f32 %v1099_v10, %v1033_v61 }
 0x330   :  { %v1165_v11 = vpack.c.bf16 %v1124_v63, %v1123_v6 }
 0x331   :  { %v1104_v15 = vpop.permute.xlu1 %1103 }
 0x332   :  { %1177 = vst [vmem:[%s1738_s3 + $0x8] sm:$0xff] %v1165_v11   ;;  %v1125_v5 = vmul.f32 %v1104_v15, %v1034_v2 }
 0x335   :  { %v1109_v23 = vpop.permute.xlu0 %1108 }
 0x336   :  { %v1126_v0 = vmul.f32 %v1109_v23, %v1035_v19 }
 0x338   :  { %v1170_v27 = vpack.c.bf16 %v1126_v0, %v1125_v5 }
 0x339   :  { %v1114_v14 = vpop.permute.xlu1 %1113 }
 0x33a   :  { %1178 = vst [vmem:[%s1738_s3 + $0x10] sm:$0xff] %v1170_v27   ;;  %v1127_v21 = vmul.f32 %v1114_v14, %v1036_v16 }
 0x33d   :  { %v1119_v20 = vpop.permute.xlu0 %1118 }
 0x33e   :  { %v1128_v22 = vmul.f32 %v1119_v20, %v1037_v18 }
 0x340   :  { %v1175_v24 = vpack.c.bf16 %v1128_v22, %v1127_v21 }
 0x342   :  { %1179 = vst [vmem:[%s1738_s3 + $0x18] sm:$0xff] %v1175_v24  }

// kernel: mae_forward.22
= control target key start
LH: loop header
LB: loop body
LE: loop exit
PB: predicated region body
PF: predicated region fallthrough
CT: control target
= control target key end

     0   :  { %v326_v3 = vmov 0.0   ;;  %v33_v5 = vlaneseq  ;;  %vm327_vm1 = vmmov 0   ;;  %s397_s0 = inlined_call_operand.vmem [shape: bf16[16,128], index: 0, kind: input, shape index: {}]   ;;  %s398_s1 = inlined_call_operand.vmem [shape: bf16[128,128], index: 1, kind: input, shape index: {}]   ;;  %s399_s3 = inlined_call_operand.vmem [shape: f32[1,128], index: 3, kind: input, shape index: {}]   ;;  %s400_s4 = inlined_call_operand.vmem [shape: f32[1,128], index: 4, kind: input, shape index: {}]   ;;  %s401_s2 = inlined_call_operand.vmem [shape: f32[1,128], index: 2, kind: input, shape index: {}]   ;;  %s402_s5 = inlined_call_operand.vmem [shape: bf16[16,128], index: 5, kind: output, shape index: {}]  }
   0x1   :  { %v267_v0 = vld [vmem:[%s397_s0] sm:$0xff]   ;;  %284 = vmatprep.subr.bf16.mxu0 %v326_v3  ;;  %v307_v17 = vld [vmem:[%s398_s1 + $0x8] sm:$0xff]   ;;  %v308_v18 = vld [vmem:[%s398_s1 + $0x10] sm:$0xff]   ;;  %300 = vmatprep.mubr.msk.bf16.mxu0 %vm327_vm1, %v326_v3 }
   0x2   :  { %v268_v1 = vunpack.c.l.bf16 %v267_v0  ;;  %v269_v2 = vunpack.c.h.bf16 %v267_v0  ;;  %v306_v4 = vld [vmem:[%s398_s1] sm:$0xff]   ;;  %v34_v6 = vand.u32 127, %v33_v5  ;;  %v309_v19 = vld [vmem:[%s398_s1 + $0x18] sm:$0xff]   ;;  %v311_v21 = vld [vmem:[%s398_s1 + $0x28] sm:$0xff]  }
   0x3   :  { %285 = vmatpush3.bf16.msra.mxu0 %v306_v4  ;;  %v310_v20 = vld [vmem:[%s398_s1 + $0x20] sm:$0xff]   ;;  %v312_v22 = vld [vmem:[%s398_s1 + $0x30] sm:$0xff]   ;;  %v313_v23 = vld [vmem:[%s398_s1 + $0x38] sm:$0xff]  }
   0x4   :  { %25 = vadd.xlane.f32.xlu0 %v268_v1  ;;  %286 = vmatprep.subr.bf16.mxu0 %v326_v3  ;;  %vm35_vm0 = vcmp.lt.s32.totalorder %v34_v6, 32  ;;  %v251_v32 = vld [vmem:[%s399_s3] ss:$0 sm:$0xff] }
   0x5   :  { %v252_v36 = vld [vmem:[%s400_s4] ss:$0 sm:$0xff] }
   0x6   :  { %v253_v41 = vld [vmem:[%s401_s2] ss:$0 sm:$0xff] }
   0x7   :  { %287 = vmatpush3.bf16.msra.mxu0 %v307_v17 }
   0x8   :  { %27 = vadd.xlane.f32.xlu0 %v269_v2  ;;  %288 = vmatprep.subr.bf16.mxu0 %v326_v3 }
   0xb   :  { %289 = vmatpush3.bf16.msra.mxu0 %v308_v18 }
   0xc   :  { %290 = vmatprep.subr.bf16.mxu0 %v326_v3 }
   0xf   :  { %291 = vmatpush3.bf16.msra.mxu0 %v309_v19 }
  0x10   :  { %292 = vmatprep.subr.bf16.mxu0 %v326_v3 }
  0x13   :  { %293 = vmatpush3.bf16.msra.mxu0 %v310_v20 }
  0x14   :  { %294 = vmatprep.subr.bf16.mxu0 %v326_v3 }
  0x17   :  { %295 = vmatpush3.bf16.msra.mxu0 %v311_v21 }
  0x18   :  { %296 = vmatprep.subr.bf16.mxu0 %v326_v3 }
  0x1b   :  { %297 = vmatpush3.bf16.msra.mxu0 %v312_v22 }
  0x1c   :  { %298 = vmatprep.subr.bf16.mxu0 %v326_v3 }
  0x1f   :  { %299 = vmatpush3.bf16.msra.mxu0 %v313_v23 }
  0x91   :  { %v26_v7 = vpop.xlane.xlu0 %25 }
  0x92   :  { %v29_v8 = vmul.f32 0.03125, %v26_v7 }
  0x94   :  { %v31_v9 = vsub.f32 %v268_v1, %v29_v8 }
  0x95   :  { %v28_v10 = vpop.xlane.xlu0 %27 }
  0x96   :  { %v30_v11 = vmul.f32 0.03125, %v28_v10  ;;  %v36_v12 = vsel %vm35_vm0, %v31_v9, 0.0 }
  0x97   :  { %v38_v13 = vmul.f32 %v36_v12, %v36_v12 }
  0x98   :  { %v32_v14 = vsub.f32 %v269_v2, %v30_v11 }
  0x99   :  { %40 = vadd.xlane.f32.xlu1 %v38_v13 }
  0x9a   :  { %v37_v15 = vsel %vm35_vm0, %v32_v14, 0.0 }
  0x9b   :  { %v39_v16 = vmul.f32 %v37_v15, %v37_v15 }
  0x9d   :  { %42 = vadd.xlane.f32.xlu1 %v39_v16 }
 0x126   :  { %v41_v24 = vpop.xlane.xlu1 %40 }
 0x127   :  { %v44_v25 = vmul.f32 0.03125, %v41_v24 }
 0x129   :  { %v46_v26 = vadd.f32 1e-05, %v44_v25 }
 0x12a   :  { %v43_v27 = vpop.xlane.xlu1 %42 }
 0x12b   :  { %314 = vrsqrt.f32 %v46_v26  ;;  %v45_v28 = vmul.f32 0.03125, %v43_v27 }
 0x12d   :  { %v47_v29 = vadd.f32 1e-05, %v45_v28 }
 0x12f   :  { %316 = vrsqrt.f32 %v47_v29 }
 0x135   :  { %v315_v30 = vpop.eup %314 }
 0x136   :  { %v50_v31 = vmul.f32 %v315_v30, %v36_v12 }
 0x138   :  { %v59_v35 = vmul.f32 %v251_v32, %v50_v31 }
 0x139   :  { %v317_v33 = vpop.eup %316 }
 0x13a   :  { %v51_v34 = vmul.f32 %v317_v33, %v37_v15  ;;  %v68_v38 = vadd.f32 %v252_v36, %v59_v35 }
 0x13c   :  { %v60_v37 = vmul.f32 %v251_v32, %v51_v34 }
 0x13e   :  { %v69_v39 = vadd.f32 %v252_v36, %v60_v37 }
 0x140   :  { %v70_v40 = vpack.c.bf16 %v69_v39, %v68_v38 }
 0x142   :  { %301 = vmatmul.mubr.bf16.vlgmr.msra.gmra.mrb[0].mxu0 %v70_v40 }
 0x215   :  { %v176_v42 = vpop.f32.mrb[0].mxu0 }
 0x216   :  { %v177_v43 = vadd.f32 %v253_v41, %v176_v42  ;;  %v302_v44 = vpop.f32.mrb[1].mxu0 }
 0x217   :  { %v179_v45 = vpop.f32.mrb[2].mxu0 }
 0x218   :  { %v185_v46 = vmul.f32 0.70710677, %v177_v43  ;;  %v180_v47 = vadd.f32 %v253_v41, %v179_v45  ;;  %v303_v48 = vpop.f32.mrb[3].mxu0  ;;  %v183_v29 = vmul.f32 0.5, %v177_v43 }
 0x21a   :  { %v187_v49 = vand.u32 2147483647, %v185_v46  ;;  %v186_v50 = vmul.f32 0.70710677, %v180_v47  ;;  %vm227_vm2 = vcmp.lt.f32.partialorder %v185_v46, 0.0  ;;  %v184_v30 = vmul.f32 0.5, %v180_v47 }
 0x21c   :  { %v189_v51 = vmul.f32 0.3275911, %v187_v49  ;;  %v188_v52 = vand.u32 2147483647, %v186_v50  ;;  %v215_v56 = vsub.f32 0.0, %v187_v49  ;;  %vm228_vm3 = vcmp.lt.f32.partialorder %v186_v50, 0.0 }
 0x21e   :  { %v191_v53 = vadd.f32 1.0, %v189_v51  ;;  %v190_v54 = vmul.f32 0.3275911, %v188_v52  ;;  %v216_v57 = vsub.f32 0.0, %v188_v52  ;;  %v217_v59 = vmul.f32 %v215_v56, %v187_v49 }
 0x220   :  { %318 = vrcp.f32 %v191_v53  ;;  %v192_v55 = vadd.f32 1.0, %v190_v54  ;;  %v218_v63 = vmul.f32 %v216_v57, %v188_v52  ;;  %v219_v0 = vmul.f32 1.442695, %v217_v59 }
 0x222   :  { %320 = vrcp.f32 %v192_v55  ;;  %v221_v5 = vmul.f32 1.442695, %v218_v63 }
 0x223   :  { %322 = vpow2.f32 %v219_v0 }
 0x224   :  { %324 = vpow2.f32 %v221_v5 }
 0x22a   :  { %v319_v58 = vpop.eup %318 }
 0x22b   :  { %v197_v60 = vmul.f32 1.0614054, %v319_v58 }
 0x22c   :  { %v321_v61 = vpop.eup %320 }
 0x22d   :  { %v199_v62 = vadd.f32 -1.4531521, %v197_v60  ;;  %v198_v1 = vmul.f32 1.0614054, %v321_v61  ;;  %v323_v16 = vpop.eup %322 }
 0x22e   :  { %v325_v20 = vpop.eup %324 }
 0x22f   :  { %v201_v2 = vmul.f32 %v319_v58, %v199_v62  ;;  %v200_v3 = vadd.f32 -1.4531521, %v198_v1 }
 0x231   :  { %v203_v4 = vadd.f32 1.4214138, %v201_v2  ;;  %v202_v6 = vmul.f32 %v321_v61, %v200_v3 }
 0x233   :  { %v205_v7 = vmul.f32 %v319_v58, %v203_v4  ;;  %v204_v8 = vadd.f32 1.4214138, %v202_v6 }
 0x235   :  { %v207_v9 = vadd.f32 -0.28449672, %v205_v7  ;;  %v206_v10 = vmul.f32 %v321_v61, %v204_v8 }
 0x237   :  { %v209_v11 = vmul.f32 %v319_v58, %v207_v9  ;;  %v208_v12 = vadd.f32 -0.28449672, %v206_v10 }
 0x239   :  { %v211_v13 = vadd.f32 0.2548296, %v209_v11  ;;  %v210_v14 = vmul.f32 %v321_v61, %v208_v12 }
 0x23b   :  { %v213_v15 = vmul.f32 %v319_v58, %v211_v13  ;;  %v212_v17 = vadd.f32 0.2548296, %v210_v14 }
 0x23d   :  { %v223_v18 = vmul.f32 %v323_v16, %v213_v15  ;;  %v214_v19 = vmul.f32 %v321_v61, %v212_v17 }
 0x23f   :  { %v225_v21 = vsub.f32 1.0, %v223_v18  ;;  %v224_v22 = vmul.f32 %v325_v20, %v214_v19 }
 0x241   :  { %v229_v23 = vsub.f32 0.0, %v225_v21  ;;  %v226_v24 = vsub.f32 1.0, %v224_v22 }
 0x243   :  { %v231_v25 = vsel %vm227_vm2, %v229_v23, %v225_v21  ;;  %v230_v26 = vsub.f32 0.0, %v226_v24 }
 0x244   :  { %v233_v27 = vadd.f32 1.0, %v231_v25 }
 0x245   :  { %v232_v28 = vsel %vm228_vm3, %v230_v26, %v226_v24 }
 0x246   :  { %v234_v31 = vadd.f32 1.0, %v232_v28  ;;  %v235_v32 = vmul.f32 %v233_v27, %v183_v29 }
 0x248   :  { %v236_v33 = vmul.f32 %v234_v31, %v184_v30 }
 0x24a   :  { %v273_v34 = vpack.c.bf16 %v236_v33, %v235_v32 }
 0x24c   :  { %274 = vst [vmem:[%s402_s5] sm:$0xff] %v273_v34  }

// kernel: mae_forward.30
= control target key start
LH: loop header
LB: loop body
LE: loop exit
PB: predicated region body
PF: predicated region fallthrough
CT: control target
= control target key end

     0   :  { %v430_v9 = vmov 0.0   ;;  %v57_v11 = vlaneseq  ;;  %vm431_vm1 = vmmov 0   ;;  %s571_s0 = inlined_call_operand.vmem [shape: bf16[48,128], index: 0, kind: input, shape index: {}]   ;;  %s572_s1 = inlined_call_operand.vmem [shape: bf16[128,128], index: 1, kind: input, shape index: {}]   ;;  %s573_s3 = inlined_call_operand.vmem [shape: f32[1,128], index: 3, kind: input, shape index: {}]   ;;  %s574_s4 = inlined_call_operand.vmem [shape: f32[1,128], index: 4, kind: input, shape index: {}]   ;;  %s575_s2 = inlined_call_operand.vmem [shape: f32[1,128], index: 2, kind: input, shape index: {}]   ;;  %s576_s5 = inlined_call_operand.vmem [shape: bf16[48,128], index: 5, kind: output, shape index: {}]  }
   0x1   :  { %v349_v0 = vld [vmem:[%s571_s0 + $0x8] sm:$0xff]   ;;  %v323_v1 = vld [vmem:[%s571_s0] sm:$0xff]   ;;  %v350_v6 = vld [vmem:[%s571_s0 + $0x10] sm:$0xff]   ;;  %392 = vmatprep.subr.bf16.mxu1 %v430_v9  ;;  %364 = vmatprep.subr.bf16.mxu0 %v430_v9 }
   0x2   :  { %v328_v2 = vunpack.c.l.bf16 %v349_v0  ;;  %v324_v3 = vunpack.c.l.bf16 %v323_v1  ;;  %v329_v4 = vunpack.c.h.bf16 %v349_v0  ;;  %v325_v5 = vunpack.c.h.bf16 %v323_v1  ;;  %v410_v10 = vld [vmem:[%s572_s1] sm:$0xff]   ;;  %v411_v43 = vld [vmem:[%s572_s1 + $0x8] sm:$0xff]   ;;  %v412_v44 = vld [vmem:[%s572_s1 + $0x10] sm:$0xff]   ;;  %384 = vmatprep.mubr.msk.bf16.mxu1 %vm431_vm1, %v430_v9  ;;  %380 = vmatprep.mubr.msk.bf16.mxu0 %vm431_vm1, %v430_v9 }
   0x3   :  { %v332_v7 = vunpack.c.l.bf16 %v350_v6  ;;  %v333_v8 = vunpack.c.h.bf16 %v350_v6  ;;  %400 = vmatpush3.bf16.msra.mxu1 %v410_v10  ;;  %365 = vmatpush3.bf16.msra.mxu0 %v410_v10  ;;  %v58_v12 = vand.u32 127, %v57_v11  ;;  %v413_v45 = vld [vmem:[%s572_s1 + $0x18] sm:$0xff]   ;;  %v414_v46 = vld [vmem:[%s572_s1 + $0x20] sm:$0xff]   ;;  %v415_v47 = vld [vmem:[%s572_s1 + $0x28] sm:$0xff]  }
   0x4   :  { %37 = vadd.xlane.f32.xlu0 %v328_v2  ;;  %33 = vadd.xlane.f32.xlu1 %v324_v3  ;;  %v416_v48 = vld [vmem:[%s572_s1 + $0x30] sm:$0xff]   ;;  %v417_v49 = vld [vmem:[%s572_s1 + $0x38] sm:$0xff]   ;;  %v299_v6 = vld [vmem:[%s573_s3] ss:$0 sm:$0xff] }
   0x5   :  { %393 = vmatprep.subr.bf16.mxu1 %v430_v9  ;;  %366 = vmatprep.subr.bf16.mxu0 %v430_v9  ;;  %vm59_vm0 = vcmp.lt.s32.totalorder %v58_v12, 32 }
   0x7   :  { %401 = vmatpush3.bf16.msra.mxu1 %v411_v43  ;;  %367 = vmatpush3.bf16.msra.mxu0 %v411_v43 }
   0x8   :  { %39 = vadd.xlane.f32.xlu0 %v329_v4  ;;  %35 = vadd.xlane.f32.xlu1 %v325_v5 }
   0x9   :  { %394 = vmatprep.subr.bf16.mxu1 %v430_v9  ;;  %368 = vmatprep.subr.bf16.mxu0 %v430_v9 }
   0xb   :  { %402 = vmatpush3.bf16.msra.mxu1 %v412_v44  ;;  %369 = vmatpush3.bf16.msra.mxu0 %v412_v44 }
   0xc   :  { %41 = vadd.xlane.f32.xlu0 %v332_v7  ;;  %43 = vadd.xlane.f32.xlu1 %v333_v8 }
   0xd   :  { %395 = vmatprep.subr.bf16.mxu1 %v430_v9  ;;  %370 = vmatprep.subr.bf16.mxu0 %v430_v9 }
   0xf   :  { %403 = vmatpush3.bf16.msra.mxu1 %v413_v45  ;;  %371 = vmatpush3.bf16.msra.mxu0 %v413_v45 }
  0x10   :  { %396 = vmatprep.subr.bf16.mxu1 %v430_v9  ;;  %372 = vmatprep.subr.bf16.mxu0 %v430_v9 }
  0x13   :  { %404 = vmatpush3.bf16.msra.mxu1 %v414_v46  ;;  %373 = vmatpush3.bf16.msra.mxu0 %v414_v46 }
  0x14   :  { %397 = vmatprep.subr.bf16.mxu1 %v430_v9  ;;  %374 = vmatprep.subr.bf16.mxu0 %v430_v9 }
  0x17   :  { %405 = vmatpush3.bf16.msra.mxu1 %v415_v47  ;;  %375 = vmatpush3.bf16.msra.mxu0 %v415_v47 }
  0x18   :  { %398 = vmatprep.subr.bf16.mxu1 %v430_v9  ;;  %376 = vmatprep.subr.bf16.mxu0 %v430_v9 }
  0x1b   :  { %406 = vmatpush3.bf16.msra.mxu1 %v416_v48  ;;  %377 = vmatpush3.bf16.msra.mxu0 %v416_v48 }
  0x1c   :  { %399 = vmatprep.subr.bf16.mxu1 %v430_v9  ;;  %378 = vmatprep.subr.bf16.mxu0 %v430_v9 }
  0x1f   :  { %407 = vmatpush3.bf16.msra.mxu1 %v417_v49  ;;  %379 = vmatpush3.bf16.msra.mxu0 %v417_v49 }
  0x91   :  { %v38_v13 = vpop.xlane.xlu0 %37  ;;  %v34_v14 = vpop.xlane.xlu1 %33 }
  0x92   :  { %v47_v15 = vmul.f32 0.03125, %v38_v13  ;;  %v45_v16 = vmul.f32 0.03125, %v34_v14  ;;  %v300_v13 = vld [vmem:[%s574_s4] ss:$0 sm:$0xff] }
  0x94   :  { %v53_v17 = vsub.f32 %v328_v2, %v47_v15  ;;  %v51_v18 = vsub.f32 %v324_v3, %v45_v16 }
  0x95   :  { %v40_v19 = vpop.xlane.xlu0 %39  ;;  %v36_v20 = vpop.xlane.xlu1 %35 }
  0x96   :  { %v48_v21 = vmul.f32 0.03125, %v40_v19  ;;  %v479_v22 = vsel %vm59_vm0, %v53_v17, 0.0  ;;  %v46_v23 = vmul.f32 0.03125, %v36_v20  ;;  %v482_v24 = vsel %vm59_vm0, %v51_v18, 0.0 }
  0x97   :  { %v68_v25 = vmul.f32 %v479_v22, %v479_v22  ;;  %v66_v29 = vmul.f32 %v482_v24, %v482_v24 }
  0x98   :  { %v54_v26 = vsub.f32 %v329_v4, %v48_v21  ;;  %v52_v27 = vsub.f32 %v325_v5, %v46_v23 }
  0x99   :  { %76 = vadd.xlane.f32.xlu0 %v68_v25  ;;  %v42_v28 = vpop.xlane.xlu0 %41  ;;  %v44_v30 = vpop.xlane.xlu1 %43 }
  0x9a   :  { %v49_v31 = vmul.f32 0.03125, %v42_v28  ;;  %v489_v32 = vsel %vm59_vm0, %v54_v26, 0.0  ;;  %v50_v33 = vmul.f32 0.03125, %v44_v30  ;;  %v492_v34 = vsel %vm59_vm0, %v52_v27, 0.0 }
  0x9b   :  { %v69_v35 = vmul.f32 %v489_v32, %v489_v32  ;;  %v67_v38 = vmul.f32 %v492_v34, %v492_v34 }
  0x9c   :  { %v55_v36 = vsub.f32 %v332_v7, %v49_v31  ;;  %v56_v37 = vsub.f32 %v333_v8, %v50_v33 }
  0x9d   :  { %78 = vadd.xlane.f32.xlu1 %v69_v35  ;;  %72 = vadd.xlane.f32.xlu0 %v66_v29 }
  0x9e   :  { %v499_v39 = vsel %vm59_vm0, %v55_v36, 0.0  ;;  %v502_v40 = vsel %vm59_vm0, %v56_v37, 0.0 }
  0x9f   :  { %v70_v41 = vmul.f32 %v499_v39, %v499_v39  ;;  %v71_v42 = vmul.f32 %v502_v40, %v502_v40 }
  0xa1   :  { %80 = vadd.xlane.f32.xlu0 %v70_v41  ;;  %74 = vadd.xlane.f32.xlu1 %v67_v38 }
  0xa5   :  { %82 = vadd.xlane.f32.xlu1 %v71_v42 }
 0x126   :  { %v77_v50 = vpop.xlane.xlu0 %76 }
 0x127   :  { %v86_v51 = vmul.f32 0.03125, %v77_v50 }
 0x129   :  { %v92_v52 = vadd.f32 1e-05, %v86_v51 }
 0x12a   :  { %v73_v53 = vpop.xlane.xlu0 %72  ;;  %v79_v54 = vpop.xlane.xlu1 %78 }
 0x12b   :  { %418 = vrsqrt.f32 %v92_v52  ;;  %v84_v55 = vmul.f32 0.03125, %v73_v53  ;;  %v87_v56 = vmul.f32 0.03125, %v79_v54 }
 0x12d   :  { %v90_v57 = vadd.f32 1e-05, %v84_v55  ;;  %v93_v58 = vadd.f32 1e-05, %v87_v56 }
 0x12e   :  { %v81_v59 = vpop.xlane.xlu0 %80  ;;  %v75_v60 = vpop.xlane.xlu1 %74 }
 0x12f   :  { %420 = vrsqrt.f32 %v90_v57  ;;  %v88_v61 = vmul.f32 0.03125, %v81_v59  ;;  %v85_v62 = vmul.f32 0.03125, %v75_v60 }
 0x130   :  { %422 = vrsqrt.f32 %v93_v58 }
 0x131   :  { %v94_v63 = vadd.f32 1e-05, %v88_v61  ;;  %v91_v0 = vadd.f32 1e-05, %v85_v62 }
 0x132   :  { %v83_v1 = vpop.xlane.xlu1 %82 }
 0x133   :  { %424 = vrsqrt.f32 %v94_v63  ;;  %v89_v2 = vmul.f32 0.03125, %v83_v1 }
 0x134   :  { %426 = vrsqrt.f32 %v91_v0 }
 0x135   :  { %v419_v3 = vpop.eup %418  ;;  %v95_v4 = vadd.f32 1e-05, %v89_v2 }
 0x136   :  { %v104_v5 = vmul.f32 %v419_v3, %v479_v22 }
 0x137   :  { %428 = vrsqrt.f32 %v95_v4 }
 0x138   :  { %v117_v11 = vmul.f32 %v299_v6, %v104_v5 }
 0x139   :  { %v421_v7 = vpop.eup %420 }
 0x13a   :  { %v423_v8 = vpop.eup %422  ;;  %v102_v12 = vmul.f32 %v421_v7, %v482_v24  ;;  %v130_v18 = vadd.f32 %v300_v13, %v117_v11 }
 0x13b   :  { %v105_v10 = vmul.f32 %v423_v8, %v489_v32 }
 0x13c   :  { %v115_v21 = vmul.f32 %v299_v6, %v102_v12 }
 0x13d   :  { %v425_v14 = vpop.eup %424  ;;  %v118_v15 = vmul.f32 %v299_v6, %v105_v10 }
 0x13e   :  { %v427_v16 = vpop.eup %426  ;;  %v106_v17 = vmul.f32 %v425_v14, %v499_v39  ;;  %v128_v27 = vadd.f32 %v300_v13, %v115_v21 }
 0x13f   :  { %v131_v19 = vadd.f32 %v300_v13, %v118_v15  ;;  %v103_v20 = vmul.f32 %v427_v16, %v492_v34  ;;  %v301_v34 = vld [vmem:[%s575_s2] ss:$0 sm:$0xff] }
 0x140   :  { %v119_v24 = vmul.f32 %v299_v6, %v106_v17 }
 0x141   :  { %v429_v22 = vpop.eup %428  ;;  %v135_v23 = vpack.c.bf16 %v131_v19, %v130_v18  ;;  %v116_v25 = vmul.f32 %v299_v6, %v103_v20 }
 0x142   :  { %v107_v26 = vmul.f32 %v429_v22, %v502_v40  ;;  %v132_v31 = vadd.f32 %v300_v13, %v119_v24 }
 0x143   :  { %385 = vmatmul.mubr.bf16.vlgmr.msra.gmra.mrb[0].mxu1 %v135_v23  ;;  %v129_v28 = vadd.f32 %v300_v13, %v116_v25 }
 0x144   :  { %388 = vmatprep.mubr.msk.bf16.mxu1 %vm431_vm1, %v430_v9  ;;  %v120_v29 = vmul.f32 %v299_v6, %v107_v26 }
 0x145   :  { %v134_v30 = vpack.c.bf16 %v129_v28, %v128_v27 }
 0x146   :  { %v133_v32 = vadd.f32 %v300_v13, %v120_v29 }
 0x147   :  { %381 = vmatmul.mubr.bf16.vlgmr.msra.gmra.mrb[0].mxu0 %v134_v30 }
 0x148   :  { %v136_v33 = vpack.c.bf16 %v133_v32, %v132_v31 }
 0x14b   :  { %389 = vmatmul.mubr.bf16.gmra.mrb[4].mxu1 %v136_v33 }
 0x216   :  { %v250_v35 = vpop.f32.mrb[0].mxu1 }
 0x217   :  { %v386_v36 = vpop.f32.mrb[1].mxu1  ;;  %v251_v38 = vadd.f32 %v301_v34, %v250_v35 }
 0x218   :  { %v253_v37 = vpop.f32.mrb[2].mxu1 }
 0x219   :  { %v254_v39 = vadd.f32 %v301_v34, %v253_v37  ;;  %v387_v40 = vpop.f32.mrb[3].mxu1 }
 0x21a   :  { %v242_v41 = vpop.f32.mrb[0].mxu0 }
 0x21b   :  { %v342_v42 = vpack.c.bf16 %v254_v39, %v251_v38  ;;  %v382_v9 = vpop.f32.mrb[1].mxu0  ;;  %v243_v44 = vadd.f32 %v301_v34, %v242_v41 }
 0x21c   :  { %v245_v43 = vpop.f32.mrb[2].mxu0 }
 0x21d   :  { %351 = vst [vmem:[%s576_s5 + $0x8] sm:$0xff] %v342_v42   ;;  %v246_v45 = vadd.f32 %v301_v34, %v245_v43  ;;  %v383_v46 = vpop.f32.mrb[3].mxu0 }
 0x21e   :  { %v258_v47 = vpop.f32.mrb[4].mxu1 }
 0x21f   :  { %v337_v48 = vpack.c.bf16 %v246_v45, %v243_v44  ;;  %v390_v49 = vpop.f32.mrb[5].mxu1  ;;  %v259_v51 = vadd.f32 %v301_v34, %v258_v47 }
 0x220   :  { %v261_v50 = vpop.f32.mrb[6].mxu1 }
 0x221   :  { %338 = vst [vmem:[%s576_s5] sm:$0xff] %v337_v48   ;;  %v262_v52 = vadd.f32 %v301_v34, %v261_v50  ;;  %v391_v53 = vpop.f32.mrb[7].mxu1 }
 0x223   :  { %v347_v54 = vpack.c.bf16 %v262_v52, %v259_v51 }
 0x225   :  { %352 = vst [vmem:[%s576_s5 + $0x10] sm:$0xff] %v347_v54  }

// kernel: mae_forward.33
= control target key start
LH: loop header
LB: loop body
LE: loop exit
PB: predicated region body
PF: predicated region fallthrough
CT: control target
= control target key end

     0   :  { %v616_v9 = vmov 0.0   ;;  %v57_v11 = vlaneseq  ;;  %vm617_vm1 = vmmov 0   ;;  %s833_s0 = inlined_call_operand.vmem [shape: bf16[48,128], index: 0, kind: input, shape index: {}]   ;;  %s834_s1 = inlined_call_operand.vmem [shape: bf16[128,128], index: 1, kind: input, shape index: {}]   ;;  %s835_s3 = inlined_call_operand.vmem [shape: f32[1,128], index: 3, kind: input, shape index: {}]   ;;  %s836_s4 = inlined_call_operand.vmem [shape: f32[1,128], index: 4, kind: input, shape index: {}]   ;;  %s837_s2 = inlined_call_operand.vmem [shape: f32[1,128], index: 2, kind: input, shape index: {}]   ;;  %s838_s5 = inlined_call_operand.vmem [shape: bf16[48,128], index: 5, kind: output, shape index: {}]  }
   0x1   :  { %v511_v0 = vld [vmem:[%s833_s0 + $0x8] sm:$0xff]   ;;  %v485_v1 = vld [vmem:[%s833_s0] sm:$0xff]   ;;  %v512_v6 = vld [vmem:[%s833_s0 + $0x10] sm:$0xff]   ;;  %554 = vmatprep.subr.bf16.mxu1 %v616_v9  ;;  %526 = vmatprep.subr.bf16.mxu0 %v616_v9 }
   0x2   :  { %v490_v2 = vunpack.c.l.bf16 %v511_v0  ;;  %v486_v3 = vunpack.c.l.bf16 %v485_v1  ;;  %v491_v4 = vunpack.c.h.bf16 %v511_v0  ;;  %v487_v5 = vunpack.c.h.bf16 %v485_v1  ;;  %v572_v10 = vld [vmem:[%s834_s1] sm:$0xff]   ;;  %v573_v43 = vld [vmem:[%s834_s1 + $0x8] sm:$0xff]   ;;  %v574_v44 = vld [vmem:[%s834_s1 + $0x10] sm:$0xff]   ;;  %546 = vmatprep.mubr.msk.bf16.mxu1 %vm617_vm1, %v616_v9  ;;  %542 = vmatprep.mubr.msk.bf16.mxu0 %vm617_vm1, %v616_v9 }
   0x3   :  { %v494_v7 = vunpack.c.l.bf16 %v512_v6  ;;  %v495_v8 = vunpack.c.h.bf16 %v512_v6  ;;  %562 = vmatpush3.bf16.msra.mxu1 %v572_v10  ;;  %527 = vmatpush3.bf16.msra.mxu0 %v572_v10  ;;  %v58_v12 = vand.u32 127, %v57_v11  ;;  %v575_v45 = vld [vmem:[%s834_s1 + $0x18] sm:$0xff]   ;;  %v576_v46 = vld [vmem:[%s834_s1 + $0x20] sm:$0xff]   ;;  %v577_v47 = vld [vmem:[%s834_s1 + $0x28] sm:$0xff]  }
   0x4   :  { %37 = vadd.xlane.f32.xlu0 %v490_v2  ;;  %33 = vadd.xlane.f32.xlu1 %v486_v3  ;;  %v578_v48 = vld [vmem:[%s834_s1 + $0x30] sm:$0xff]   ;;  %v579_v49 = vld [vmem:[%s834_s1 + $0x38] sm:$0xff]   ;;  %v461_v6 = vld [vmem:[%s835_s3] ss:$0 sm:$0xff] }
   0x5   :  { %555 = vmatprep.subr.bf16.mxu1 %v616_v9  ;;  %528 = vmatprep.subr.bf16.mxu0 %v616_v9  ;;  %vm59_vm0 = vcmp.lt.s32.totalorder %v58_v12, 32 }
   0x7   :  { %563 = vmatpush3.bf16.msra.mxu1 %v573_v43  ;;  %529 = vmatpush3.bf16.msra.mxu0 %v573_v43 }
   0x8   :  { %39 = vadd.xlane.f32.xlu0 %v491_v4  ;;  %35 = vadd.xlane.f32.xlu1 %v487_v5 }
   0x9   :  { %556 = vmatprep.subr.bf16.mxu1 %v616_v9  ;;  %530 = vmatprep.subr.bf16.mxu0 %v616_v9 }
   0xb   :  { %564 = vmatpush3.bf16.msra.mxu1 %v574_v44  ;;  %531 = vmatpush3.bf16.msra.mxu0 %v574_v44 }
   0xc   :  { %41 = vadd.xlane.f32.xlu0 %v494_v7  ;;  %43 = vadd.xlane.f32.xlu1 %v495_v8 }
   0xd   :  { %557 = vmatprep.subr.bf16.mxu1 %v616_v9  ;;  %532 = vmatprep.subr.bf16.mxu0 %v616_v9 }
   0xf   :  { %565 = vmatpush3.bf16.msra.mxu1 %v575_v45  ;;  %533 = vmatpush3.bf16.msra.mxu0 %v575_v45 }
  0x10   :  { %558 = vmatprep.subr.bf16.mxu1 %v616_v9  ;;  %534 = vmatprep.subr.bf16.mxu0 %v616_v9 }
  0x13   :  { %566 = vmatpush3.bf16.msra.mxu1 %v576_v46  ;;  %535 = vmatpush3.bf16.msra.mxu0 %v576_v46 }
  0x14   :  { %559 = vmatprep.subr.bf16.mxu1 %v616_v9  ;;  %536 = vmatprep.subr.bf16.mxu0 %v616_v9 }
  0x17   :  { %567 = vmatpush3.bf16.msra.mxu1 %v577_v47  ;;  %537 = vmatpush3.bf16.msra.mxu0 %v577_v47 }
  0x18   :  { %560 = vmatprep.subr.bf16.mxu1 %v616_v9  ;;  %538 = vmatprep.subr.bf16.mxu0 %v616_v9 }
  0x1b   :  { %568 = vmatpush3.bf16.msra.mxu1 %v578_v48  ;;  %539 = vmatpush3.bf16.msra.mxu0 %v578_v48 }
  0x1c   :  { %561 = vmatprep.subr.bf16.mxu1 %v616_v9  ;;  %540 = vmatprep.subr.bf16.mxu0 %v616_v9 }
  0x1f   :  { %569 = vmatpush3.bf16.msra.mxu1 %v579_v49  ;;  %541 = vmatpush3.bf16.msra.mxu0 %v579_v49 }
  0x91   :  { %v38_v13 = vpop.xlane.xlu0 %37  ;;  %v34_v14 = vpop.xlane.xlu1 %33 }
  0x92   :  { %v47_v15 = vmul.f32 0.03125, %v38_v13  ;;  %v45_v16 = vmul.f32 0.03125, %v34_v14  ;;  %v462_v13 = vld [vmem:[%s836_s4] ss:$0 sm:$0xff] }
  0x94   :  { %v53_v17 = vsub.f32 %v490_v2, %v47_v15  ;;  %v51_v18 = vsub.f32 %v486_v3, %v45_v16 }
  0x95   :  { %v40_v19 = vpop.xlane.xlu0 %39  ;;  %v36_v20 = vpop.xlane.xlu1 %35 }
  0x96   :  { %v48_v21 = vmul.f32 0.03125, %v40_v19  ;;  %v665_v22 = vsel %vm59_vm0, %v53_v17, 0.0  ;;  %v46_v23 = vmul.f32 0.03125, %v36_v20  ;;  %v668_v24 = vsel %vm59_vm0, %v51_v18, 0.0 }
  0x97   :  { %v68_v25 = vmul.f32 %v665_v22, %v665_v22  ;;  %v66_v29 = vmul.f32 %v668_v24, %v668_v24 }
  0x98   :  { %v54_v26 = vsub.f32 %v491_v4, %v48_v21  ;;  %v52_v27 = vsub.f32 %v487_v5, %v46_v23 }
  0x99   :  { %76 = vadd.xlane.f32.xlu0 %v68_v25  ;;  %v42_v28 = vpop.xlane.xlu0 %41  ;;  %v44_v30 = vpop.xlane.xlu1 %43 }
  0x9a   :  { %v49_v31 = vmul.f32 0.03125, %v42_v28  ;;  %v675_v32 = vsel %vm59_vm0, %v54_v26, 0.0  ;;  %v50_v33 = vmul.f32 0.03125, %v44_v30  ;;  %v678_v34 = vsel %vm59_vm0, %v52_v27, 0.0 }
  0x9b   :  { %v69_v35 = vmul.f32 %v675_v32, %v675_v32  ;;  %v67_v38 = vmul.f32 %v678_v34, %v678_v34 }
  0x9c   :  { %v55_v36 = vsub.f32 %v494_v7, %v49_v31  ;;  %v56_v37 = vsub.f32 %v495_v8, %v50_v33 }
  0x9d   :  { %78 = vadd.xlane.f32.xlu1 %v69_v35  ;;  %72 = vadd.xlane.f32.xlu0 %v66_v29 }
  0x9e   :  { %v685_v39 = vsel %vm59_vm0, %v55_v36, 0.0  ;;  %v688_v40 = vsel %vm59_vm0, %v56_v37, 0.0 }
  0x9f   :  { %v70_v41 = vmul.f32 %v685_v39, %v685_v39  ;;  %v71_v42 = vmul.f32 %v688_v40, %v688_v40 }
  0xa1   :  { %80 = vadd.xlane.f32.xlu0 %v70_v41  ;;  %74 = vadd.xlane.f32.xlu1 %v67_v38 }
  0xa5   :  { %82 = vadd.xlane.f32.xlu1 %v71_v42 }
 0x126   :  { %v77_v50 = vpop.xlane.xlu0 %76 }
 0x127   :  { %v86_v51 = vmul.f32 0.03125, %v77_v50 }
 0x129   :  { %v92_v52 = vadd.f32 1e-05, %v86_v51 }
 0x12a   :  { %v73_v53 = vpop.xlane.xlu0 %72  ;;  %v79_v54 = vpop.xlane.xlu1 %78 }
 0x12b   :  { %580 = vrsqrt.f32 %v92_v52  ;;  %v84_v55 = vmul.f32 0.03125, %v73_v53  ;;  %v87_v56 = vmul.f32 0.03125, %v79_v54 }
 0x12d   :  { %v90_v57 = vadd.f32 1e-05, %v84_v55  ;;  %v93_v58 = vadd.f32 1e-05, %v87_v56 }
 0x12e   :  { %v81_v59 = vpop.xlane.xlu0 %80  ;;  %v75_v60 = vpop.xlane.xlu1 %74 }
 0x12f   :  { %582 = vrsqrt.f32 %v90_v57  ;;  %v88_v61 = vmul.f32 0.03125, %v81_v59  ;;  %v85_v62 = vmul.f32 0.03125, %v75_v60 }
 0x130   :  { %584 = vrsqrt.f32 %v93_v58 }
 0x131   :  { %v94_v63 = vadd.f32 1e-05, %v88_v61  ;;  %v91_v0 = vadd.f32 1e-05, %v85_v62 }
 0x132   :  { %v83_v1 = vpop.xlane.xlu1 %82 }
 0x133   :  { %586 = vrsqrt.f32 %v94_v63  ;;  %v89_v2 = vmul.f32 0.03125, %v83_v1 }
 0x134   :  { %588 = vrsqrt.f32 %v91_v0 }
 0x135   :  { %v581_v3 = vpop.eup %580  ;;  %v95_v4 = vadd.f32 1e-05, %v89_v2 }
 0x136   :  { %v104_v5 = vmul.f32 %v581_v3, %v665_v22 }
 0x137   :  { %590 = vrsqrt.f32 %v95_v4 }
 0x138   :  { %v117_v11 = vmul.f32 %v461_v6, %v104_v5 }
 0x139   :  { %v583_v7 = vpop.eup %582 }
 0x13a   :  { %v585_v8 = vpop.eup %584  ;;  %v102_v12 = vmul.f32 %v583_v7, %v668_v24  ;;  %v130_v18 = vadd.f32 %v462_v13, %v117_v11 }
 0x13b   :  { %v105_v10 = vmul.f32 %v585_v8, %v675_v32 }
 0x13c   :  { %v115_v21 = vmul.f32 %v461_v6, %v102_v12 }
 0x13d   :  { %v587_v14 = vpop.eup %586  ;;  %v118_v15 = vmul.f32 %v461_v6, %v105_v10 }
 0x13e   :  { %v589_v16 = vpop.eup %588  ;;  %v106_v17 = vmul.f32 %v587_v14, %v685_v39  ;;  %v128_v27 = vadd.f32 %v462_v13, %v115_v21 }
 0x13f   :  { %v131_v19 = vadd.f32 %v462_v13, %v118_v15  ;;  %v103_v20 = vmul.f32 %v589_v16, %v678_v34  ;;  %v463_v34 = vld [vmem:[%s837_s2] ss:$0 sm:$0xff] }
 0x140   :  { %v119_v24 = vmul.f32 %v461_v6, %v106_v17 }
 0x141   :  { %v591_v22 = vpop.eup %590  ;;  %v135_v23 = vpack.c.bf16 %v131_v19, %v130_v18  ;;  %v116_v25 = vmul.f32 %v461_v6, %v103_v20 }
 0x142   :  { %v107_v26 = vmul.f32 %v591_v22, %v688_v40  ;;  %v132_v31 = vadd.f32 %v462_v13, %v119_v24 }
 0x143   :  { %547 = vmatmul.mubr.bf16.vlgmr.msra.gmra.mrb[0].mxu1 %v135_v23  ;;  %v129_v28 = vadd.f32 %v462_v13, %v116_v25 }
 0x144   :  { %550 = vmatprep.mubr.msk.bf16.mxu1 %vm617_vm1, %v616_v9  ;;  %v120_v29 = vmul.f32 %v461_v6, %v107_v26 }
 0x145   :  { %v134_v30 = vpack.c.bf16 %v129_v28, %v128_v27 }
 0x146   :  { %v133_v32 = vadd.f32 %v462_v13, %v120_v29 }
 0x147   :  { %543 = vmatmul.mubr.bf16.vlgmr.msra.gmra.mrb[0].mxu0 %v134_v30 }
 0x148   :  { %v136_v33 = vpack.c.bf16 %v133_v32, %v132_v31 }
 0x14b   :  { %551 = vmatmul.mubr.bf16.gmra.mrb[4].mxu1 %v136_v33 }
 0x216   :  { %v250_v35 = vpop.f32.mrb[0].mxu1 }
 0x217   :  { %v748_v36 = vadd.f32 %v463_v34, %v250_v35  ;;  %v548_v37 = vpop.f32.mrb[1].mxu1 }
 0x218   :  { %v253_v38 = vpop.f32.mrb[2].mxu1 }
 0x219   :  { %v751_v39 = vmul.f32 0.70710677, %v748_v36  ;;  %v753_v9 = vadd.f32 %v463_v34, %v253_v38  ;;  %v549_v40 = vpop.f32.mrb[3].mxu1 }
 0x21a   :  { %v242_v41 = vpop.f32.mrb[0].mxu0 }
 0x21b   :  { %v279_v42 = vand.u32 2147483647, %v751_v39  ;;  %v757_v43 = vmul.f32 0.70710677, %v753_v9  ;;  %v759_v44 = vadd.f32 %v463_v34, %v242_v41  ;;  %v544_v45 = vpop.f32.mrb[1].mxu0  ;;  %vm399_vm2 = vcmp.lt.f32.partialorder %v751_v39, 0.0 }
 0x21c   :  { %v245_v49 = vpop.f32.mrb[2].mxu0 }
 0x21d   :  { %v285_v46 = vmul.f32 0.3275911, %v279_v42  ;;  %v280_v47 = vand.u32 2147483647, %v757_v43  ;;  %v763_v48 = vmul.f32 0.70710677, %v759_v44  ;;  %v766_v56 = vadd.f32 %v463_v34, %v245_v49 }
 0x21e   :  { %v258_v50 = vpop.f32.mrb[4].mxu1  ;;  %v545_v53 = vpop.f32.mrb[3].mxu0  ;;  %v363_v4 = vsub.f32 0.0, %v279_v42  ;;  %vm400_vm3 = vcmp.lt.f32.partialorder %v757_v43, 0.0 }
 0x21f   :  { %v291_v51 = vadd.f32 1.0, %v285_v46  ;;  %v286_v52 = vmul.f32 0.3275911, %v280_v47  ;;  %v552_v54 = vpop.f32.mrb[5].mxu1  ;;  %v277_v55 = vand.u32 2147483647, %v763_v48  ;;  %v768_v57 = vadd.f32 %v463_v34, %v258_v50 }
 0x220   :  { %v261_v58 = vpop.f32.mrb[6].mxu1  ;;  %v771_v62 = vmul.f32 0.70710677, %v766_v56  ;;  %v364_v11 = vsub.f32 0.0, %v280_v47  ;;  %v369_v13 = vmul.f32 %v363_v4, %v279_v42  ;;  %vm397_vm4 = vcmp.lt.f32.partialorder %v763_v48, 0.0 }
 0x221   :  { %592 = vrcp.f32 %v291_v51  ;;  %v292_v59 = vadd.f32 1.0, %v286_v52  ;;  %v553_v60 = vpop.f32.mrb[7].mxu1  ;;  %v283_v61 = vmul.f32 0.3275911, %v277_v55  ;;  %v774_v63 = vmul.f32 0.70710677, %v768_v57 }
 0x222   :  { %v278_v1 = vand.u32 2147483647, %v771_v62  ;;  %v778_v6 = vadd.f32 %v463_v34, %v261_v58  ;;  %v361_v16 = vsub.f32 0.0, %v277_v55  ;;  %v370_v20 = vmul.f32 %v364_v11, %v280_v47 }
 0x223   :  { %594 = vrcp.f32 %v292_v59  ;;  %v289_v0 = vadd.f32 1.0, %v283_v61  ;;  %v281_v2 = vand.u32 2147483647, %v774_v63  ;;  %v377_v21 = vmul.f32 1.442695, %v369_v13 }
 0x224   :  { %v284_v3 = vmul.f32 0.3275911, %v278_v1  ;;  %v781_v10 = vmul.f32 0.70710677, %v778_v6  ;;  %v367_v24 = vmul.f32 %v361_v16, %v277_v55  ;;  %v362_v27 = vsub.f32 0.0, %v278_v1 }
 0x225   :  { %596 = vrcp.f32 %v289_v0  ;;  %v287_v5 = vmul.f32 0.3275911, %v281_v2  ;;  %v365_v30 = vsub.f32 0.0, %v281_v2  ;;  %v379_v32 = vmul.f32 1.442695, %v370_v20 }
 0x226   :  { %v290_v7 = vadd.f32 1.0, %v284_v3  ;;  %v282_v14 = vand.u32 2147483647, %v781_v10  ;;  %v373_v38 = vmul.f32 1.442695, %v367_v24  ;;  %v368_v40 = vmul.f32 %v362_v27, %v278_v1 }
 0x227   :  { %v293_v8 = vadd.f32 1.0, %v287_v5  ;;  %v371_v47 = vmul.f32 %v365_v30, %v281_v2  ;;  %vm398_vm5 = vcmp.lt.f32.partialorder %v771_v62, 0.0  ;;  %v265_v48 = vmul.f32 0.5, %v759_v44 }
 0x228   :  { %598 = vrcp.f32 %v290_v7  ;;  %v288_v17 = vmul.f32 0.3275911, %v282_v14  ;;  %v366_v54 = vsub.f32 0.0, %v282_v14  ;;  %v375_v58 = vmul.f32 1.442695, %v368_v40 }
 0x229   :  { %600 = vrcp.f32 %v293_v8  ;;  %v381_v1 = vmul.f32 1.442695, %v371_v47  ;;  %vm401_vm6 = vcmp.lt.f32.partialorder %v774_v63, 0.0  ;;  %vm402_vm7 = vcmp.lt.f32.partialorder %v781_v10, 0.0 }
 0x22a   :  { %v294_v23 = vadd.f32 1.0, %v288_v17  ;;  %v372_v11 = vmul.f32 %v366_v54, %v282_v14 }
 0x22b   :  { %v593_v12 = vpop.eup %592 }
 0x22c   :  { %v309_v15 = vmul.f32 1.0614054, %v593_v12  ;;  %602 = vrcp.f32 %v294_v23  ;;  %v383_v14 = vmul.f32 1.442695, %v372_v11 }
 0x22d   :  { %v595_v18 = vpop.eup %594  ;;  %604 = vpow2.f32 %v377_v21 }
 0x22e   :  { %v315_v19 = vadd.f32 -1.4531521, %v309_v15  ;;  %v310_v22 = vmul.f32 1.0614054, %v595_v18  ;;  %606 = vpow2.f32 %v379_v32 }
 0x22f   :  { %v784_v25 = vpop.eup %596  ;;  %608 = vpow2.f32 %v373_v38 }
 0x230   :  { %v321_v26 = vmul.f32 %v593_v12, %v315_v19  ;;  %v316_v28 = vadd.f32 -1.4531521, %v310_v22  ;;  %v307_v29 = vmul.f32 1.0614054, %v784_v25  ;;  %610 = vpow2.f32 %v375_v58 }
 0x231   :  { %612 = vpow2.f32 %v381_v1 }
 0x232   :  { %v327_v31 = vadd.f32 1.4214138, %v321_v26  ;;  %v322_v33 = vmul.f32 %v595_v18, %v316_v28  ;;  %v313_v34 = vadd.f32 -1.4531521, %v307_v29  ;;  %v787_v35 = vpop.eup %598  ;;  %614 = vpow2.f32 %v383_v14 }
 0x233   :  { %v789_v41 = vpop.eup %600  ;;  %v308_v46 = vmul.f32 1.0614054, %v787_v35  ;;  %v270_v14 = vmul.f32 0.5, %v778_v6 }
 0x234   :  { %v333_v37 = vmul.f32 %v593_v12, %v327_v31  ;;  %v328_v42 = vadd.f32 1.4214138, %v322_v33  ;;  %v319_v45 = vmul.f32 %v784_v25, %v313_v34  ;;  %v311_v50 = vmul.f32 1.0614054, %v789_v41 }
 0x235   :  { %v314_v53 = vadd.f32 -1.4531521, %v308_v46 }
 0x236   :  { %v339_v49 = vadd.f32 -0.28449672, %v333_v37  ;;  %v334_v51 = vmul.f32 %v595_v18, %v328_v42  ;;  %v325_v52 = vadd.f32 1.4214138, %v319_v45  ;;  %v317_v59 = vadd.f32 -1.4531521, %v311_v50  ;;  %v797_v4 = vpop.eup %602 }
 0x237   :  { %v320_v0 = vmul.f32 %v787_v35, %v314_v53  ;;  %v312_v16 = vmul.f32 1.0614054, %v797_v4  ;;  %v605_v17 = vpop.eup %604 }
 0x238   :  { %v345_v55 = vmul.f32 %v593_v12, %v339_v49  ;;  %v340_v60 = vadd.f32 -0.28449672, %v334_v51  ;;  %v331_v61 = vmul.f32 %v784_v25, %v325_v52  ;;  %v323_v2 = vmul.f32 %v789_v41, %v317_v59 }
 0x239   :  { %v326_v8 = vadd.f32 1.4214138, %v320_v0  ;;  %v318_v26 = vadd.f32 -1.4531521, %v312_v16  ;;  %v267_v51 = vmul.f32 0.5, %v748_v36 }
 0x23a   :  { %v351_v3 = vadd.f32 0.2548296, %v345_v55  ;;  %v346_v5 = vmul.f32 %v595_v18, %v340_v60  ;;  %v337_v7 = vadd.f32 -0.28449672, %v331_v61  ;;  %v329_v15 = vadd.f32 1.4214138, %v323_v2 }
 0x23b   :  { %v332_v21 = vmul.f32 %v787_v35, %v326_v8  ;;  %v324_v31 = vmul.f32 %v797_v4, %v318_v26  ;;  %v268_v60 = vmul.f32 0.5, %v753_v9 }
 0x23c   :  { %v357_v13 = vmul.f32 %v593_v12, %v351_v3  ;;  %v352_v19 = vadd.f32 0.2548296, %v346_v5  ;;  %v343_v20 = vmul.f32 %v784_v25, %v337_v7  ;;  %v335_v23 = vmul.f32 %v789_v41, %v329_v15  ;;  %v607_v12 = vpop.eup %606 }
 0x23d   :  { %v338_v28 = vadd.f32 -0.28449672, %v332_v21  ;;  %v609_v37 = vpop.eup %608 }
 0x23e   :  { %v387_v22 = vmul.f32 %v605_v17, %v357_v13  ;;  %v358_v24 = vmul.f32 %v595_v18, %v352_v19  ;;  %v349_v27 = vadd.f32 0.2548296, %v343_v20  ;;  %v341_v30 = vadd.f32 -0.28449672, %v335_v23  ;;  %v611_v54 = vpop.eup %610 }
 0x23f   :  { %v344_v34 = vmul.f32 %v787_v35, %v338_v28  ;;  %v330_v18 = vadd.f32 1.4214138, %v324_v31  ;;  %v613_v59 = vpop.eup %612  ;;  %v266_v20 = vmul.f32 0.5, %v766_v56  ;;  %v269_v56 = vmul.f32 0.5, %v768_v57 }
 0x240   :  { %v393_v29 = vsub.f32 1.0, %v387_v22  ;;  %v388_v32 = vmul.f32 %v607_v12, %v358_v24  ;;  %v355_v33 = vmul.f32 %v784_v25, %v349_v27  ;;  %v347_v40 = vmul.f32 %v789_v41, %v341_v30  ;;  %v615_v17 = vpop.eup %614 }
 0x241   :  { %v350_v46 = vadd.f32 0.2548296, %v344_v34  ;;  %v336_v50 = vmul.f32 %v797_v4, %v330_v18 }
 0x242   :  { %v405_v38 = vsub.f32 0.0, %v393_v29  ;;  %v394_v42 = vsub.f32 1.0, %v388_v32  ;;  %v385_v45 = vmul.f32 %v609_v37, %v355_v33  ;;  %v353_v49 = vadd.f32 0.2548296, %v347_v40 }
 0x243   :  { %v356_v53 = vmul.f32 %v787_v35, %v350_v46  ;;  %v342_v58 = vadd.f32 -0.28449672, %v336_v50 }
 0x244   :  { %v411_v47 = vsel %vm399_vm2, %v405_v38, %v393_v29  ;;  %v406_v25 = vsub.f32 0.0, %v394_v42  ;;  %v391_v52 = vsub.f32 1.0, %v385_v45  ;;  %v359_v55 = vmul.f32 %v789_v41, %v353_v49 }
 0x245   :  { %v417_v39 = vadd.f32 1.0, %v411_v47  ;;  %v386_v1 = vmul.f32 %v611_v54, %v356_v53  ;;  %v348_v2 = vmul.f32 %v797_v4, %v342_v58 }
 0x246   :  { %v412_v61 = vsel %vm400_vm3, %v406_v25, %v394_v42  ;;  %v403_v0 = vsub.f32 0.0, %v391_v52  ;;  %v389_v36 = vmul.f32 %v613_v59, %v359_v55 }
 0x247   :  { %v418_v3 = vadd.f32 1.0, %v412_v61  ;;  %v392_v5 = vsub.f32 1.0, %v386_v1  ;;  %v423_v7 = vmul.f32 %v417_v39, %v267_v51  ;;  %v354_v11 = vadd.f32 0.2548296, %v348_v2 }
 0x248   :  { %v409_v35 = vsel %vm397_vm4, %v403_v0, %v391_v52  ;;  %v395_v43 = vsub.f32 1.0, %v389_v36 }
 0x249   :  { %v424_v8 = vmul.f32 %v418_v3, %v268_v60  ;;  %v404_v41 = vsub.f32 0.0, %v392_v5  ;;  %v415_v9 = vadd.f32 1.0, %v409_v35  ;;  %v360_v16 = vmul.f32 %v797_v4, %v354_v11 }
 0x24a   :  { %v407_v15 = vsub.f32 0.0, %v395_v43 }
 0x24b   :  { %v504_v13 = vpack.c.bf16 %v424_v8, %v423_v7  ;;  %v410_v19 = vsel %vm398_vm5, %v404_v41, %v392_v5  ;;  %v390_v22 = vmul.f32 %v615_v17, %v360_v16  ;;  %v421_v62 = vmul.f32 %v415_v9, %v265_v48 }
 0x24c   :  { %v416_v21 = vadd.f32 1.0, %v410_v19  ;;  %v413_v26 = vsel %vm401_vm6, %v407_v15, %v395_v43 }
 0x24d   :  { %513 = vst [vmem:[%s838_s5 + $0x8] sm:$0xff] %v504_v13   ;;  %v396_v24 = vsub.f32 1.0, %v390_v22  ;;  %v419_v28 = vadd.f32 1.0, %v413_v26 }
 0x24e   :  { %v422_v23 = vmul.f32 %v416_v21, %v266_v20 }
 0x24f   :  { %v408_v4 = vsub.f32 0.0, %v396_v24  ;;  %v425_v63 = vmul.f32 %v419_v28, %v269_v56 }
 0x250   :  { %v499_v27 = vpack.c.bf16 %v422_v23, %v421_v62 }
 0x251   :  { %v414_v44 = vsel %vm402_vm7, %v408_v4, %v396_v24 }
 0x252   :  { %500 = vst [vmem:[%s838_s5] sm:$0xff] %v499_v27   ;;  %v420_v12 = vadd.f32 1.0, %v414_v44 }
 0x254   :  { %v426_v29 = vmul.f32 %v420_v12, %v270_v14 }
 0x256   :  { %v509_v30 = vpack.c.bf16 %v426_v29, %v425_v63 }
 0x258   :  { %514 = vst [vmem:[%s838_s5 + $0x10] sm:$0xff] %v509_v30  }

// kernel: mae_forward.32
= control target key start
LH: loop header
LB: loop body
LE: loop exit
PB: predicated region body
PF: predicated region fallthrough
CT: control target
= control target key end

     0   :  { %v345_v0 = vmov 0.0   ;;  %vm346_vm0 = vmmov 0   ;;  %s429_s1 = inlined_call_operand.vmem [shape: bf16[128,128], index: 1, kind: input, shape index: {}]   ;;  %s430_s0 = inlined_call_operand.vmem [shape: bf16[48,128], index: 0, kind: input, shape index: {}]   ;;  %s431_s3 = inlined_call_operand.vmem [shape: bf16[48,128], index: 3, kind: input, shape index: {}]   ;;  %s432_s2 = inlined_call_operand.vmem [shape: f32[1,128], index: 2, kind: input, shape index: {}]   ;;  %s433_s4 = inlined_call_operand.vmem [shape: bf16[48,128], index: 4, kind: output, shape index: {}]  }
   0x1   :  { %316 = vmatprep.subr.bf16.mxu1 %v345_v0  ;;  %v334_v1 = vld [vmem:[%s429_s1] sm:$0xff]   ;;  %288 = vmatprep.subr.bf16.mxu0 %v345_v0  ;;  %v335_v2 = vld [vmem:[%s429_s1 + $0x8] sm:$0xff]   ;;  %v336_v3 = vld [vmem:[%s429_s1 + $0x10] sm:$0xff]  }
   0x2   :  { %308 = vmatprep.mubr.msk.bf16.mxu1 %vm346_vm0, %v345_v0  ;;  %304 = vmatprep.mubr.msk.bf16.mxu0 %vm346_vm0, %v345_v0  ;;  %v337_v4 = vld [vmem:[%s429_s1 + $0x18] sm:$0xff]   ;;  %v338_v5 = vld [vmem:[%s429_s1 + $0x20] sm:$0xff]   ;;  %v339_v6 = vld [vmem:[%s429_s1 + $0x28] sm:$0xff]  }
   0x3   :  { %324 = vmatpush3.bf16.msra.mxu1 %v334_v1  ;;  %289 = vmatpush3.bf16.msra.mxu0 %v334_v1  ;;  %v340_v7 = vld [vmem:[%s429_s1 + $0x30] sm:$0xff]   ;;  %v341_v8 = vld [vmem:[%s429_s1 + $0x38] sm:$0xff]   ;;  %v342_v9 = vld [vmem:[%s430_s0 + $0x8] sm:$0xff]  }
   0x4   :  { %317 = vmatprep.subr.bf16.mxu1 %v345_v0  ;;  %290 = vmatprep.subr.bf16.mxu0 %v345_v0  ;;  %v343_v10 = vld [vmem:[%s430_s0] sm:$0xff]   ;;  %v344_v11 = vld [vmem:[%s430_s0 + $0x10] sm:$0xff]   ;;  %v273_v13 = vld [vmem:[%s431_s3 + $0x8] sm:$0xff]  }
   0x5   :  { %v247_v12 = vld [vmem:[%s431_s3] sm:$0xff]   ;;  %v252_v17 = vunpack.c.l.bf16 %v273_v13  ;;  %v253_v21 = vunpack.c.h.bf16 %v273_v13  ;;  %v274_v35 = vld [vmem:[%s431_s3 + $0x10] sm:$0xff]  }
   0x6   :  { %v222_v14 = vld [vmem:[%s432_s2] ss:$0 sm:$0xff]  ;;  %v248_v15 = vunpack.c.l.bf16 %v247_v12  ;;  %v249_v24 = vunpack.c.h.bf16 %v247_v12  ;;  %v256_v40 = vunpack.c.l.bf16 %v274_v35  ;;  %v257_v42 = vunpack.c.h.bf16 %v274_v35 }
   0x7   :  { %325 = vmatpush3.bf16.msra.mxu1 %v335_v2  ;;  %291 = vmatpush3.bf16.msra.mxu0 %v335_v2 }
   0x8   :  { %318 = vmatprep.subr.bf16.mxu1 %v345_v0  ;;  %292 = vmatprep.subr.bf16.mxu0 %v345_v0 }
   0xb   :  { %326 = vmatpush3.bf16.msra.mxu1 %v336_v3  ;;  %293 = vmatpush3.bf16.msra.mxu0 %v336_v3 }
   0xc   :  { %319 = vmatprep.subr.bf16.mxu1 %v345_v0  ;;  %294 = vmatprep.subr.bf16.mxu0 %v345_v0 }
   0xf   :  { %327 = vmatpush3.bf16.msra.mxu1 %v337_v4  ;;  %295 = vmatpush3.bf16.msra.mxu0 %v337_v4 }
  0x10   :  { %320 = vmatprep.subr.bf16.mxu1 %v345_v0  ;;  %296 = vmatprep.subr.bf16.mxu0 %v345_v0 }
  0x13   :  { %328 = vmatpush3.bf16.msra.mxu1 %v338_v5  ;;  %297 = vmatpush3.bf16.msra.mxu0 %v338_v5 }
  0x14   :  { %321 = vmatprep.subr.bf16.mxu1 %v345_v0  ;;  %298 = vmatprep.subr.bf16.mxu0 %v345_v0 }
  0x17   :  { %329 = vmatpush3.bf16.msra.mxu1 %v339_v6  ;;  %299 = vmatpush3.bf16.msra.mxu0 %v339_v6 }
  0x18   :  { %322 = vmatprep.subr.bf16.mxu1 %v345_v0  ;;  %300 = vmatprep.subr.bf16.mxu0 %v345_v0 }
  0x1b   :  { %330 = vmatpush3.bf16.msra.mxu1 %v340_v7  ;;  %301 = vmatpush3.bf16.msra.mxu0 %v340_v7 }
  0x1c   :  { %323 = vmatprep.subr.bf16.mxu1 %v345_v0  ;;  %302 = vmatprep.subr.bf16.mxu0 %v345_v0 }
  0x1f   :  { %331 = vmatpush3.bf16.msra.mxu1 %v341_v8  ;;  %303 = vmatpush3.bf16.msra.mxu0 %v341_v8 }
  0x22   :  { %309 = vmatmul.mubr.bf16.vlgmr.msra.gmra.mrb[0].mxu1 %v342_v9  ;;  %305 = vmatmul.mubr.bf16.vlgmr.msra.gmra.mrb[0].mxu0 %v343_v10 }
  0x23   :  { %312 = vmatprep.mubr.msk.bf16.mxu1 %vm346_vm0, %v345_v0 }
  0x2a   :  { %313 = vmatmul.mubr.bf16.gmra.mrb[4].mxu1 %v344_v11 }
  0xf5   :  { %v155_v16 = vpop.f32.mrb[0].mxu1  ;;  %v147_v18 = vpop.f32.mrb[0].mxu0 }
  0xf6   :  { %v156_v19 = vadd.f32 %v222_v14, %v155_v16  ;;  %v310_v20 = vpop.f32.mrb[1].mxu1  ;;  %v148_v22 = vadd.f32 %v222_v14, %v147_v18  ;;  %v306_v23 = vpop.f32.mrb[1].mxu0 }
  0xf7   :  { %v158_v25 = vpop.f32.mrb[2].mxu1  ;;  %v150_v26 = vpop.f32.mrb[2].mxu0 }
  0xf8   :  { %v159_v27 = vadd.f32 %v222_v14, %v158_v25  ;;  %v311_v28 = vpop.f32.mrb[3].mxu1  ;;  %v182_v29 = vadd.f32 %v248_v15, %v148_v22  ;;  %v151_v30 = vadd.f32 %v222_v14, %v150_v26  ;;  %v307_v31 = vpop.f32.mrb[3].mxu0  ;;  %v184_v32 = vadd.f32 %v252_v17, %v156_v19 }
  0xfa   :  { %v185_v33 = vadd.f32 %v253_v21, %v159_v27  ;;  %v183_v34 = vadd.f32 %v249_v24, %v151_v30 }
  0xfc   :  { %v266_v36 = vpack.c.bf16 %v185_v33, %v184_v32  ;;  %v261_v37 = vpack.c.bf16 %v183_v34, %v182_v29 }
  0xfd   :  { %v163_v38 = vpop.f32.mrb[4].mxu1 }
  0xfe   :  { %275 = vst [vmem:[%s433_s4 + $0x8] sm:$0xff] %v266_v36   ;;  %262 = vst [vmem:[%s433_s4] sm:$0xff] %v261_v37   ;;  %v164_v39 = vadd.f32 %v222_v14, %v163_v38  ;;  %v314_v41 = vpop.f32.mrb[5].mxu1 }
  0xff   :  { %v166_v43 = vpop.f32.mrb[6].mxu1 }
 0x100   :  { %v167_v44 = vadd.f32 %v222_v14, %v166_v43  ;;  %v315_v45 = vpop.f32.mrb[7].mxu1  ;;  %v186_v46 = vadd.f32 %v256_v40, %v164_v39 }
 0x102   :  { %v187_v47 = vadd.f32 %v257_v42, %v167_v44 }
 0x104   :  { %v271_v48 = vpack.c.bf16 %v187_v47, %v186_v46 }
 0x106   :  { %276 = vst [vmem:[%s433_s4 + $0x10] sm:$0xff] %v271_v48  }

// kernel: mae_forward.35
= control target key start
LH: loop header
LB: loop body
LE: loop exit
PB: predicated region body
PF: predicated region fallthrough
CT: control target
= control target key end

     0   :  { %v377_v9 = vmov 0.0   ;;  %v57_v11 = vlaneseq  ;;  %vm378_vm1 = vmmov 0   ;;  %s527_s0 = inlined_call_operand.vmem [shape: bf16[48,128], index: 0, kind: input, shape index: {}]   ;;  %s528_s1 = inlined_call_operand.vmem [shape: bf16[128,128], index: 1, kind: input, shape index: {}]   ;;  %s529_s3 = inlined_call_operand.vmem [shape: f32[1,128], index: 3, kind: input, shape index: {}]   ;;  %s530_s4 = inlined_call_operand.vmem [shape: f32[1,128], index: 4, kind: input, shape index: {}]   ;;  %s531_s2 = inlined_call_operand.vmem [shape: f32[1,128], index: 2, kind: input, shape index: {}]   ;;  %s532_s5 = inlined_call_operand.vmem [shape: f32[48,128], index: 5, kind: output, shape index: {}]  }
   0x1   :  { %v298_v0 = vld [vmem:[%s527_s0 + $0x8] sm:$0xff]   ;;  %v287_v1 = vld [vmem:[%s527_s0] sm:$0xff]   ;;  %v299_v6 = vld [vmem:[%s527_s0 + $0x10] sm:$0xff]   ;;  %339 = vmatprep.subr.bf16.mxu1 %v377_v9  ;;  %311 = vmatprep.subr.bf16.mxu0 %v377_v9 }
   0x2   :  { %v292_v2 = vunpack.c.l.bf16 %v298_v0  ;;  %v288_v3 = vunpack.c.l.bf16 %v287_v1  ;;  %v293_v4 = vunpack.c.h.bf16 %v298_v0  ;;  %v289_v5 = vunpack.c.h.bf16 %v287_v1  ;;  %v357_v10 = vld [vmem:[%s528_s1] sm:$0xff]   ;;  %v358_v43 = vld [vmem:[%s528_s1 + $0x8] sm:$0xff]   ;;  %v359_v44 = vld [vmem:[%s528_s1 + $0x10] sm:$0xff]   ;;  %331 = vmatprep.mubr.msk.bf16.mxu1 %vm378_vm1, %v377_v9  ;;  %327 = vmatprep.mubr.msk.bf16.mxu0 %vm378_vm1, %v377_v9 }
   0x3   :  { %v296_v7 = vunpack.c.l.bf16 %v299_v6  ;;  %v297_v8 = vunpack.c.h.bf16 %v299_v6  ;;  %347 = vmatpush3.bf16.msra.mxu1 %v357_v10  ;;  %312 = vmatpush3.bf16.msra.mxu0 %v357_v10  ;;  %v58_v12 = vand.u32 127, %v57_v11  ;;  %v360_v45 = vld [vmem:[%s528_s1 + $0x18] sm:$0xff]   ;;  %v361_v46 = vld [vmem:[%s528_s1 + $0x20] sm:$0xff]   ;;  %v362_v47 = vld [vmem:[%s528_s1 + $0x28] sm:$0xff]  }
   0x4   :  { %37 = vadd.xlane.f32.xlu0 %v292_v2  ;;  %33 = vadd.xlane.f32.xlu1 %v288_v3  ;;  %v363_v48 = vld [vmem:[%s528_s1 + $0x30] sm:$0xff]   ;;  %v364_v49 = vld [vmem:[%s528_s1 + $0x38] sm:$0xff]   ;;  %v275_v6 = vld [vmem:[%s529_s3] ss:$0 sm:$0xff] }
   0x5   :  { %340 = vmatprep.subr.bf16.mxu1 %v377_v9  ;;  %313 = vmatprep.subr.bf16.mxu0 %v377_v9  ;;  %vm59_vm0 = vcmp.lt.s32.totalorder %v58_v12, 32 }
   0x7   :  { %348 = vmatpush3.bf16.msra.mxu1 %v358_v43  ;;  %314 = vmatpush3.bf16.msra.mxu0 %v358_v43 }
   0x8   :  { %39 = vadd.xlane.f32.xlu0 %v293_v4  ;;  %35 = vadd.xlane.f32.xlu1 %v289_v5 }
   0x9   :  { %341 = vmatprep.subr.bf16.mxu1 %v377_v9  ;;  %315 = vmatprep.subr.bf16.mxu0 %v377_v9 }
   0xb   :  { %349 = vmatpush3.bf16.msra.mxu1 %v359_v44  ;;  %316 = vmatpush3.bf16.msra.mxu0 %v359_v44 }
   0xc   :  { %41 = vadd.xlane.f32.xlu0 %v296_v7  ;;  %43 = vadd.xlane.f32.xlu1 %v297_v8 }
   0xd   :  { %342 = vmatprep.subr.bf16.mxu1 %v377_v9  ;;  %317 = vmatprep.subr.bf16.mxu0 %v377_v9 }
   0xf   :  { %350 = vmatpush3.bf16.msra.mxu1 %v360_v45  ;;  %318 = vmatpush3.bf16.msra.mxu0 %v360_v45 }
  0x10   :  { %343 = vmatprep.subr.bf16.mxu1 %v377_v9  ;;  %319 = vmatprep.subr.bf16.mxu0 %v377_v9 }
  0x13   :  { %351 = vmatpush3.bf16.msra.mxu1 %v361_v46  ;;  %320 = vmatpush3.bf16.msra.mxu0 %v361_v46 }
  0x14   :  { %344 = vmatprep.subr.bf16.mxu1 %v377_v9  ;;  %321 = vmatprep.subr.bf16.mxu0 %v377_v9 }
  0x17   :  { %352 = vmatpush3.bf16.msra.mxu1 %v362_v47  ;;  %322 = vmatpush3.bf16.msra.mxu0 %v362_v47 }
  0x18   :  { %345 = vmatprep.subr.bf16.mxu1 %v377_v9  ;;  %323 = vmatprep.subr.bf16.mxu0 %v377_v9 }
  0x1b   :  { %353 = vmatpush3.bf16.msra.mxu1 %v363_v48  ;;  %324 = vmatpush3.bf16.msra.mxu0 %v363_v48 }
  0x1c   :  { %346 = vmatprep.subr.bf16.mxu1 %v377_v9  ;;  %325 = vmatprep.subr.bf16.mxu0 %v377_v9 }
  0x1f   :  { %354 = vmatpush3.bf16.msra.mxu1 %v364_v49  ;;  %326 = vmatpush3.bf16.msra.mxu0 %v364_v49 }
  0x91   :  { %v38_v13 = vpop.xlane.xlu0 %37  ;;  %v34_v14 = vpop.xlane.xlu1 %33 }
  0x92   :  { %v47_v15 = vmul.f32 0.03125, %v38_v13  ;;  %v45_v16 = vmul.f32 0.03125, %v34_v14  ;;  %v276_v13 = vld [vmem:[%s530_s4] ss:$0 sm:$0xff] }
  0x94   :  { %v53_v17 = vsub.f32 %v292_v2, %v47_v15  ;;  %v51_v18 = vsub.f32 %v288_v3, %v45_v16 }
  0x95   :  { %v40_v19 = vpop.xlane.xlu0 %39  ;;  %v36_v20 = vpop.xlane.xlu1 %35 }
  0x96   :  { %v48_v21 = vmul.f32 0.03125, %v40_v19  ;;  %v426_v22 = vsel %vm59_vm0, %v53_v17, 0.0  ;;  %v46_v23 = vmul.f32 0.03125, %v36_v20  ;;  %v429_v24 = vsel %vm59_vm0, %v51_v18, 0.0 }
  0x97   :  { %v68_v25 = vmul.f32 %v426_v22, %v426_v22  ;;  %v66_v29 = vmul.f32 %v429_v24, %v429_v24 }
  0x98   :  { %v54_v26 = vsub.f32 %v293_v4, %v48_v21  ;;  %v52_v27 = vsub.f32 %v289_v5, %v46_v23 }
  0x99   :  { %76 = vadd.xlane.f32.xlu0 %v68_v25  ;;  %v42_v28 = vpop.xlane.xlu0 %41  ;;  %v44_v30 = vpop.xlane.xlu1 %43 }
  0x9a   :  { %v49_v31 = vmul.f32 0.03125, %v42_v28  ;;  %v436_v32 = vsel %vm59_vm0, %v54_v26, 0.0  ;;  %v50_v33 = vmul.f32 0.03125, %v44_v30  ;;  %v439_v34 = vsel %vm59_vm0, %v52_v27, 0.0 }
  0x9b   :  { %v69_v35 = vmul.f32 %v436_v32, %v436_v32  ;;  %v67_v38 = vmul.f32 %v439_v34, %v439_v34 }
  0x9c   :  { %v55_v36 = vsub.f32 %v296_v7, %v49_v31  ;;  %v56_v37 = vsub.f32 %v297_v8, %v50_v33 }
  0x9d   :  { %78 = vadd.xlane.f32.xlu1 %v69_v35  ;;  %72 = vadd.xlane.f32.xlu0 %v66_v29 }
  0x9e   :  { %v446_v39 = vsel %vm59_vm0, %v55_v36, 0.0  ;;  %v449_v40 = vsel %vm59_vm0, %v56_v37, 0.0 }
  0x9f   :  { %v70_v41 = vmul.f32 %v446_v39, %v446_v39  ;;  %v71_v42 = vmul.f32 %v449_v40, %v449_v40 }
  0xa1   :  { %80 = vadd.xlane.f32.xlu0 %v70_v41  ;;  %74 = vadd.xlane.f32.xlu1 %v67_v38 }
  0xa5   :  { %82 = vadd.xlane.f32.xlu1 %v71_v42 }
 0x126   :  { %v77_v50 = vpop.xlane.xlu0 %76 }
 0x127   :  { %v86_v51 = vmul.f32 0.03125, %v77_v50 }
 0x129   :  { %v92_v52 = vadd.f32 1e-05, %v86_v51 }
 0x12a   :  { %v73_v53 = vpop.xlane.xlu0 %72  ;;  %v79_v54 = vpop.xlane.xlu1 %78 }
 0x12b   :  { %365 = vrsqrt.f32 %v92_v52  ;;  %v84_v55 = vmul.f32 0.03125, %v73_v53  ;;  %v87_v56 = vmul.f32 0.03125, %v79_v54 }
 0x12d   :  { %v90_v57 = vadd.f32 1e-05, %v84_v55  ;;  %v93_v58 = vadd.f32 1e-05, %v87_v56 }
 0x12e   :  { %v81_v59 = vpop.xlane.xlu0 %80  ;;  %v75_v60 = vpop.xlane.xlu1 %74 }
 0x12f   :  { %367 = vrsqrt.f32 %v90_v57  ;;  %v88_v61 = vmul.f32 0.03125, %v81_v59  ;;  %v85_v62 = vmul.f32 0.03125, %v75_v60 }
 0x130   :  { %369 = vrsqrt.f32 %v93_v58 }
 0x131   :  { %v94_v63 = vadd.f32 1e-05, %v88_v61  ;;  %v91_v0 = vadd.f32 1e-05, %v85_v62 }
 0x132   :  { %v83_v1 = vpop.xlane.xlu1 %82 }
 0x133   :  { %371 = vrsqrt.f32 %v94_v63  ;;  %v89_v2 = vmul.f32 0.03125, %v83_v1 }
 0x134   :  { %373 = vrsqrt.f32 %v91_v0 }
 0x135   :  { %v366_v3 = vpop.eup %365  ;;  %v95_v4 = vadd.f32 1e-05, %v89_v2 }
 0x136   :  { %v104_v5 = vmul.f32 %v366_v3, %v426_v22 }
 0x137   :  { %375 = vrsqrt.f32 %v95_v4 }
 0x138   :  { %v117_v11 = vmul.f32 %v275_v6, %v104_v5 }
 0x139   :  { %v368_v7 = vpop.eup %367 }
 0x13a   :  { %v370_v8 = vpop.eup %369  ;;  %v102_v12 = vmul.f32 %v368_v7, %v429_v24  ;;  %v130_v18 = vadd.f32 %v276_v13, %v117_v11 }
 0x13b   :  { %v105_v10 = vmul.f32 %v370_v8, %v436_v32 }
 0x13c   :  { %v115_v21 = vmul.f32 %v275_v6, %v102_v12 }
 0x13d   :  { %v372_v14 = vpop.eup %371  ;;  %v118_v15 = vmul.f32 %v275_v6, %v105_v10 }
 0x13e   :  { %v374_v16 = vpop.eup %373  ;;  %v106_v17 = vmul.f32 %v372_v14, %v446_v39  ;;  %v128_v27 = vadd.f32 %v276_v13, %v115_v21 }
 0x13f   :  { %v131_v19 = vadd.f32 %v276_v13, %v118_v15  ;;  %v103_v20 = vmul.f32 %v374_v16, %v439_v34  ;;  %v277_v34 = vld [vmem:[%s531_s2] ss:$0 sm:$0xff] }
 0x140   :  { %v119_v24 = vmul.f32 %v275_v6, %v106_v17 }
 0x141   :  { %v376_v22 = vpop.eup %375  ;;  %v135_v23 = vpack.c.bf16 %v131_v19, %v130_v18  ;;  %v116_v25 = vmul.f32 %v275_v6, %v103_v20 }
 0x142   :  { %v107_v26 = vmul.f32 %v376_v22, %v449_v40  ;;  %v132_v31 = vadd.f32 %v276_v13, %v119_v24 }
 0x143   :  { %332 = vmatmul.mubr.bf16.vlgmr.msra.gmra.mrb[0].mxu1 %v135_v23  ;;  %v129_v28 = vadd.f32 %v276_v13, %v116_v25 }
 0x144   :  { %335 = vmatprep.mubr.msk.bf16.mxu1 %vm378_vm1, %v377_v9  ;;  %v120_v29 = vmul.f32 %v275_v6, %v107_v26 }
 0x145   :  { %v134_v30 = vpack.c.bf16 %v129_v28, %v128_v27 }
 0x146   :  { %v133_v32 = vadd.f32 %v276_v13, %v120_v29 }
 0x147   :  { %328 = vmatmul.mubr.bf16.vlgmr.msra.gmra.mrb[0].mxu0 %v134_v30 }
 0x148   :  { %v136_v33 = vpack.c.bf16 %v133_v32, %v132_v31 }
 0x14b   :  { %336 = vmatmul.mubr.bf16.gmra.mrb[4].mxu1 %v136_v33 }
 0x216   :  { %v250_v35 = vpop.f32.mrb[0].mxu1 }
 0x217   :  { %v251_v36 = vadd.f32 %v277_v34, %v250_v35  ;;  %v333_v37 = vpop.f32.mrb[1].mxu1 }
 0x218   :  { %v253_v38 = vpop.f32.mrb[2].mxu1 }
 0x219   :  { %267 = vst [vmem:[%s532_s5 + $0x10] sm:$0xff] %v251_v36  ;;  %v254_v9 = vadd.f32 %v277_v34, %v253_v38  ;;  %v334_v39 = vpop.f32.mrb[3].mxu1 }
 0x21a   :  { %v242_v40 = vpop.f32.mrb[0].mxu0 }
 0x21b   :  { %268 = vst [vmem:[%s532_s5 + $0x18] sm:$0xff] %v254_v9  ;;  %v243_v41 = vadd.f32 %v277_v34, %v242_v40  ;;  %v329_v42 = vpop.f32.mrb[1].mxu0 }
 0x21c   :  { %v245_v43 = vpop.f32.mrb[2].mxu0 }
 0x21d   :  { %265 = vst [vmem:[%s532_s5] sm:$0xff] %v243_v41  ;;  %v246_v44 = vadd.f32 %v277_v34, %v245_v43  ;;  %v330_v45 = vpop.f32.mrb[3].mxu0 }
 0x21e   :  { %v258_v46 = vpop.f32.mrb[4].mxu1 }
 0x21f   :  { %266 = vst [vmem:[%s532_s5 + $0x8] sm:$0xff] %v246_v44  ;;  %v259_v47 = vadd.f32 %v277_v34, %v258_v46  ;;  %v337_v48 = vpop.f32.mrb[5].mxu1 }
 0x220   :  { %v261_v49 = vpop.f32.mrb[6].mxu1 }
 0x221   :  { %269 = vst [vmem:[%s532_s5 + $0x20] sm:$0xff] %v259_v47  ;;  %v262_v50 = vadd.f32 %v277_v34, %v261_v49  ;;  %v338_v51 = vpop.f32.mrb[7].mxu1 }
 0x223   :  { %270 = vst [vmem:[%s532_s5 + $0x28] sm:$0xff] %v262_v50 }

// kernel: mae_forward.31
= control target key start
LH: loop header
LB: loop body
LE: loop exit
PB: predicated region body
PF: predicated region fallthrough
CT: control target
= control target key end

     0   :  { %vm20_vm0 = vcmask 7168   ;;  %vm787_vm2 = vcmask 195584   ;;  %vm1516_vm3 = vcmask 1043456   ;;  %s4062_s1 = inlined_call_operand.vmem [shape: bf16[8,24,128], index: 1, kind: input, shape index: {}]   ;;  %s4063_s0 = inlined_call_operand.vmem [shape: bf16[8,24,128], index: 0, kind: input, shape index: {}]   ;;  %s4064_s2 = inlined_call_operand.vmem [shape: bf16[8,24,128], index: 2, kind: input, shape index: {}]   ;;  %s4065_s3 = inlined_call_operand.vmem [shape: bf16[8,24,128], index: 3, kind: output, shape index: {}]  }
   0x1   :  { %v2841_v0 = vld [vmem:[%s4062_s1] sm:$0xff]   ;;  %v2842_v1 = vld [vmem:[%s4062_s1 + $0xc] sm:$0xff]   ;;  %v2843_v2 = vld [vmem:[%s4062_s1 + $0x8] ss:$0 sps:$4 sm:$0xff]  }
   0x2   :  { %2700 = vmatprep.subr.bf16.mxu0 %v2841_v0  ;;  %2708 = vmatprep.subr.bf16.mxu1 %v2842_v1  ;;  %v2844_v3 = vld [vmem:[%s4062_s1 + $0x14] ss:$0 sps:$4 sm:$0xff]   ;;  %v93_v4 = vld [vmem:[%s4063_s0] sm:$0xf]  ;;  %v94_v5 = vld [vmem:[%s4063_s0 + $0x4] sm:$0xf] }
   0x3   :  { %2701 = vmatpush3.bf16.xpose.msra.mxu0 %v2841_v0  ;;  %2709 = vmatpush3.bf16.xpose.msra.mxu1 %v2842_v1  ;;  %v117_v6 = vmul.bf16 1052065461, %v93_v4  ;;  %v118_v7 = vmul.bf16 1052065461, %v94_v5  ;;  %v96_v8 = vld [vmem:[%s4063_s0 + $0xc] sm:$0xf] }
   0x4   :  { %2702 = vmatprep.subr.bf16.mxu0 %v2843_v2  ;;  %2710 = vmatprep.subr.bf16.mxu1 %v2844_v3  ;;  %v97_v9 = vld [vmem:[%s4063_s0 + $0x10] sm:$0xf]  ;;  %v120_v10 = vmul.bf16 1052065461, %v96_v8  ;;  %v95_v13 = vld [vmem:[%s4063_s0 + $0x8] sm:$0xf] }
   0x5   :  { %v2453_v11 = vcombine.low %v117_v6, %v118_v7  ;;  %v121_v12 = vmul.bf16 1052065461, %v97_v9  ;;  %v98_v14 = vld [vmem:[%s4063_s0 + $0x14] sm:$0xf]  ;;  %v2845_v16 = vld [vmem:[%s4062_s1 + $0x18] sm:$0xff]   ;;  %v2846_v17 = vld [vmem:[%s4062_s1 + $0x24] sm:$0xff]  }
   0x6   :  { %v119_v18 = vmul.bf16 1052065461, %v95_v13  ;;  %v99_v19 = vld [vmem:[%s4063_s0 + $0x18] sm:$0xf]  ;;  %v122_v20 = vmul.bf16 1052065461, %v98_v14 }
   0x7   :  { %2704 = vmatprep.mubr.bf16.mxu0 %v2453_v11  ;;  %v2457_v15 = vcombine.low %v120_v10, %v121_v12  ;;  %v100_v21 = vld [vmem:[%s4063_s0 + $0x1c] sm:$0xf]  ;;  %v102_v22 = vld [vmem:[%s4063_s0 + $0x24] sm:$0xf]  ;;  %v103_v23 = vld [vmem:[%s4063_s0 + $0x28] sm:$0xf] }
   0x8   :  { %v123_v24 = vmul.bf16 1052065461, %v99_v19  ;;  %v124_v25 = vmul.bf16 1052065461, %v100_v21  ;;  %v2454_v26 = vcombine.low %v119_v18, %v119_v18  ;;  %v126_v27 = vmul.bf16 1052065461, %v102_v22 }
   0x9   :  { %2712 = vmatprep.mubr.bf16.mxu1 %v2457_v15  ;;  %v127_v28 = vmul.bf16 1052065461, %v103_v23  ;;  %v2458_v29 = vcombine.low %v122_v20, %v122_v20  ;;  %v2847_v30 = vld [vmem:[%s4062_s1 + $0x20] ss:$0 sps:$4 sm:$0xff]   ;;  %v2848_v31 = vld [vmem:[%s4062_s1 + $0x2c] ss:$0 sps:$4 sm:$0xff]  }
   0xa   :  { %v2461_v32 = vcombine.low %v123_v24, %v124_v25  ;;  %v101_v34 = vld [vmem:[%s4063_s0 + $0x20] sm:$0xf]  ;;  %v104_v35 = vld [vmem:[%s4063_s0 + $0x2c] sm:$0xf]  ;;  %v2849_v36 = vld [vmem:[%s4062_s1 + $0x30] sm:$0xff]  }
   0xb   :  { %2703 = vmatpush3.bf16.xpose.msra.mxu0 %v2843_v2  ;;  %2711 = vmatpush3.bf16.xpose.msra.mxu1 %v2844_v3  ;;  %v2465_v33 = vcombine.low %v126_v27, %v127_v28  ;;  %v2850_v37 = vld [vmem:[%s4062_s1 + $0x3c] sm:$0xff]   ;;  %v125_v38 = vmul.bf16 1052065461, %v101_v34  ;;  %v105_v39 = vld [vmem:[%s4063_s0 + $0x30] sm:$0xf]  ;;  %v2853_v56 = vld [vmem:[%s4062_s1 + $0x48] sm:$0xff]  }
   0xc   :  { %2716 = vmatprep.subr.bf16.mxu0 %v2845_v16  ;;  %2724 = vmatprep.subr.bf16.mxu1 %v2846_v17  ;;  %v106_v40 = vld [vmem:[%s4063_s0 + $0x34] sm:$0xf]  ;;  %v128_v41 = vmul.bf16 1052065461, %v104_v35  ;;  %v108_v42 = vld [vmem:[%s4063_s0 + $0x3c] sm:$0xf] }
   0xd   :  { %v109_v43 = vld [vmem:[%s4063_s0 + $0x40] sm:$0xf]  ;;  %v129_v44 = vmul.bf16 1052065461, %v105_v39  ;;  %v130_v45 = vmul.bf16 1052065461, %v106_v40  ;;  %v2462_v46 = vcombine.low %v125_v38, %v125_v38 }
   0xe   :  { %v132_v47 = vmul.bf16 1052065461, %v108_v42  ;;  %v133_v48 = vmul.bf16 1052065461, %v109_v43  ;;  %v2466_v49 = vcombine.low %v128_v41, %v128_v41  ;;  %v2851_v50 = vld [vmem:[%s4062_s1 + $0x38] ss:$0 sps:$4 sm:$0xff]  }
   0xf   :  { %v2852_v51 = vld [vmem:[%s4062_s1 + $0x44] ss:$0 sps:$4 sm:$0xff]   ;;  %v2469_v52 = vcombine.low %v129_v44, %v130_v45  ;;  %v107_v54 = vld [vmem:[%s4063_s0 + $0x38] sm:$0xf]  ;;  %v111_v59 = vld [vmem:[%s4063_s0 + $0x48] sm:$0xf] }
  0x10   :  { %v2473_v53 = vcombine.low %v132_v47, %v133_v48  ;;  %v110_v55 = vld [vmem:[%s4063_s0 + $0x44] sm:$0xf]  ;;  %v2854_v57 = vld [vmem:[%s4062_s1 + $0x54] sm:$0xff]   ;;  %v131_v58 = vmul.bf16 1052065461, %v107_v54 }
  0x11   :  { %v112_v60 = vld [vmem:[%s4063_s0 + $0x4c] sm:$0xf]  ;;  %v134_v61 = vmul.bf16 1052065461, %v110_v55  ;;  %v114_v62 = vld [vmem:[%s4063_s0 + $0x54] sm:$0xf] }
  0x12   :  { %2705 = vmatmul.mubr.bf16.vlgmr.msra.gmra.mrb[0].mxu0 %v2454_v26  ;;  %2713 = vmatmul.mubr.bf16.vlgmr.msra.gmra.mrb[0].mxu1 %v2458_v29  ;;  %v115_v63 = vld [vmem:[%s4063_s0 + $0x58] sm:$0xf]  ;;  %v135_v0 = vmul.bf16 1052065461, %v111_v59  ;;  %v136_v1 = vmul.bf16 1052065461, %v112_v60  ;;  %v2470_v2 = vcombine.low %v131_v58, %v131_v58 }
  0x13   :  { %2717 = vmatpush3.bf16.xpose.msra.mxu0 %v2845_v16  ;;  %2725 = vmatpush3.bf16.xpose.msra.mxu1 %v2846_v17  ;;  %v138_v3 = vmul.bf16 1052065461, %v114_v62  ;;  %v139_v4 = vmul.bf16 1052065461, %v115_v63  ;;  %v2474_v5 = vcombine.low %v134_v61, %v134_v61  ;;  %v2855_v6 = vld [vmem:[%s4062_s1 + $0x50] ss:$0 sps:$4 sm:$0xff]   ;;  %v734_v17 = vlaneseq }
  0x14   :  { %2718 = vmatprep.subr.bf16.mxu0 %v2847_v30  ;;  %2726 = vmatprep.subr.bf16.mxu1 %v2848_v31  ;;  %v2856_v7 = vld [vmem:[%s4062_s1 + $0x5c] ss:$0 sps:$4 sm:$0xff]   ;;  %v2477_v8 = vcombine.low %v135_v0, %v136_v1  ;;  %v113_v10 = vld [vmem:[%s4063_s0 + $0x50] sm:$0xf]  ;;  %v3017_v16 = vmov -inf   ;;  %v3019_v60 = vmov 0.0  }
  0x15   :  { %2720 = vmatprep.mubr.bf16.mxu0 %v2461_v32  ;;  %2728 = vmatprep.mubr.bf16.mxu1 %v2465_v33  ;;  %v2481_v9 = vcombine.low %v138_v3, %v139_v4  ;;  %v116_v11 = vld [vmem:[%s4063_s0 + $0x5c] sm:$0xf]  ;;  %v137_v12 = vmul.bf16 1052065461, %v113_v10  ;;  %23 = vst.msk [vmem:[#allocation2 + $0x10] sm:$0xff] %vm20_vm0, %v3017_v16  ;;  %21 = vst.msk [vmem:[#allocation2] sm:$0xff] %vm20_vm0, %v3017_v16 }
  0x16   :  { %v140_v13 = vmul.bf16 1052065461, %v116_v11  ;;  %22 = vst.msk [vmem:[#allocation2 + $0x8] sm:$0xff] %vm20_vm0, %v3017_v16  ;;  %24 = vst.msk [vmem:[#allocation2 + $0x18] sm:$0xff] %vm20_vm0, %v3017_v16  ;;  %v3184_v18 = vand.u32 127, %v734_v17 }
  0x17   :  { %v2478_v14 = vcombine.low %v137_v12, %v137_v12  ;;  %25 = vst.msk [vmem:[#allocation2 + $0x20] sm:$0xff] %vm20_vm0, %v3017_v16  ;;  %26 = vst.msk [vmem:[#allocation2 + $0x28] sm:$0xff] %vm20_vm0, %v3017_v16 }
  0x18   :  { %v2482_v15 = vcombine.low %v140_v13, %v140_v13  ;;  %27 = vst.msk [vmem:[#allocation2 + $0x30] sm:$0xff] %vm20_vm0, %v3017_v16  ;;  %28 = vst.msk [vmem:[#allocation2 + $0x38] sm:$0xff] %vm20_vm0, %v3017_v16  ;;  %vm738_vm1 = vcmp.lt.s32.totalorder %v3184_v18, 17 }
  0x19   :  { %29 = vst.msk [vmem:[#allocation2 + $0x40] sm:$0xff] %vm20_vm0, %v3017_v16  ;;  %30 = vst.msk [vmem:[#allocation2 + $0x48] sm:$0xff] %vm20_vm0, %v3017_v16 }
  0x1a   :  { %31 = vst.msk [vmem:[#allocation2 + $0x50] sm:$0xff] %vm20_vm0, %v3017_v16  ;;  %32 = vst.msk [vmem:[#allocation2 + $0x58] sm:$0xff] %vm20_vm0, %v3017_v16 }
  0x1b   :  { %2719 = vmatpush3.bf16.xpose.msra.mxu0 %v2847_v30  ;;  %2727 = vmatpush3.bf16.xpose.msra.mxu1 %v2848_v31  ;;  %33 = vst.msk [vmem:[#allocation2 + $0x60] sm:$0xff] %vm20_vm0, %v3017_v16  ;;  %34 = vst.msk [vmem:[#allocation2 + $0x68] sm:$0xff] %vm20_vm0, %v3017_v16 }
  0x1c   :  { %2732 = vmatprep.subr.bf16.mxu0 %v2849_v36  ;;  %2740 = vmatprep.subr.bf16.mxu1 %v2850_v37  ;;  %35 = vst.msk [vmem:[#allocation2 + $0x70] sm:$0xff] %vm20_vm0, %v3017_v16  ;;  %36 = vst.msk [vmem:[#allocation2 + $0x78] sm:$0xff] %vm20_vm0, %v3017_v16 }
  0x1d   :  { %37 = vst.msk [vmem:[#allocation2 + $0x80] sm:$0xff] %vm20_vm0, %v3017_v16  ;;  %38 = vst.msk [vmem:[#allocation2 + $0x88] sm:$0xff] %vm20_vm0, %v3017_v16 }
  0x1e   :  { %39 = vst.msk [vmem:[#allocation2 + $0x90] sm:$0xff] %vm20_vm0, %v3017_v16  ;;  %40 = vst.msk [vmem:[#allocation2 + $0x98] sm:$0xff] %vm20_vm0, %v3017_v16 }
  0x1f   :  { %41 = vst.msk [vmem:[#allocation2 + $0xa0] sm:$0xff] %vm20_vm0, %v3017_v16  ;;  %42 = vst.msk [vmem:[#allocation2 + $0xa8] sm:$0xff] %vm20_vm0, %v3017_v16 }
  0x20   :  { %43 = vst.msk [vmem:[#allocation2 + $0xb0] sm:$0xff] %vm20_vm0, %v3017_v16  ;;  %44 = vst.msk [vmem:[#allocation2 + $0xb8] sm:$0xff] %vm20_vm0, %v3017_v16 }
  0x21   :  { %47 = vst.msk [vmem:[#allocation3 + $0x10] sm:$0xff] %vm20_vm0, %v3019_v60  ;;  %45 = vst.msk [vmem:[#allocation3] sm:$0xff] %vm20_vm0, %v3019_v60 }
  0x22   :  { %2721 = vmatmul.mubr.bf16.vlgmr.msra.gmra.mrb[4].mxu0 %v2462_v46  ;;  %2729 = vmatmul.mubr.bf16.vlgmr.msra.gmra.mrb[4].mxu1 %v2466_v49  ;;  %46 = vst.msk [vmem:[#allocation3 + $0x8] sm:$0xff] %vm20_vm0, %v3019_v60  ;;  %48 = vst.msk [vmem:[#allocation3 + $0x18] sm:$0xff] %vm20_vm0, %v3019_v60 }
  0x23   :  { %2733 = vmatpush3.bf16.xpose.msra.mxu0 %v2849_v36  ;;  %2741 = vmatpush3.bf16.xpose.msra.mxu1 %v2850_v37  ;;  %49 = vst.msk [vmem:[#allocation3 + $0x20] sm:$0xff] %vm20_vm0, %v3019_v60  ;;  %50 = vst.msk [vmem:[#allocation3 + $0x28] sm:$0xff] %vm20_vm0, %v3019_v60 }
  0x24   :  { %2734 = vmatprep.subr.bf16.mxu0 %v2851_v50  ;;  %2742 = vmatprep.subr.bf16.mxu1 %v2852_v51  ;;  %51 = vst.msk [vmem:[#allocation3 + $0x30] sm:$0xff] %vm20_vm0, %v3019_v60  ;;  %52 = vst.msk [vmem:[#allocation3 + $0x38] sm:$0xff] %vm20_vm0, %v3019_v60 }
  0x25   :  { %2736 = vmatprep.mubr.bf16.mxu0 %v2469_v52  ;;  %2744 = vmatprep.mubr.bf16.mxu1 %v2473_v53  ;;  %v3018_v53 = vmov 0   ;;  %53 = vst.msk [vmem:[#allocation3 + $0x40] sm:$0xff] %vm20_vm0, %v3019_v60  ;;  %54 = vst.msk [vmem:[#allocation3 + $0x48] sm:$0xff] %vm20_vm0, %v3019_v60 }
  0x26   :  { %2839 = vset.pattern.permute.xlu1 %v3018_v53  ;;  %2840 = vset.pattern.permute.xlu0 %v3018_v53  ;;  %55 = vst.msk [vmem:[#allocation3 + $0x50] sm:$0xff] %vm20_vm0, %v3019_v60  ;;  %56 = vst.msk [vmem:[#allocation3 + $0x58] sm:$0xff] %vm20_vm0, %v3019_v60  ;;  %v3365_v53 = vld [vmem:[#allocation2 + $0x28] sm:$0xff] }
  0x27   :  { %57 = vst.msk [vmem:[#allocation3 + $0x60] sm:$0xff] %vm20_vm0, %v3019_v60  ;;  %58 = vst.msk [vmem:[#allocation3 + $0x68] sm:$0xff] %vm20_vm0, %v3019_v60 }
  0x28   :  { %59 = vst.msk [vmem:[#allocation3 + $0x70] sm:$0xff] %vm20_vm0, %v3019_v60  ;;  %60 = vst.msk [vmem:[#allocation3 + $0x78] sm:$0xff] %vm20_vm0, %v3019_v60 }
  0x29   :  { %61 = vst.msk [vmem:[#allocation3 + $0x80] sm:$0xff] %vm20_vm0, %v3019_v60  ;;  %62 = vst.msk [vmem:[#allocation3 + $0x88] sm:$0xff] %vm20_vm0, %v3019_v60 }
  0x2a   :  { %63 = vst.msk [vmem:[#allocation3 + $0x90] sm:$0xff] %vm20_vm0, %v3019_v60  ;;  %64 = vst.msk [vmem:[#allocation3 + $0x98] sm:$0xff] %vm20_vm0, %v3019_v60 }
  0x2b   :  { %2735 = vmatpush3.bf16.xpose.msra.mxu0 %v2851_v50  ;;  %2743 = vmatpush3.bf16.xpose.msra.mxu1 %v2852_v51  ;;  %65 = vst.msk [vmem:[#allocation3 + $0xa0] sm:$0xff] %vm20_vm0, %v3019_v60  ;;  %66 = vst.msk [vmem:[#allocation3 + $0xa8] sm:$0xff] %vm20_vm0, %v3019_v60 }
  0x2c   :  { %2748 = vmatprep.subr.bf16.mxu0 %v2853_v56  ;;  %2756 = vmatprep.subr.bf16.mxu1 %v2854_v57  ;;  %67 = vst.msk [vmem:[#allocation3 + $0xb0] sm:$0xff] %vm20_vm0, %v3019_v60  ;;  %68 = vst.msk [vmem:[#allocation3 + $0xb8] sm:$0xff] %vm20_vm0, %v3019_v60 }
  0x32   :  { %2737 = vmatmul.mubr.bf16.vlgmr.msra.gmra.mrb[8].mxu0 %v2470_v2  ;;  %2745 = vmatmul.mubr.bf16.vlgmr.msra.gmra.mrb[8].mxu1 %v2474_v5 }
  0x33   :  { %2749 = vmatpush3.bf16.xpose.msra.mxu0 %v2853_v56  ;;  %2757 = vmatpush3.bf16.xpose.msra.mxu1 %v2854_v57 }
  0x34   :  { %2750 = vmatprep.subr.bf16.mxu0 %v2855_v6  ;;  %2758 = vmatprep.subr.bf16.mxu1 %v2856_v7 }
  0x35   :  { %2752 = vmatprep.mubr.bf16.mxu0 %v2477_v8  ;;  %2760 = vmatprep.mubr.bf16.mxu1 %v2481_v9 }
  0x3b   :  { %2751 = vmatpush3.bf16.xpose.msra.mxu0 %v2855_v6  ;;  %2759 = vmatpush3.bf16.xpose.msra.mxu1 %v2856_v7 }
  0x42   :  { %2753 = vmatmul.mubr.bf16.vlgmr.msra.gmra.mrb[12].mxu0 %v2478_v14  ;;  %2761 = vmatmul.mubr.bf16.vlgmr.msra.gmra.mrb[12].mxu1 %v2482_v15 }
  0xe5   :  { %v2706_v19 = vpop.f32.mrb[0].mxu0  ;;  %v2714_v21 = vpop.f32.mrb[0].mxu1 }
  0xe6   :  { %v3189_v20 = vsel %vm738_vm1, %v2706_v19, -1e+30  ;;  %v243_v22 = vpop.f32.mrb[1].mxu0  ;;  %v311_v24 = vpop.f32.mrb[1].mxu1  ;;  %v3201_v30 = vsel %vm738_vm1, %v2714_v21, -1e+30 }
  0xe7   :  { %v3193_v23 = vsel %vm738_vm1, %v243_v22, -1e+30  ;;  %v2707_v25 = vpop.f32.mrb[2].mxu0  ;;  %v2715_v26 = vpop.f32.mrb[2].mxu1  ;;  %v794_v27 = vsel %vm787_vm2, %v3189_v20, -inf  ;;  %v803_v33 = vsel %vm787_vm2, %v3201_v30, -inf }
  0xe8   :  { %v246_v28 = vpop.f32.mrb[3].mxu0  ;;  %v788_v29 = vsel %vm787_vm2, %v3193_v23, -inf  ;;  %v314_v31 = vpop.f32.mrb[3].mxu1  ;;  %795 = vmax.xlane.f32.xlu1 %v794_v27  ;;  %v3213_v35 = vsel %vm738_vm1, %v311_v24, -1e+30 }
  0xe9   :  { %v3205_v32 = vsel %vm738_vm1, %v246_v28, -1e+30  ;;  %789 = vmax.xlane.f32.xlu0 %v788_v29  ;;  %v3217_v36 = vsel %vm738_vm1, %v314_v31, -1e+30  ;;  %v797_v37 = vsel %vm787_vm2, %v3213_v35, -inf }
  0xea   :  { %v791_v34 = vsel %vm787_vm2, %v3205_v32, -inf  ;;  %v800_v38 = vsel %vm787_vm2, %v3217_v36, -inf }
  0xec   :  { %804 = vmax.xlane.f32.xlu1 %v803_v33 }
  0xed   :  { %792 = vmax.xlane.f32.xlu0 %v791_v34 }
  0xf0   :  { %798 = vmax.xlane.f32.xlu1 %v797_v37 }
  0xf1   :  { %801 = vmax.xlane.f32.xlu0 %v800_v38 }
  0xf5   :  { %v2722_v39 = vpop.f32.mrb[4].mxu0  ;;  %v2730_v41 = vpop.f32.mrb[4].mxu1 }
  0xf6   :  { %v3225_v40 = vsel %vm738_vm1, %v2722_v39, -1e+30  ;;  %v379_v42 = vpop.f32.mrb[5].mxu0  ;;  %v3229_v43 = vsel %vm738_vm1, %v2730_v41, -1e+30  ;;  %v447_v44 = vpop.f32.mrb[5].mxu1 }
  0xf7   :  { %v2723_v45 = vpop.f32.mrb[6].mxu0  ;;  %v2731_v46 = vpop.f32.mrb[6].mxu1  ;;  %v821_v47 = vsel %vm787_vm2, %v3229_v43, -inf  ;;  %v812_v48 = vsel %vm787_vm2, %v3225_v40, -inf  ;;  %v3237_v50 = vsel %vm738_vm1, %v379_v42, -1e+30 }
  0xf8   :  { %v382_v49 = vpop.f32.mrb[7].mxu0  ;;  %v3241_v51 = vsel %vm738_vm1, %v447_v44, -1e+30  ;;  %v450_v52 = vpop.f32.mrb[7].mxu1  ;;  %822 = vmax.xlane.f32.xlu1 %v821_v47  ;;  %813 = vmax.xlane.f32.xlu0 %v812_v48  ;;  %v806_v55 = vsel %vm787_vm2, %v3237_v50, -inf  ;;  %v3355_v46 = vld [vmem:[#allocation2 + $0x10] sm:$0xff] }
  0xf9   :  { %v815_v54 = vsel %vm787_vm2, %v3241_v51, -inf  ;;  %v3249_v56 = vsel %vm738_vm1, %v450_v52, -1e+30  ;;  %v3253_v57 = vsel %vm738_vm1, %v382_v49, -1e+30  ;;  %v3357_v47 = vld [vmem:[#allocation2] sm:$0xff] }
  0xfa   :  { %v818_v58 = vsel %vm787_vm2, %v3249_v56, -inf  ;;  %v809_v59 = vsel %vm787_vm2, %v3253_v57, -inf }
  0xfc   :  { %816 = vmax.xlane.f32.xlu1 %v815_v54  ;;  %807 = vmax.xlane.f32.xlu0 %v806_v55  ;;  %v3367_v54 = vld [vmem:[#allocation2 + $0x8] sm:$0xff] }
 0x100   :  { %819 = vmax.xlane.f32.xlu0 %v818_v58  ;;  %810 = vmax.xlane.f32.xlu1 %v809_v59 }
 0x105   :  { %v2738_v61 = vpop.f32.mrb[8].mxu0  ;;  %v2746_v63 = vpop.f32.mrb[8].mxu1 }
 0x106   :  { %v3285_v62 = vsel %vm738_vm1, %v2738_v61, -1e+30  ;;  %v515_v0 = vpop.f32.mrb[9].mxu0  ;;  %v3289_v1 = vsel %vm738_vm1, %v2746_v63, -1e+30  ;;  %v583_v2 = vpop.f32.mrb[9].mxu1 }
 0x107   :  { %v2739_v3 = vpop.f32.mrb[10].mxu0  ;;  %v2747_v4 = vpop.f32.mrb[10].mxu1  ;;  %v839_v5 = vsel %vm787_vm2, %v3289_v1, -inf  ;;  %v830_v6 = vsel %vm787_vm2, %v3285_v62, -inf  ;;  %v3297_v8 = vsel %vm738_vm1, %v515_v0, -1e+30 }
 0x108   :  { %v518_v7 = vpop.f32.mrb[11].mxu0  ;;  %v3301_v9 = vsel %vm738_vm1, %v583_v2, -1e+30  ;;  %v586_v10 = vpop.f32.mrb[11].mxu1  ;;  %840 = vmax.xlane.f32.xlu1 %v839_v5  ;;  %831 = vmax.xlane.f32.xlu0 %v830_v6  ;;  %v824_v12 = vsel %vm787_vm2, %v3297_v8, -inf  ;;  %v3381_v61 = vld [vmem:[#allocation2 + $0x18] sm:$0xff] }
 0x109   :  { %v833_v11 = vsel %vm787_vm2, %v3301_v9, -inf  ;;  %v3309_v13 = vsel %vm738_vm1, %v586_v10, -1e+30  ;;  %v3313_v14 = vsel %vm738_vm1, %v518_v7, -1e+30  ;;  %v3383_v63 = vld [vmem:[#allocation2 + $0x20] sm:$0xff] }
 0x10a   :  { %v836_v15 = vsel %vm787_vm2, %v3309_v13, -inf  ;;  %v827_v16 = vsel %vm787_vm2, %v3313_v14, -inf  ;;  %v3401_v5 = vld [vmem:[#allocation2 + $0x58] sm:$0xff]  ;;  %v3403_v6 = vld [vmem:[#allocation2 + $0x40] sm:$0xff] }
 0x10c   :  { %834 = vmax.xlane.f32.xlu1 %v833_v11  ;;  %825 = vmax.xlane.f32.xlu0 %v824_v12 }
 0x110   :  { %837 = vmax.xlane.f32.xlu0 %v836_v15  ;;  %828 = vmax.xlane.f32.xlu1 %v827_v16  ;;  %v3412_v15 = vld [vmem:[#allocation2 + $0x48] sm:$0xff]  ;;  %v3414_v16 = vld [vmem:[#allocation2 + $0x30] sm:$0xff] }
 0x115   :  { %v2754_v17 = vpop.f32.mrb[12].mxu0  ;;  %v2762_v21 = vpop.f32.mrb[12].mxu1 }
 0x116   :  { %v3321_v19 = vsel %vm738_vm1, %v2754_v17, -1e+30  ;;  %v651_v22 = vpop.f32.mrb[13].mxu0  ;;  %v719_v24 = vpop.f32.mrb[13].mxu1  ;;  %v3349_v42 = vsel %vm738_vm1, %v2762_v21, -1e+30 }
 0x117   :  { %4077 = vst [vmem:[#allocation5_spill] sm:$0xff] %v3321_v19  ;;  %v2755_v25 = vpop.f32.mrb[14].mxu0  ;;  %v3325_v26 = vsel %vm738_vm1, %v719_v24, -1e+30  ;;  %v2763_v27 = vpop.f32.mrb[14].mxu1  ;;  %v848_v28 = vsel %vm787_vm2, %v3321_v19, -inf }
 0x118   :  { %4078 = vst [vmem:[#allocation6_spill] sm:$0xff] %v3325_v26  ;;  %v654_v29 = vpop.f32.mrb[15].mxu0  ;;  %v3331_v31 = vsel %vm738_vm1, %v651_v22, -1e+30  ;;  %v722_v33 = vpop.f32.mrb[15].mxu1  ;;  %849 = vmax.xlane.f32.xlu0 %v848_v28  ;;  %v851_v34 = vsel %vm787_vm2, %v3325_v26, -inf }
 0x119   :  { %v3337_v37 = vsel %vm738_vm1, %v654_v29, -1e+30  ;;  %852 = vmax.xlane.f32.xlu1 %v851_v34  ;;  %v842_v38 = vsel %vm787_vm2, %v3331_v31, -inf  ;;  %v3343_v39 = vsel %vm738_vm1, %v722_v33, -1e+30  ;;  %4080 = vst [vmem:[#allocation8_spill] sm:$0xff] %v3349_v42 }
 0x11a   :  { %4079 = vst [vmem:[#allocation7_spill] sm:$0xff] %v3343_v39  ;;  %v845_v41 = vsel %vm787_vm2, %v3337_v37, -inf  ;;  %v854_v44 = vsel %vm787_vm2, %v3343_v39, -inf  ;;  %v857_v45 = vsel %vm787_vm2, %v3349_v42, -inf  ;;  %v3428_v25 = vld [vmem:[#allocation2 + $0x50] sm:$0xff]  ;;  %v3430_v27 = vld [vmem:[#allocation2 + $0x38] sm:$0xff] }
 0x11b   :  { %v2857_v33 = vld [vmem:[%s4064_s2] sm:$0xff]  }
 0x11c   :  { %843 = vmax.xlane.f32.xlu0 %v842_v38  ;;  %2764 = vmatprep.subr.bf16.mxu0 %v2857_v33 }
 0x11d   :  { %846 = vmax.xlane.f32.xlu1 %v845_v41  ;;  %2765 = vmatpush3.bf16.msra.mxu0 %v2857_v33  ;;  %v2858_v41 = vld [vmem:[%s4064_s2 + $0x8] ss:$0 sps:$4 sm:$0xff]  }
 0x11e   :  { %2828 = vmatprep.subr.msk.bf16.mxu0 %vm1516_vm3, %v2858_v41 }
 0x120   :  { %855 = vmax.xlane.f32.xlu0 %v854_v44  ;;  %v2859_v44 = vld [vmem:[%s4064_s2 + $0xc] sm:$0xff]  }
 0x121   :  { %858 = vmax.xlane.f32.xlu1 %v857_v45  ;;  %v3458_v45 = vld [vmem:[#allocation2 + $0x88] sm:$0xff]  ;;  %2772 = vmatprep.subr.bf16.mxu1 %v2859_v44 }
 0x122   :  { %4081 = vst [vmem:[#allocation9_spill] sm:$0xff] %v3458_v45  ;;  %2773 = vmatpush3.bf16.msra.mxu1 %v2859_v44 }
 0x175   :  { %v796_v48 = vpop.xlane.xlu1 %795 }
 0x176   :  { %v790_v49 = vpop.xlane.xlu0 %789  ;;  %v3360_v52 = vmax.f32 %v3355_v46, %v796_v48  ;;  %v3460_v48 = vld [vmem:[#allocation2 + $0x70] sm:$0xff] }
 0x177   :  { %v3363_v18 = vmax.f32 %v3357_v47, %v790_v49  ;;  %v1518_v49 = vsel %vm1516_vm3, %v2858_v41, 0 }
 0x178   :  { %2080 = vst.msk [vmem:[#allocation2 + $0x10] sm:$0xff] %vm20_vm0, %v3360_v52  ;;  %968 = vperm.xlu1 %2839, %v3360_v52   ;;  %2767 = vmatpush3.bf16.msra.mxu0 %v1518_v49  ;;  %v3494_v49 = vld [vmem:[#allocation2 + $0x80] sm:$0xff] }
 0x179   :  { %2078 = vst.msk [vmem:[#allocation2] sm:$0xff] %vm20_vm0, %v3363_v18  ;;  %958 = vperm.xlu0 %2840, %v3363_v18   ;;  %v805_v55 = vpop.xlane.xlu1 %804  ;;  %4085 = vst [vmem:[#allocation13_spill] sm:$0xff] %v3494_v49 }
 0x17a   :  { %v793_v58 = vpop.xlane.xlu0 %792  ;;  %v3376_v59 = vmax.f32 %v3365_v53, %v805_v55 }
 0x17b   :  { %v3379_v60 = vmax.f32 %v3367_v54, %v793_v58 }
 0x17c   :  { %2083 = vst.msk [vmem:[#allocation2 + $0x28] sm:$0xff] %vm20_vm0, %v3376_v59  ;;  %983 = vperm.xlu1 %2839, %v3376_v59  }
 0x17d   :  { %2079 = vst.msk [vmem:[#allocation2 + $0x8] sm:$0xff] %vm20_vm0, %v3379_v60  ;;  %v799_v0 = vpop.xlane.xlu1 %798 }
 0x17e   :  { %v802_v2 = vpop.xlane.xlu0 %801  ;;  %v3391_v3 = vmax.f32 %v3381_v61, %v799_v0  ;;  %v3465_v0 = vld [vmem:[#allocation2 + $0x78] sm:$0xff] }
 0x17f   :  { %v3394_v4 = vmax.f32 %v3383_v63, %v802_v2  ;;  %4082 = vst [vmem:[#allocation10_spill] sm:$0xff] %v3465_v0  ;;  %v2860_v2 = vld [vmem:[%s4064_s2 + $0x14] ss:$0 sps:$4 sm:$0xff]  }
 0x180   :  { %2081 = vst.msk [vmem:[#allocation2 + $0x18] sm:$0xff] %vm20_vm0, %v3391_v3  ;;  %973 = vperm.xlu1 %2839, %v3391_v3   ;;  %2829 = vmatprep.subr.msk.bf16.mxu1 %vm1516_vm3, %v2860_v2 }
 0x181   :  { %2082 = vst.msk [vmem:[#allocation2 + $0x20] sm:$0xff] %vm20_vm0, %v3394_v4 }
 0x184   :  { %963 = vperm.xlu1 %2839, %v3379_v60  }
 0x185   :  { %v823_v7 = vpop.xlane.xlu1 %822  ;;  %v814_v10 = vpop.xlane.xlu0 %813 }
 0x186   :  { %v3407_v11 = vmax.f32 %v3401_v5, %v823_v7  ;;  %v3410_v12 = vmax.f32 %v3403_v6, %v814_v10 }
 0x188   :  { %2089 = vst.msk [vmem:[#allocation2 + $0x58] sm:$0xff] %vm20_vm0, %v3407_v11  ;;  %2086 = vst.msk [vmem:[#allocation2 + $0x40] sm:$0xff] %vm20_vm0, %v3410_v12  ;;  %1013 = vperm.xlu0 %2840, %v3407_v11   ;;  %978 = vperm.xlu1 %2839, %v3394_v4  }
 0x189   :  { %v817_v17 = vpop.xlane.xlu1 %816  ;;  %v808_v21 = vpop.xlane.xlu0 %807 }
 0x18a   :  { %v3423_v22 = vmax.f32 %v3412_v15, %v817_v17  ;;  %v3426_v24 = vmax.f32 %v3414_v16, %v808_v21  ;;  %v3476_v17 = vld [vmem:[#allocation2 + $0x60] sm:$0xff]  ;;  %v1584_v21 = vsel %vm1516_vm3, %v2860_v2, 0 }
 0x18b   :  { %2775 = vmatpush3.bf16.msra.mxu1 %v1584_v21 }
 0x18c   :  { %2087 = vst.msk [vmem:[#allocation2 + $0x48] sm:$0xff] %vm20_vm0, %v3423_v22  ;;  %2084 = vst.msk [vmem:[#allocation2 + $0x30] sm:$0xff] %vm20_vm0, %v3426_v24  ;;  %1003 = vperm.xlu0 %2840, %v3423_v22   ;;  %998 = vperm.xlu1 %2839, %v3410_v12  }
 0x18d   :  { %v820_v28 = vpop.xlane.xlu0 %819  ;;  %v811_v29 = vpop.xlane.xlu1 %810 }
 0x18e   :  { %v3442_v34 = vmax.f32 %v3428_v25, %v820_v28  ;;  %v3445_v38 = vmax.f32 %v3430_v27, %v811_v29  ;;  %v3514_v28 = vld [vmem:[%s4064_s2 + $0x18] sm:$0xff]  }
 0x18f   :  { %2780 = vmatprep.subr.bf16.mxu0 %v3514_v28 }
 0x190   :  { %2088 = vst.msk [vmem:[#allocation2 + $0x50] sm:$0xff] %vm20_vm0, %v3442_v34  ;;  %2085 = vst.msk [vmem:[#allocation2 + $0x38] sm:$0xff] %vm20_vm0, %v3445_v38  ;;  %988 = vperm.xlu1 %2839, %v3426_v24  }
 0x194   :  { %993 = vperm.xlu1 %2839, %v3445_v38  }
 0x195   :  { %v841_v55 = vpop.xlane.xlu1 %840  ;;  %v832_v58 = vpop.xlane.xlu0 %831 }
 0x196   :  { %v3471_v7 = vmax.f32 %v3458_v45, %v841_v55  ;;  %v3474_v10 = vmax.f32 %v3460_v48, %v832_v58  ;;  %v3496_v55 = vld [vmem:[#allocation2 + $0x68] sm:$0xff] }
 0x197   :  { %v3534_v58 = vld [vmem:[#allocation2 + $0xa8] sm:$0xff] }
 0x198   :  { %4083 = vst [vmem:[#allocation11_spill] sm:$0xff] %v3471_v7  ;;  %2095 = vst.msk [vmem:[#allocation2 + $0x88] sm:$0xff] %vm20_vm0, %v3471_v7  ;;  %1043 = vperm.xlu0 %2840, %v3471_v7   ;;  %1008 = vperm.xlu1 %2839, %v3442_v34   ;;  %v885_v7 = vsub.f32 %v3367_v54, %v3379_v60  ;;  %v3553_v54 = vld [vmem:[#allocation2 + $0x98] sm:$0xff] }
 0x199   :  { %2092 = vst.msk [vmem:[#allocation2 + $0x70] sm:$0xff] %vm20_vm0, %v3474_v10  ;;  %v835_v29 = vpop.xlane.xlu1 %834  ;;  %v826_v33 = vpop.xlane.xlu0 %825 }
 0x19a   :  { %v3489_v41 = vmax.f32 %v3465_v0, %v835_v29  ;;  %v3492_v44 = vmax.f32 %v3476_v17, %v826_v33  ;;  %v884_v0 = vsub.f32 %v3357_v47, %v3363_v18  ;;  %v886_v47 = vsub.f32 %v3355_v46, %v3360_v52  ;;  %v3569_v46 = vld [vmem:[#allocation2 + $0xb0] sm:$0xff] }
 0x19b   :  { %v910_v18 = vmul.f32 1.442695, %v885_v7 }
 0x19c   :  { %4084 = vst [vmem:[#allocation12_spill] sm:$0xff] %v3489_v41  ;;  %2093 = vst.msk [vmem:[#allocation2 + $0x78] sm:$0xff] %vm20_vm0, %v3489_v41  ;;  %1028 = vperm.xlu1 %2839, %v3474_v10  }
 0x19d   :  { %2090 = vst.msk [vmem:[#allocation2 + $0x60] sm:$0xff] %vm20_vm0, %v3492_v44  ;;  %v838_v2 = vpop.xlane.xlu0 %837  ;;  %v829_v21 = vpop.xlane.xlu1 %828  ;;  %2873 = vpow2.f32 %v910_v18 }
 0x19e   :  { %v3506_v29 = vmax.f32 %v3494_v49, %v838_v2  ;;  %v3509_v33 = vmax.f32 %v3496_v55, %v829_v21  ;;  %v3525_v2 = vld [vmem:[#allocation2 + $0xa0] sm:$0xff] }
 0x19f   :  { %4087 = vst [vmem:[#allocation15_spill] sm:$0xff] %v3525_v2  ;;  %v3530_v21 = vld [vmem:[%s4064_s2 + $0x24] sm:$0xff]  }
 0x1a0   :  { %4086 = vst [vmem:[#allocation14_spill] sm:$0xff] %v3506_v29  ;;  %2094 = vst.msk [vmem:[#allocation2 + $0x80] sm:$0xff] %vm20_vm0, %v3506_v29  ;;  %1023 = vperm.xlu0 %2840, %v3509_v33   ;;  %1018 = vperm.xlu1 %2839, %v3492_v44  }
 0x1a1   :  { %2091 = vst.msk [vmem:[#allocation2 + $0x68] sm:$0xff] %vm20_vm0, %v3509_v33  ;;  %2788 = vmatprep.subr.bf16.mxu1 %v3530_v21 }
 0x1a4   :  { %1038 = vperm.xlu0 %2840, %v3506_v29   ;;  %1033 = vperm.xlu1 %2839, %v3489_v41   ;;  %v3547_v29 = vld [vmem:[#allocation2 + $0x90] sm:$0xff]  ;;  %v887_v41 = vsub.f32 %v3381_v61, %v3391_v3  ;;  %v912_v61 = vmul.f32 1.442695, %v886_v47  ;;  %v888_v3 = vsub.f32 %v3383_v63, %v3394_v4 }
 0x1a5   :  { %v850_v45 = vpop.xlane.xlu0 %849 }
 0x1a6   :  { %v3542_v49 = vmax.f32 %v3525_v2, %v850_v45  ;;  %v853_v42 = vpop.xlane.xlu1 %852  ;;  %v908_v45 = vmul.f32 1.442695, %v884_v0  ;;  %v3576_v0 = vld [vmem:[#allocation2 + $0xb8] sm:$0xff]  ;;  %v914_v60 = vmul.f32 1.442695, %v887_v41 }
 0x1a7   :  { %v3545_v19 = vmax.f32 %v3534_v58, %v853_v42 }
 0x1a8   :  { %2098 = vst.msk [vmem:[#allocation2 + $0xa0] sm:$0xff] %vm20_vm0, %v3542_v49  ;;  %2875 = vpow2.f32 %v908_v45  ;;  %v916_v45 = vmul.f32 1.442695, %v888_v3 }
 0x1a9   :  { %2099 = vst.msk [vmem:[#allocation2 + $0xa8] sm:$0xff] %vm20_vm0, %v3545_v19  ;;  %v844_v42 = vpop.xlane.xlu0 %843  ;;  %2877 = vpow2.f32 %v912_v61  ;;  %v892_v61 = vsub.f32 %v3403_v6, %v3410_v12  ;;  %v895_v6 = vsub.f32 %v3401_v5, %v3407_v11  ;;  %v897_v5 = vsub.f32 %v3496_v55, %v3509_v33 }
 0x1aa   :  { %v3564_v2 = vmax.f32 %v3547_v29, %v844_v42  ;;  %v847_v39 = vpop.xlane.xlu1 %846  ;;  %v889_v42 = vsub.f32 %v3365_v53, %v3376_v59  ;;  %v890_v53 = vsub.f32 %v3414_v16, %v3426_v24  ;;  %2879 = vpow2.f32 %v914_v60 }
 0x1ab   :  { %v3567_v26 = vmax.f32 %v3553_v54, %v847_v39  ;;  %2881 = vpow2.f32 %v916_v45  ;;  %v893_v24 = vsub.f32 %v3412_v15, %v3423_v22  ;;  %v896_v45 = vsub.f32 %v3476_v17, %v3492_v44 }
 0x1ac   :  { %v902_v52 = vsub.f32 %v3547_v29, %v3564_v2  ;;  %2096 = vst.msk [vmem:[#allocation2 + $0x90] sm:$0xff] %vm20_vm0, %v3564_v2  ;;  %1048 = vperm.xlu1 %2839, %v3564_v2   ;;  %v918_v41 = vmul.f32 1.442695, %v889_v42  ;;  %v920_v16 = vmul.f32 1.442695, %v890_v53  ;;  %v898_v53 = vsub.f32 %v3460_v48, %v3474_v10 }
 0x1ad   :  { %2097 = vst.msk [vmem:[#allocation2 + $0x98] sm:$0xff] %vm20_vm0, %v3567_v26  ;;  %v856_v7 = vpop.xlane.xlu0 %855  ;;  %1053 = vperm.xlu0 %2840, %v3567_v26   ;;  %v926_v12 = vmul.f32 1.442695, %v893_v24  ;;  %v934_v17 = vmul.f32 1.442695, %v897_v5 }
 0x1ae   :  { %v3588_v47 = vmax.f32 %v3569_v46, %v856_v7  ;;  %v859_v18 = vpop.xlane.xlu1 %858  ;;  %v891_v7 = vsub.f32 %v3430_v27, %v3445_v38  ;;  %2883 = vpow2.f32 %v918_v41  ;;  %v924_v27 = vmul.f32 1.442695, %v892_v61 }
 0x1af   :  { %v3591_v63 = vmax.f32 %v3576_v0, %v859_v18  ;;  %v3613_v18 = vpop.eup %2873  ;;  %2885 = vpow2.f32 %v920_v16  ;;  %v894_v38 = vsub.f32 %v3428_v25, %v3442_v34  ;;  %v930_v25 = vmul.f32 1.442695, %v895_v6 }
 0x1b0   :  { %2100 = vst.msk [vmem:[#allocation2 + $0xb0] sm:$0xff] %vm20_vm0, %v3588_v47  ;;  %1063 = vperm.xlu1 %2839, %v3545_v19   ;;  %v922_v3 = vmul.f32 1.442695, %v891_v7  ;;  %v932_v41 = vmul.f32 1.442695, %v896_v45  ;;  %v4104_v29 = vsub.f32 %v3569_v46, %v3588_v47 }
 0x1b1   :  { %2101 = vst.msk [vmem:[#allocation2 + $0xb8] sm:$0xff] %vm20_vm0, %v3591_v63  ;;  %1068 = vperm.xlu0 %2840, %v3588_v47   ;;  %v928_v42 = vmul.f32 1.442695, %v894_v38  ;;  %v936_v55 = vmul.f32 1.442695, %v898_v53 }
 0x1b2   :  { %v3615_v60 = vpop.eup %2875  ;;  %2887 = vpow2.f32 %v922_v3  ;;  %v952_v2 = vmul.f32 1.442695, %v4104_v29 }
 0x1b3   :  { %v3623_v15 = vpop.eup %2877  ;;  %2889 = vpow2.f32 %v924_v27 }
 0x1b4   :  { %1058 = vperm.xlu1 %2839, %v3542_v49   ;;  %v3625_v22 = vpop.eup %2879  ;;  %2891 = vpow2.f32 %v926_v12 }
 0x1b5   :  { %1073 = vperm.xlu0 %2840, %v3591_v63   ;;  %v3633_v11 = vpop.eup %2881  ;;  %2893 = vpow2.f32 %v928_v42 }
 0x1b6   :  { %2895 = vpow2.f32 %v930_v25 }
 0x1b7   :  { %2897 = vpow2.f32 %v932_v41 }
 0x1b8   :  { %1348 = vperm.xlu1 %2839, %v3613_v18   ;;  %v3635_v34 = vpop.eup %2883  ;;  %2899 = vpow2.f32 %v934_v17 }
 0x1b9   :  { %1343 = vperm.xlu0 %2840, %v3615_v60   ;;  %v3641_v44 = vpop.eup %2885  ;;  %2901 = vpow2.f32 %v936_v55 }
 0x1bc   :  { %1353 = vperm.xlu1 %2839, %v3623_v15   ;;  %v3643_v7 = vpop.eup %2887 }
 0x1bd   :  { %1358 = vperm.xlu0 %2840, %v3625_v22   ;;  %v3647_v33 = vpop.eup %2889 }
 0x1be   :  { %v3649_v61 = vpop.eup %2891 }
 0x1bf   :  { %v3653_v48 = vpop.eup %2893 }
 0x1c0   :  { %1363 = vperm.xlu1 %2839, %v3633_v11   ;;  %v3655_v10 = vpop.eup %2895 }
 0x1c1   :  { %1368 = vperm.xlu0 %2840, %v3635_v34   ;;  %v3659_v16 = vpop.eup %2897 }
 0x1c2   :  { %v3661_v24 = vpop.eup %2899 }
 0x1c3   :  { %v3665_v3 = vpop.eup %2901 }
 0x1c4   :  { %1373 = vperm.xlu1 %2839, %v3641_v44  }
 0x1c5   :  { %1378 = vperm.xlu0 %2840, %v3643_v7  }
 0x1c8   :  { %1383 = vperm.xlu1 %2839, %v3647_v33  }
 0x1c9   :  { %1388 = vperm.xlu0 %2840, %v3649_v61  }
 0x1cc   :  { %1393 = vperm.xlu1 %2839, %v3653_v48  }
 0x1cd   :  { %1398 = vperm.xlu0 %2840, %v3655_v10  }
 0x1d0   :  { %1403 = vperm.xlu1 %2839, %v3659_v16  }
 0x1d1   :  { %1408 = vperm.xlu0 %2840, %v3661_v24  }
 0x1d4   :  { %1413 = vperm.xlu1 %2839, %v3665_v3  }
 0x1f7   :  { %v969_v27 = vpop.permute.xlu1 %968 }
 0x1f8   :  { %v959_v38 = vpop.permute.xlu0 %958  ;;  %v1078_v6 = vsub.f32 %v3189_v20, %v969_v27 }
 0x1f9   :  { %v1076_v42 = vsub.f32 %v3193_v23, %v959_v38 }
 0x1fa   :  { %v1104_v12 = vmul.f32 1.442695, %v1078_v6 }
 0x1fb   :  { %v984_v45 = vpop.permute.xlu1 %983  ;;  %v1100_v5 = vmul.f32 1.442695, %v1076_v42 }
 0x1fc   :  { %2903 = vpow2.f32 %v1104_v12  ;;  %v1081_v25 = vsub.f32 %v3201_v30, %v984_v45 }
 0x1fe   :  { %v1110_v53 = vmul.f32 1.442695, %v1081_v25 }
 0x1ff   :  { %v974_v41 = vpop.permute.xlu1 %973 }
 0x200   :  { %2905 = vpow2.f32 %v1110_v53  ;;  %v1079_v17 = vsub.f32 %v3213_v35, %v974_v41 }
 0x201   :  { %2907 = vpow2.f32 %v1100_v5 }
 0x202   :  { %v1106_v55 = vmul.f32 1.442695, %v1079_v17 }
 0x203   :  { %v964_v59 = vpop.permute.xlu1 %963 }
 0x204   :  { %v1077_v4 = vsub.f32 %v3205_v32, %v964_v59  ;;  %2909 = vpow2.f32 %v1106_v55 }
 0x206   :  { %v2904_v39 = vpop.eup %2903  ;;  %v1102_v20 = vmul.f32 1.442695, %v1077_v4 }
 0x207   :  { %v1014_v27 = vpop.permute.xlu0 %1013  ;;  %v979_v23 = vpop.permute.xlu1 %978  ;;  %v1202_v38 = vsel %vm787_vm2, %v2904_v39, 0.0 }
 0x208   :  { %2911 = vpow2.f32 %v1102_v20  ;;  %v1087_v30 = vsub.f32 %v3229_v43, %v1014_v27  ;;  %v1080_v6 = vsub.f32 %v3217_v36, %v979_v23  ;;  %1203 = vadd.xlane.f32.xlu0 %v1202_v38 }
 0x20a   :  { %v3676_v12 = vpop.eup %2905  ;;  %v1122_v35 = vmul.f32 1.442695, %v1087_v30  ;;  %v1108_v42 = vmul.f32 1.442695, %v1080_v6  ;;  %v2862_v30 = vld [vmem:[%s4064_s2 + $0x20] ss:$0 sps:$4 sm:$0xff]  }
 0x20b   :  { %v1004_v45 = vpop.permute.xlu0 %1003  ;;  %v999_v25 = vpop.permute.xlu1 %998  ;;  %v1211_v32 = vsel %vm787_vm2, %v3676_v12, 0.0 }
 0x20c   :  { %v2908_v4 = vpop.eup %2907  ;;  %2913 = vpow2.f32 %v1122_v35  ;;  %v1085_v59 = vsub.f32 %v3241_v51, %v1004_v45  ;;  %v1084_v5 = vsub.f32 %v3225_v40, %v999_v25  ;;  %1212 = vadd.xlane.f32.xlu1 %v1211_v32 }
 0x20d   :  { %2915 = vpow2.f32 %v1108_v42  ;;  %v1196_v41 = vsel %vm787_vm2, %v2908_v4, 0.0 }
 0x20e   :  { %v1118_v43 = vmul.f32 1.442695, %v1085_v59  ;;  %v1116_v36 = vmul.f32 1.442695, %v1084_v5  ;;  %v2910_v17 = vpop.eup %2909 }
 0x20f   :  { %v989_v53 = vpop.permute.xlu1 %988  ;;  %v1205_v51 = vsel %vm787_vm2, %v2910_v17, 0.0 }
 0x210   :  { %2917 = vpow2.f32 %v1118_v43  ;;  %v1082_v55 = vsub.f32 %v3237_v50, %v989_v53  ;;  %1197 = vadd.xlane.f32.xlu1 %v1196_v41  ;;  %v1486_v50 = vpack.c.bf16 %v2904_v39, %v2904_v39 }
 0x211   :  { %2919 = vpow2.f32 %v1116_v36  ;;  %v2864_v36 = vld [vmem:[%s4064_s2 + $0x2c] ss:$0 sps:$4 sm:$0xff]  }
 0x212   :  { %v2912_v20 = vpop.eup %2911  ;;  %v1112_v27 = vmul.f32 1.442695, %v1082_v55 }
 0x213   :  { %v994_v23 = vpop.permute.xlu1 %993  ;;  %v1199_v40 = vsel %vm787_vm2, %v2912_v20, 0.0  ;;  %v1485_v38 = vpack.c.bf16 %v2912_v20, %v2908_v4 }
 0x214   :  { %2921 = vpow2.f32 %v1112_v27  ;;  %v1083_v6 = vsub.f32 %v3253_v57, %v994_v23  ;;  %1206 = vadd.xlane.f32.xlu1 %v1205_v51  ;;  %1200 = vadd.xlane.f32.xlu0 %v1199_v40  ;;  %v1650_v57 = vsel %vm1516_vm3, %v2862_v30, 0  ;;  %v1716_v40 = vsel %vm1516_vm3, %v2864_v36, 0 }
 0x215   :  { %2768 = vmatprep.mubr.msk.bf16.mxu0 %vm787_vm2, %v1485_v38  ;;  %v2867_v38 = vld [vmem:[%s4064_s2 + $0x3c] sm:$0xff]  }
 0x216   :  { %v3691_v35 = vpop.eup %2913  ;;  %v1114_v42 = vmul.f32 1.442695, %v1083_v6  ;;  %2769 = vmatmul.mubr.msk.bf16.vlgmr.msra.gmra.mrb[16].mxu0 %vm787_vm2, %v1486_v50 }
 0x217   :  { %v2916_v45 = vpop.eup %2915  ;;  %v1044_v25 = vpop.permute.xlu0 %1043  ;;  %v1229_v4 = vsel %vm787_vm2, %v3691_v35, 0.0  ;;  %2781 = vmatpush3.bf16.msra.mxu0 %v3514_v28 }
 0x218   :  { %v1009_v32 = vpop.permute.xlu1 %1008  ;;  %2923 = vpow2.f32 %v1114_v42  ;;  %v1093_v39 = vsub.f32 %v3289_v1, %v1044_v25  ;;  %1230 = vadd.xlane.f32.xlu1 %v1229_v4  ;;  %v1208_v5 = vsel %vm787_vm2, %v2916_v45, 0.0  ;;  %2830 = vmatprep.subr.msk.bf16.mxu0 %vm1516_vm3, %v2862_v30  ;;  %v1487_v43 = vpack.c.bf16 %v2916_v45, %v2910_v17 }
 0x219   :  { %v1086_v59 = vsub.f32 %v3249_v56, %v1009_v32  ;;  %1209 = vadd.xlane.f32.xlu0 %v1208_v5  ;;  %v1488_v1 = vpack.c.bf16 %v3676_v12, %v3676_v12  ;;  %v2865_v56 = vld [vmem:[%s4064_s2 + $0x30] sm:$0xff]  }
 0x21a   :  { %v3705_v53 = vpop.eup %2917  ;;  %v1134_v28 = vmul.f32 1.442695, %v1093_v39  ;;  %2776 = vmatprep.mubr.msk.bf16.mxu1 %vm787_vm2, %v1487_v43 }
 0x21b   :  { %v1120_v41 = vmul.f32 1.442695, %v1086_v59  ;;  %v2920_v55 = vpop.eup %2919  ;;  %v1223_v17 = vsel %vm787_vm2, %v3705_v53, 0.0  ;;  %2783 = vmatpush3.bf16.msra.mxu0 %v1650_v57  ;;  %2777 = vmatmul.mubr.msk.bf16.vlgmr.msra.gmra.mrb[16].mxu1 %vm787_vm2, %v1488_v1 }
 0x21c   :  { %v1029_v20 = vpop.permute.xlu1 %1028  ;;  %2925 = vpow2.f32 %v1134_v28  ;;  %1224 = vadd.xlane.f32.xlu1 %v1223_v17  ;;  %v1220_v12 = vsel %vm787_vm2, %v2920_v55, 0.0  ;;  %2789 = vmatpush3.bf16.msra.mxu1 %v3530_v21  ;;  %v1492_v17 = vpack.c.bf16 %v3691_v35, %v3691_v35 }
 0x21d   :  { %v1090_v27 = vsub.f32 %v3285_v62, %v1029_v20  ;;  %2927 = vpow2.f32 %v1120_v41  ;;  %1221 = vadd.xlane.f32.xlu0 %v1220_v12  ;;  %2831 = vmatprep.subr.msk.bf16.mxu1 %vm1516_vm3, %v2864_v36  ;;  %v2869_v20 = vld [vmem:[%s4064_s2 + $0x48] sm:$0xff]  }
 0x21e   :  { %v2922_v23 = vpop.eup %2921  ;;  %2796 = vmatprep.subr.bf16.mxu0 %v2865_v56 }
 0x21f   :  { %v1128_v51 = vmul.f32 1.442695, %v1090_v27  ;;  %v1024_v30 = vpop.permute.xlu0 %1023  ;;  %v1214_v6 = vsel %vm787_vm2, %v2922_v23, 0.0 }
 0x220   :  { %v1019_v62 = vpop.permute.xlu1 %1018  ;;  %v1089_v50 = vsub.f32 %v3313_v14, %v1024_v30  ;;  %2791 = vmatpush3.bf16.msra.mxu1 %v1716_v40  ;;  %v1490_v14 = vpack.c.bf16 %v2920_v55, %v2920_v55  ;;  %v2870_v30 = vld [vmem:[%s4064_s2 + $0x54] sm:$0xff]  }
 0x221   :  { %2929 = vpow2.f32 %v1128_v51  ;;  %v1088_v21 = vsub.f32 %v3297_v8, %v1019_v62  ;;  %1215 = vadd.xlane.f32.xlu0 %v1214_v6  ;;  %2804 = vmatprep.subr.bf16.mxu1 %v2867_v38  ;;  %v2866_v8 = vld [vmem:[%s4064_s2 + $0x38] ss:$0 sps:$4 sm:$0xff]  }
 0x222   :  { %v2924_v42 = vpop.eup %2923  ;;  %v1126_v45 = vmul.f32 1.442695, %v1089_v50  ;;  %v1782_v55 = vsel %vm1516_vm3, %v2866_v8, 0 }
 0x223   :  { %v1124_v25 = vmul.f32 1.442695, %v1088_v21  ;;  %v1039_v32 = vpop.permute.xlu0 %1038  ;;  %v1217_v57 = vsel %vm787_vm2, %v2924_v42, 0.0  ;;  %v1489_v39 = vpack.c.bf16 %v2924_v42, %v2922_v23 }
 0x224   :  { %v1034_v4 = vpop.permute.xlu1 %1033  ;;  %2931 = vpow2.f32 %v1126_v45  ;;  %v1092_v59 = vsub.f32 %v3309_v13, %v1039_v32  ;;  %1218 = vadd.xlane.f32.xlu1 %v1217_v57  ;;  %v4089_v32 = vld [vmem:[#allocation7_spill] sm:$0xff] }
 0x225   :  { %v1091_v5 = vsub.f32 %v3301_v9, %v1034_v4  ;;  %2933 = vpow2.f32 %v1124_v25  ;;  %2784 = vmatprep.mubr.msk.bf16.mxu0 %vm787_vm2, %v1489_v39  ;;  %v2871_v39 = vld [vmem:[%s4064_s2 + $0x50] ss:$0 sps:$4 sm:$0xff]  }
 0x226   :  { %v3734_v43 = vpop.eup %2925  ;;  %v1132_v36 = vmul.f32 1.442695, %v1092_v59  ;;  %2785 = vmatmul.mubr.msk.bf16.vlgmr.msra.gmra.mrb[20].mxu0 %vm787_vm2, %v1490_v14 }
 0x227   :  { %v1130_v28 = vmul.f32 1.442695, %v1091_v5  ;;  %v2928_v41 = vpop.eup %2927  ;;  %v1247_v13 = vsel %vm787_vm2, %v3734_v43, 0.0  ;;  %2797 = vmatpush3.bf16.msra.mxu0 %v2865_v56  ;;  %v2868_v56 = vld [vmem:[%s4064_s2 + $0x44] ss:$0 sps:$4 sm:$0xff]  }
 0x228   :  { %2935 = vpow2.f32 %v1132_v36  ;;  %1248 = vadd.xlane.f32.xlu1 %v1247_v13  ;;  %v1226_v9 = vsel %vm787_vm2, %v2928_v41, 0.0  ;;  %v1491_v1 = vpack.c.bf16 %v2928_v41, %v3705_v53  ;;  %2832 = vmatprep.subr.msk.bf16.mxu0 %vm1516_vm3, %v2866_v8  ;;  %v1848_v40 = vsel %vm1516_vm3, %v2868_v56, 0  ;;  %v4090_v41 = vld [vmem:[#allocation5_spill] sm:$0xff] }
 0x229   :  { %2937 = vpow2.f32 %v1130_v28  ;;  %1227 = vadd.xlane.f32.xlu0 %v1226_v9 }
 0x22a   :  { %2792 = vmatprep.mubr.msk.bf16.mxu1 %vm787_vm2, %v1491_v1 }
 0x22b   :  { %v2930_v27 = vpop.eup %2929  ;;  %2793 = vmatmul.mubr.msk.bf16.vlgmr.msra.gmra.mrb[20].mxu1 %vm787_vm2, %v1492_v17  ;;  %v1049_v53 = vpop.permute.xlu1 %1048  ;;  %2799 = vmatpush3.bf16.msra.mxu0 %v1782_v55  ;;  %v4091_v17 = vld [vmem:[#allocation8_spill] sm:$0xff] }
 0x22c   :  { %v1238_v12 = vsel %vm787_vm2, %v2930_v27, 0.0  ;;  %v1094_v23 = vsub.f32 %v3331_v31, %v1049_v53  ;;  %v1054_v51 = vpop.permute.xlu0 %1053  ;;  %2805 = vmatpush3.bf16.msra.mxu1 %v2867_v38  ;;  %2812 = vmatprep.subr.bf16.mxu0 %v2869_v20  ;;  %v4088_v31 = vld [vmem:[#allocation6_spill] sm:$0xff]  ;;  %v1494_v57 = vpack.c.bf16 %v2930_v27, %v2930_v27  ;;  %v1496_v27 = vpack.c.bf16 %v3734_v43, %v3734_v43 }
 0x22d   :  { %v1095_v35 = vsub.f32 %v3337_v37, %v1054_v51  ;;  %1239 = vadd.xlane.f32.xlu0 %v1238_v12  ;;  %2833 = vmatprep.subr.msk.bf16.mxu1 %vm1516_vm3, %v2868_v56  ;;  %v1914_v53 = vsel %vm1516_vm3, %v2871_v39, 0  ;;  %v2872_v12 = vld [vmem:[%s4064_s2 + $0x5c] ss:$0 sps:$4 sm:$0xff]  }
 0x22e   :  { %v2932_v62 = vpop.eup %2931  ;;  %v1136_v6 = vmul.f32 1.442695, %v1094_v23  ;;  %v1980_v43 = vsel %vm1516_vm3, %v2872_v12, 0 }
 0x22f   :  { %v2934_v50 = vpop.eup %2933  ;;  %v1138_v21 = vmul.f32 1.442695, %v1095_v35  ;;  %v1064_v42 = vpop.permute.xlu1 %1063  ;;  %v1235_v51 = vsel %vm787_vm2, %v2932_v62, 0.0 }
 0x230   :  { %2939 = vpow2.f32 %v1136_v6  ;;  %v1097_v38 = vsub.f32 %v4088_v31, %v1064_v42  ;;  %v1069_v45 = vpop.permute.xlu0 %1068  ;;  %v1232_v37 = vsel %vm787_vm2, %v2934_v50, 0.0  ;;  %v1493_v25 = vpack.c.bf16 %v2932_v62, %v2934_v50  ;;  %2807 = vmatpush3.bf16.msra.mxu1 %v1848_v40 }
 0x231   :  { %2941 = vpow2.f32 %v1138_v21  ;;  %v1098_v4 = vsub.f32 %v4089_v32, %v1069_v45  ;;  %1233 = vadd.xlane.f32.xlu0 %v1232_v37  ;;  %2820 = vmatprep.subr.bf16.mxu1 %v2870_v30 }
 0x232   :  { %v2936_v59 = vpop.eup %2935  ;;  %v1142_v5 = vmul.f32 1.442695, %v1097_v38  ;;  %2800 = vmatprep.mubr.msk.bf16.mxu0 %vm787_vm2, %v1493_v25 }
 0x233   :  { %v2938_v14 = vpop.eup %2937  ;;  %v1144_v8 = vmul.f32 1.442695, %v1098_v4  ;;  %2801 = vmatmul.mubr.msk.bf16.vlgmr.msra.gmra.mrb[24].mxu0 %vm787_vm2, %v1494_v57  ;;  %v1059_v36 = vpop.permute.xlu1 %1058  ;;  %v1244_v28 = vsel %vm787_vm2, %v2936_v59, 0.0 }
 0x234   :  { %2943 = vpow2.f32 %v1142_v5  ;;  %v1096_v13 = vsub.f32 %v4090_v41, %v1059_v36  ;;  %v1074_v9 = vpop.permute.xlu0 %1073  ;;  %v1241_v1 = vsel %vm787_vm2, %v2938_v14, 0.0  ;;  %v1495_v55 = vpack.c.bf16 %v2936_v59, %v2938_v14  ;;  %2813 = vmatpush3.bf16.msra.mxu0 %v2869_v20  ;;  %v4093_v59 = vld [vmem:[#allocation14_spill] sm:$0xff]  ;;  %v4096_v36 = vld [vmem:[#allocation12_spill] sm:$0xff] }
 0x235   :  { %2945 = vpow2.f32 %v1144_v8  ;;  %v1099_v56 = vsub.f32 %v4091_v17, %v1074_v9  ;;  %1245 = vadd.xlane.f32.xlu0 %v1244_v28  ;;  %1242 = vadd.xlane.f32.xlu1 %v1241_v1  ;;  %v4095_v8 = vld [vmem:[#allocation10_spill] sm:$0xff]  ;;  %v4098_v9 = vld [vmem:[#allocation9_spill] sm:$0xff]  ;;  %v4099_v1 = vld [vmem:[#allocation11_spill] sm:$0xff] }
 0x236   :  { %v1140_v23 = vmul.f32 1.442695, %v1096_v13  ;;  %2808 = vmatprep.mubr.msk.bf16.mxu1 %vm787_vm2, %v1495_v55  ;;  %2834 = vmatprep.subr.msk.bf16.mxu0 %vm1516_vm3, %v2871_v39  ;;  %v4092_v39 = vld [vmem:[#allocation13_spill] sm:$0xff]  ;;  %v4097_v28 = vsub.f32 %v4095_v8, %v4096_v36  ;;  %v944_v13 = vmul.f32 1.442695, %v902_v52  ;;  %v4100_v55 = vsub.f32 %v4098_v9, %v4099_v1  ;;  %v1149_v1 = vld [vmem:[#allocation3 + $0x8] sm:$0xff] }
 0x237   :  { %v1146_v20 = vmul.f32 1.442695, %v1099_v56  ;;  %2809 = vmatmul.mubr.msk.bf16.vlgmr.msra.gmra.mrb[24].mxu1 %vm787_vm2, %v1496_v27  ;;  %v4094_v5 = vsub.f32 %v4092_v39, %v4093_v59  ;;  %v4101_v56 = vld [vmem:[#allocation15_spill] sm:$0xff] }
 0x238   :  { %2947 = vpow2.f32 %v1140_v23  ;;  %2821 = vmatpush3.bf16.msra.mxu1 %v2870_v30  ;;  %2815 = vmatpush3.bf16.msra.mxu0 %v1914_v53  ;;  %v938_v41 = vmul.f32 1.442695, %v4097_v28  ;;  %v942_v17 = vmul.f32 1.442695, %v4100_v55  ;;  %v4102_v27 = vsub.f32 %v4101_v56, %v3542_v49  ;;  %v1148_v28 = vld [vmem:[#allocation3] sm:$0xff]  ;;  %v1151_v55 = vld [vmem:[#allocation3 + $0x18] sm:$0xff] }
 0x239   :  { %2949 = vpow2.f32 %v1146_v20  ;;  %1236 = vadd.xlane.f32.xlu1 %v1235_v51  ;;  %2835 = vmatprep.subr.msk.bf16.mxu1 %vm1516_vm3, %v2872_v12  ;;  %v940_v14 = vmul.f32 1.442695, %v4094_v5  ;;  %v4103_v12 = vsub.f32 %v3553_v54, %v3567_v26  ;;  %v4105_v49 = vsub.f32 %v3534_v58, %v3545_v19  ;;  %v1153_v5 = vld [vmem:[#allocation3 + $0x28] sm:$0xff] }
 0x23a   :  { %v2940_v35 = vpop.eup %2939  ;;  %v948_v53 = vmul.f32 1.442695, %v4102_v27  ;;  %v4106_v26 = vsub.f32 %v3576_v0, %v3591_v63  ;;  %v3847_v63 = vpop.permute.xlu0 %1343  ;;  %v1177_v8 = vmul.f32 %v3635_v34, %v1153_v5  ;;  %v1173_v56 = vmul.f32 %v3613_v18, %v1149_v1  ;;  %v1157_v18 = vld [vmem:[#allocation3 + $0x48] sm:$0xff] }
 0x23b   :  { %v2942_v40 = vpop.eup %2941  ;;  %v1250_v25 = vsel %vm787_vm2, %v2940_v35, 0.0  ;;  %2951 = vpow2.f32 %v940_v14  ;;  %v946_v23 = vmul.f32 1.442695, %v4103_v12  ;;  %v950_v20 = vmul.f32 1.442695, %v4105_v49  ;;  %v1159_v12 = vld [vmem:[#allocation3 + $0x58] sm:$0xff] }
 0x23c   :  { %v1497_v6 = vpack.c.bf16 %v2942_v40, %v2940_v35  ;;  %2823 = vmatpush3.bf16.msra.mxu1 %v1980_v43  ;;  %v1253_v57 = vsel %vm787_vm2, %v2942_v40, 0.0  ;;  %2953 = vpow2.f32 %v938_v41  ;;  %v954_v54 = vmul.f32 1.442695, %v4106_v26  ;;  %v3843_v35 = vpop.permute.xlu1 %1348 }
 0x23d   :  { %2955 = vpow2.f32 %v944_v13  ;;  %v1172_v13 = vmul.f32 %v3615_v60, %v1148_v28  ;;  %v1175_v27 = vmul.f32 %v3625_v22, %v1151_v55  ;;  %v1183_v60 = vmul.f32 %v3655_v10, %v1159_v12  ;;  %v1154_v28 = vld [vmem:[#allocation3 + $0x30] sm:$0xff] }
 0x23e   :  { %v2944_v50 = vpop.eup %2943  ;;  %2816 = vmatprep.mubr.msk.bf16.mxu0 %vm787_vm2, %v1497_v6  ;;  %2957 = vpow2.f32 %v942_v17  ;;  %v1181_v5 = vmul.f32 %v3649_v61, %v1157_v18  ;;  %v1155_v61 = vld [vmem:[#allocation3 + $0x38] sm:$0xff] }
 0x23f   :  { %v2946_v21 = vpop.eup %2945  ;;  %v1259_v32 = vsel %vm787_vm2, %v2944_v50, 0.0  ;;  %2959 = vpow2.f32 %v948_v53 }
 0x240   :  { %v1499_v42 = vpack.c.bf16 %v2946_v21, %v2944_v50  ;;  %v1262_v4 = vsel %vm787_vm2, %v2946_v21, 0.0  ;;  %2961 = vpow2.f32 %v946_v23  ;;  %v3852_v6 = vpop.permute.xlu1 %1353  ;;  %v3855_v50 = vpop.permute.xlu0 %1358 }
 0x241   :  { %2963 = vpow2.f32 %v952_v2  ;;  %v1152_v2 = vld [vmem:[#allocation3 + $0x20] sm:$0xff] }
 0x242   :  { %v2948_v31 = vpop.eup %2947  ;;  %2824 = vmatprep.mubr.msk.bf16.mxu1 %vm787_vm2, %v1499_v42  ;;  %2965 = vpow2.f32 %v950_v20  ;;  %v1176_v20 = vmul.f32 %v3633_v11, %v1152_v2 }
 0x243   :  { %v2950_v30 = vpop.eup %2949  ;;  %v1256_v62 = vsel %vm787_vm2, %v2948_v31, 0.0  ;;  %v1498_v38 = vpack.c.bf16 %v2948_v31, %v2948_v31  ;;  %2967 = vpow2.f32 %v954_v54 }
 0x244   :  { %1257 = vadd.xlane.f32.xlu0 %v1256_v62  ;;  %v1265_v45 = vsel %vm787_vm2, %v2950_v30, 0.0  ;;  %v1500_v37 = vpack.c.bf16 %v2950_v30, %v2950_v30  ;;  %v3857_v21 = vpop.permute.xlu1 %1363  ;;  %v3859_v42 = vpop.permute.xlu0 %1368 }
 0x245   :  { %1266 = vadd.xlane.f32.xlu1 %v1265_v45  ;;  %2817 = vmatmul.mubr.msk.bf16.vlgmr.msra.gmra.mrb[28].mxu0 %vm787_vm2, %v1498_v38  ;;  %v3816_v52 = vpop.eup %2951 }
 0x246   :  { %2825 = vmatmul.mubr.msk.bf16.vlgmr.msra.gmra.mrb[28].mxu1 %vm787_vm2, %v1500_v37  ;;  %v3822_v51 = vpop.eup %2953 }
 0x247   :  { %v3824_v43 = vpop.eup %2955 }
 0x248   :  { %1251 = vadd.xlane.f32.xlu0 %v1250_v25  ;;  %v3831_v46 = vpop.eup %2957  ;;  %v3861_v31 = vpop.permute.xlu1 %1373 }
 0x249   :  { %1260 = vadd.xlane.f32.xlu1 %v1259_v32  ;;  %v3833_v47 = vpop.eup %2959  ;;  %v3863_v30 = vpop.permute.xlu0 %1378 }
 0x24a   :  { %v3837_v19 = vpop.eup %2961 }
 0x24b   :  { %v3839_v58 = vpop.eup %2963 }
 0x24c   :  { %1263 = vadd.xlane.f32.xlu0 %v1262_v4  ;;  %v3845_v0 = vpop.eup %2965  ;;  %v3865_v62 = vpop.permute.xlu1 %1383  ;;  %v1150_v4 = vld [vmem:[#allocation3 + $0x10] sm:$0xff] }
 0x24d   :  { %1254 = vadd.xlane.f32.xlu1 %v1253_v57  ;;  %v3850_v40 = vpop.eup %2967  ;;  %v3867_v38 = vpop.permute.xlu0 %1388  ;;  %v1174_v57 = vmul.f32 %v3623_v15, %v1150_v4  ;;  %v1156_v4 = vld [vmem:[#allocation3 + $0x40] sm:$0xff] }
 0x250   :  { %v3869_v45 = vpop.permute.xlu1 %1393 }
 0x251   :  { %v3871_v37 = vpop.permute.xlu0 %1398 }
 0x254   :  { %v3873_v25 = vpop.permute.xlu1 %1403 }
 0x255   :  { %v3875_v32 = vpop.permute.xlu0 %1408 }
 0x258   :  { %v3878_v39 = vpop.permute.xlu1 %1413 }
 0x25e   :  { %1423 = vperm.xlu1 %2839, %v3816_v52  }
 0x262   :  { %1433 = vperm.xlu1 %2839, %v3824_v43   ;;  %1418 = vperm.xlu0 %2840, %v3822_v51  }
 0x266   :  { %1443 = vperm.xlu1 %2839, %v3833_v47   ;;  %1428 = vperm.xlu0 %2840, %v3831_v46  }
 0x26a   :  { %1453 = vperm.xlu1 %2839, %v3839_v58   ;;  %1438 = vperm.xlu0 %2840, %v3837_v19  }
 0x26e   :  { %1448 = vperm.xlu0 %2840, %v3845_v0  }
 0x272   :  { %1458 = vperm.xlu0 %2840, %v3850_v40  }
 0x295   :  { %v1204_v59 = vpop.xlane.xlu0 %1203 }
 0x296   :  { %v1270_v14 = vadd.f32 %v1204_v59, %v1174_v57 }
 0x298   :  { %1295 = vst.msk [vmem:[#allocation3 + $0x10] sm:$0xff] %vm20_vm0, %v1270_v14  ;;  %v1180_v14 = vmul.f32 %v3647_v33, %v1156_v4 }
 0x299   :  { %v1213_v36 = vpop.xlane.xlu1 %1212 }
 0x29a   :  { %v1273_v41 = vadd.f32 %v1213_v36, %v1177_v8 }
 0x29c   :  { %1298 = vst.msk [vmem:[#allocation3 + $0x28] sm:$0xff] %vm20_vm0, %v1273_v41 }
 0x29d   :  { %v1198_v9 = vpop.xlane.xlu1 %1197 }
 0x29e   :  { %v1268_v15 = vadd.f32 %v1198_v9, %v1172_v13  ;;  %v1178_v9 = vmul.f32 %v3641_v44, %v1154_v28  ;;  %v1164_v28 = vld [vmem:[#allocation3 + $0x80] sm:$0xff] }
 0x29f   :  { %v2131_v17 = vld [vmem:[#allocation3 + $0x10] sm:$0xff] }
 0x2a0   :  { %2969 = vrcp.f32 %v2131_v17  ;;  %1293 = vst.msk [vmem:[#allocation3] sm:$0xff] %vm20_vm0, %v1268_v15 }
 0x2a1   :  { %v1201_v34 = vpop.xlane.xlu0 %1200  ;;  %v1207_v53 = vpop.xlane.xlu1 %1206 }
 0x2a2   :  { %v1269_v23 = vadd.f32 %v1201_v34, %v1173_v56  ;;  %v1271_v29 = vadd.f32 %v1207_v53, %v1175_v27  ;;  %v1179_v56 = vmul.f32 %v3643_v7, %v1155_v61  ;;  %v1165_v34 = vld [vmem:[#allocation3 + $0x88] sm:$0xff] }
 0x2a3   :  { %v2134_v49 = vld [vmem:[#allocation3 + $0x28] sm:$0xff]  ;;  %v1189_v2 = vmul.f32 %v3831_v46, %v1165_v34 }
 0x2a4   :  { %1294 = vst.msk [vmem:[#allocation3 + $0x8] sm:$0xff] %vm20_vm0, %v1269_v23  ;;  %1296 = vst.msk [vmem:[#allocation3 + $0x18] sm:$0xff] %vm20_vm0, %v1271_v29  ;;  %2971 = vrcp.f32 %v2134_v49  ;;  %v1158_v29 = vld [vmem:[#allocation3 + $0x50] sm:$0xff] }
 0x2a5   :  { %v1231_v26 = vpop.xlane.xlu1 %1230  ;;  %v1182_v7 = vmul.f32 %v3653_v48, %v1158_v29 }
 0x2a6   :  { %v1210_v54 = vpop.xlane.xlu0 %1209  ;;  %v1279_v22 = vadd.f32 %v1231_v26, %v1183_v60 }
 0x2a7   :  { %v2129_v57 = vld [vmem:[#allocation3] sm:$0xff]  ;;  %v1272_v59 = vadd.f32 %v1210_v54, %v1176_v20  ;;  %v1162_v54 = vld [vmem:[#allocation3 + $0x70] sm:$0xff] }
 0x2a8   :  { %2973 = vrcp.f32 %v2129_v57  ;;  %1304 = vst.msk [vmem:[#allocation3 + $0x58] sm:$0xff] %vm20_vm0, %v1279_v22  ;;  %v1186_v46 = vmul.f32 %v3665_v3, %v1162_v54 }
 0x2a9   :  { %1297 = vst.msk [vmem:[#allocation3 + $0x20] sm:$0xff] %vm20_vm0, %v1272_v59  ;;  %v1225_v10 = vpop.xlane.xlu1 %1224 }
 0x2aa   :  { %v2970_v8 = vpop.eup %2969  ;;  %v1222_v36 = vpop.xlane.xlu0 %1221  ;;  %v1277_v11 = vadd.f32 %v1225_v10, %v1181_v5  ;;  %v1160_v5 = vld [vmem:[#allocation3 + $0x60] sm:$0xff] }
 0x2ab   :  { %v1276_v41 = vadd.f32 %v1222_v36, %v1180_v14  ;;  %2189 = vperm.xlu1 %2839, %v2970_v8   ;;  %v2132_v13 = vld [vmem:[#allocation3 + $0x18] sm:$0xff]  ;;  %v2130_v1 = vld [vmem:[#allocation3 + $0x8] sm:$0xff]  ;;  %v1184_v8 = vmul.f32 %v3659_v16, %v1160_v5 }
 0x2ac   :  { %1302 = vst.msk [vmem:[#allocation3 + $0x48] sm:$0xff] %vm20_vm0, %v1277_v11  ;;  %2975 = vrcp.f32 %v2132_v13 }
 0x2ad   :  { %1301 = vst.msk [vmem:[#allocation3 + $0x40] sm:$0xff] %vm20_vm0, %v1276_v41  ;;  %2977 = vrcp.f32 %v2130_v1  ;;  %v1163_v41 = vld [vmem:[#allocation3 + $0x78] sm:$0xff]  ;;  %v1188_v1 = vmul.f32 %v3816_v52, %v1164_v28 }
 0x2ae   :  { %v2972_v55 = vpop.eup %2971  ;;  %v1216_v15 = vpop.xlane.xlu0 %1215 }
 0x2af   :  { %v1274_v33 = vadd.f32 %v1216_v15, %v1178_v9  ;;  %2204 = vperm.xlu0 %2840, %v2972_v55   ;;  %v2140_v53 = vld [vmem:[#allocation3 + $0x58] sm:$0xff]  ;;  %v1187_v55 = vmul.f32 %v3822_v51, %v1163_v41 }
 0x2b0   :  { %v2133_v17 = vld [vmem:[#allocation3 + $0x20] sm:$0xff] }
 0x2b1   :  { %2979 = vrcp.f32 %v2133_v17  ;;  %1299 = vst.msk [vmem:[#allocation3 + $0x30] sm:$0xff] %vm20_vm0, %v1274_v33  ;;  %v1219_v27 = vpop.xlane.xlu1 %1218  ;;  %v1161_v17 = vld [vmem:[#allocation3 + $0x68] sm:$0xff] }
 0x2b2   :  { %v2974_v12 = vpop.eup %2973  ;;  %v1275_v23 = vadd.f32 %v1219_v27, %v1179_v56  ;;  %2981 = vrcp.f32 %v2140_v53 }
 0x2b3   :  { %2179 = vperm.xlu1 %2839, %v2974_v12   ;;  %v2138_v49 = vld [vmem:[#allocation3 + $0x48] sm:$0xff]  ;;  %v1185_v12 = vmul.f32 %v3661_v24, %v1161_v17 }
 0x2b4   :  { %v2137_v44 = vld [vmem:[#allocation3 + $0x40] sm:$0xff]  ;;  %1300 = vst.msk [vmem:[#allocation3 + $0x38] sm:$0xff] %vm20_vm0, %v1275_v23 }
 0x2b5   :  { %2983 = vrcp.f32 %v2137_v44  ;;  %v1249_v60 = vpop.xlane.xlu1 %1248 }
 0x2b6   :  { %v2976_v20 = vpop.eup %2975  ;;  %v1228_v26 = vpop.xlane.xlu0 %1227  ;;  %v1285_v18 = vadd.f32 %v1249_v60, %v1189_v2  ;;  %2985 = vrcp.f32 %v2138_v49  ;;  %v1168_v60 = vld [vmem:[#allocation3 + $0xa0] sm:$0xff] }
 0x2b7   :  { %v1278_v22 = vadd.f32 %v1228_v26, %v1182_v7  ;;  %2194 = vperm.xlu0 %2840, %v2976_v20   ;;  %v2978_v57 = vpop.eup %2977  ;;  %v1171_v20 = vld [vmem:[#allocation3 + $0xb8] sm:$0xff] }
 0x2b8   :  { %v2135_v4 = vld [vmem:[#allocation3 + $0x30] sm:$0xff]  ;;  %1310 = vst.msk [vmem:[#allocation3 + $0x88] sm:$0xff] %vm20_vm0, %v1285_v18  ;;  %v1192_v18 = vmul.f32 %v3833_v47, %v1168_v60 }
 0x2b9   :  { %2987 = vrcp.f32 %v2135_v4  ;;  %1303 = vst.msk [vmem:[#allocation3 + $0x50] sm:$0xff] %vm20_vm0, %v1278_v22  ;;  %v1195_v22 = vmul.f32 %v3850_v40, %v1171_v20  ;;  %v1166_v4 = vld [vmem:[#allocation3 + $0x90] sm:$0xff]  ;;  %v1167_v40 = vld [vmem:[#allocation3 + $0x98] sm:$0xff]  ;;  %v1464_v20 = vmul.f32 0.0, %v3855_v50  ;;  %v1467_v50 = vmul.f32 0.0, %v3861_v31 }
 0x2ba   :  { %v1240_v59 = vpop.xlane.xlu0 %1239 }
 0x2bb   :  { %v2980_v48 = vpop.eup %2979  ;;  %v2136_v14 = vld [vmem:[#allocation3 + $0x38] sm:$0xff]  ;;  %v1282_v10 = vadd.f32 %v1240_v59, %v1186_v46  ;;  %2184 = vperm.xlu0 %2840, %v2978_v57   ;;  %v1169_v59 = vld [vmem:[#allocation3 + $0xa8] sm:$0xff] }
 0x2bc   :  { %2989 = vrcp.f32 %v2136_v14  ;;  %2199 = vperm.xlu1 %2839, %v2980_v48   ;;  %v2982_v36 = vpop.eup %2981  ;;  %v1190_v14 = vmul.f32 %v3824_v43, %v1166_v4  ;;  %v1193_v47 = vmul.f32 %v3845_v0, %v1169_v59 }
 0x2bd   :  { %1307 = vst.msk [vmem:[#allocation3 + $0x70] sm:$0xff] %vm20_vm0, %v1282_v10 }
 0x2be   :  { %v1234_v11 = vpop.xlane.xlu0 %1233 }
 0x2bf   :  { %v2984_v13 = vpop.eup %2983  ;;  %v2146_v9 = vld [vmem:[#allocation3 + $0x88] sm:$0xff]  ;;  %v1280_v3 = vadd.f32 %v1234_v11, %v1184_v8  ;;  %2234 = vperm.xlu0 %2840, %v2982_v36   ;;  %v1170_v8 = vld [vmem:[#allocation3 + $0xb0] sm:$0xff] }
 0x2c0   :  { %v2139_v61 = vld [vmem:[#allocation3 + $0x50] sm:$0xff]  ;;  %2991 = vrcp.f32 %v2146_v9  ;;  %2219 = vperm.xlu1 %2839, %v2984_v13   ;;  %v2986_v15 = vpop.eup %2985  ;;  %v1194_v9 = vmul.f32 %v3839_v58, %v1170_v8  ;;  %v1472_v8 = vmul.f32 0.0, %v3871_v37  ;;  %v1473_v37 = vmul.f32 0.0, %v3873_v25 }
 0x2c1   :  { %2993 = vrcp.f32 %v2139_v61  ;;  %1305 = vst.msk [vmem:[#allocation3 + $0x60] sm:$0xff] %vm20_vm0, %v1280_v3  ;;  %v1191_v3 = vmul.f32 %v3837_v19, %v1167_v40 }
 0x2c2   :  { %v1246_v16 = vpop.xlane.xlu0 %1245  ;;  %v1243_v33 = vpop.xlane.xlu1 %1242 }
 0x2c3   :  { %v2988_v56 = vpop.eup %2987  ;;  %v1284_v27 = vadd.f32 %v1246_v16, %v1188_v1  ;;  %v1283_v34 = vadd.f32 %v1243_v33, %v1187_v55  ;;  %2224 = vperm.xlu0 %2840, %v2986_v15  }
 0x2c4   :  { %v2143_v53 = vld [vmem:[#allocation3 + $0x70] sm:$0xff]  ;;  %2209 = vperm.xlu1 %2839, %v2988_v56  }
 0x2c5   :  { %2995 = vrcp.f32 %v2143_v53  ;;  %1309 = vst.msk [vmem:[#allocation3 + $0x80] sm:$0xff] %vm20_vm0, %v1284_v27  ;;  %1308 = vst.msk [vmem:[#allocation3 + $0x78] sm:$0xff] %vm20_vm0, %v1283_v34  ;;  %v1463_v27 = vmul.f32 0.0, %v3852_v6  ;;  %v1461_v34 = vmul.f32 0.0, %v3847_v63  ;;  %v1466_v63 = vmul.f32 0.0, %v3859_v42 }
 0x2c6   :  { %v2990_v52 = vpop.eup %2989  ;;  %v1237_v23 = vpop.xlane.xlu1 %1236  ;;  %v1469_v42 = vmul.f32 0.0, %v3865_v62  ;;  %v1470_v62 = vmul.f32 0.0, %v3867_v38 }
 0x2c7   :  { %v1281_v51 = vadd.f32 %v1237_v23, %v1185_v12  ;;  %2214 = vperm.xlu0 %2840, %v2990_v52  }
 0x2c8   :  { %v2141_v29 = vld [vmem:[#allocation3 + $0x60] sm:$0xff] }
 0x2c9   :  { %2997 = vrcp.f32 %v2141_v29  ;;  %1306 = vst.msk [vmem:[#allocation3 + $0x68] sm:$0xff] %vm20_vm0, %v1281_v51  ;;  %v1462_v29 = vmul.f32 0.0, %v3843_v35  ;;  %v1465_v35 = vmul.f32 0.0, %v3857_v21 }
 0x2ca   :  { %v2992_v44 = vpop.eup %2991 }
 0x2cb   :  { %v2994_v2 = vpop.eup %2993  ;;  %2264 = vperm.xlu0 %2840, %v2992_v44  }
 0x2cc   :  { %v2145_v49 = vld [vmem:[#allocation3 + $0x80] sm:$0xff]  ;;  %v2144_v7 = vld [vmem:[#allocation3 + $0x78] sm:$0xff]  ;;  %2229 = vperm.xlu1 %2839, %v2994_v2  }
 0x2cd   :  { %2999 = vrcp.f32 %v2145_v49 }
 0x2ce   :  { %3001 = vrcp.f32 %v2144_v7 }
 0x2cf   :  { %v2996_v26 = vpop.eup %2995 }
 0x2d0   :  { %v2142_v24 = vld [vmem:[#allocation3 + $0x68] sm:$0xff]  ;;  %2249 = vperm.xlu1 %2839, %v2996_v26  }
 0x2d1   :  { %3003 = vrcp.f32 %v2142_v24  ;;  %v1258_v54 = vpop.xlane.xlu0 %1257 }
 0x2d2   :  { %v1288_v46 = vadd.f32 %v1258_v54, %v1192_v18  ;;  %v1267_v57 = vpop.xlane.xlu1 %1266 }
 0x2d3   :  { %v2998_v5 = vpop.eup %2997  ;;  %v1291_v48 = vadd.f32 %v1267_v57, %v1195_v22 }
 0x2d4   :  { %1313 = vst.msk [vmem:[#allocation3 + $0xa0] sm:$0xff] %vm20_vm0, %v1288_v46  ;;  %2239 = vperm.xlu1 %2839, %v2998_v5  }
 0x2d5   :  { %1316 = vst.msk [vmem:[#allocation3 + $0xb8] sm:$0xff] %vm20_vm0, %v1291_v48  ;;  %v1252_v10 = vpop.xlane.xlu0 %1251 }
 0x2d6   :  { %v1286_v36 = vadd.f32 %v1252_v10, %v1190_v14  ;;  %v1261_v11 = vpop.xlane.xlu1 %1260  ;;  %v1468_v14 = vmul.f32 0.0, %v3863_v30 }
 0x2d7   :  { %v3000_v28 = vpop.eup %2999  ;;  %v1289_v41 = vadd.f32 %v1261_v11, %v1193_v47 }
 0x2d8   :  { %v3002_v13 = vpop.eup %3001  ;;  %1311 = vst.msk [vmem:[#allocation3 + $0x90] sm:$0xff] %vm20_vm0, %v1286_v36  ;;  %2259 = vperm.xlu1 %2839, %v3000_v28  }
 0x2d9   :  { %1314 = vst.msk [vmem:[#allocation3 + $0xa8] sm:$0xff] %vm20_vm0, %v1289_v41  ;;  %2254 = vperm.xlu0 %2840, %v3002_v13   ;;  %v1264_v43 = vpop.xlane.xlu0 %1263  ;;  %v1471_v41 = vmul.f32 0.0, %v3869_v45 }
 0x2da   :  { %v1290_v61 = vadd.f32 %v1264_v43, %v1194_v9  ;;  %v1255_v0 = vpop.xlane.xlu1 %1254 }
 0x2db   :  { %v3004_v1 = vpop.eup %3003  ;;  %v2149_v55 = vld [vmem:[#allocation3 + $0xa0] sm:$0xff]  ;;  %v1287_v15 = vadd.f32 %v1255_v0, %v1191_v3 }
 0x2dc   :  { %3005 = vrcp.f32 %v2149_v55  ;;  %1315 = vst.msk [vmem:[#allocation3 + $0xb0] sm:$0xff] %vm20_vm0, %v1290_v61  ;;  %v2152_v56 = vld [vmem:[#allocation3 + $0xb8] sm:$0xff] }
 0x2dd   :  { %1312 = vst.msk [vmem:[#allocation3 + $0x98] sm:$0xff] %vm20_vm0, %v1287_v15  ;;  %2244 = vperm.xlu0 %2840, %v3004_v1  }
 0x2de   :  { %v3966_v61 = vpop.permute.xlu1 %1423 }
 0x2df   :  { %v2147_v16 = vld [vmem:[#allocation3 + $0x90] sm:$0xff] }
 0x2e0   :  { %3007 = vrcp.f32 %v2147_v16  ;;  %v2150_v58 = vld [vmem:[#allocation3 + $0xa8] sm:$0xff] }
 0x2e1   :  { %3009 = vrcp.f32 %v2150_v58  ;;  %v3953_v36 = vpop.permute.xlu0 %1418 }
 0x2e3   :  { %v2151_v33 = vld [vmem:[#allocation3 + $0xb0] sm:$0xff] }
 0x2e4   :  { %3011 = vrcp.f32 %v2151_v33  ;;  %v2148_v17 = vld [vmem:[#allocation3 + $0x98] sm:$0xff]  ;;  %v1434_v33 = vpop.permute.xlu1 %1433 }
 0x2e5   :  { %3013 = vrcp.f32 %v2148_v17  ;;  %v3963_v3 = vpop.permute.xlu0 %1428 }
 0x2e6   :  { %v3006_v19 = vpop.eup %3005  ;;  %3015 = vrcp.f32 %v2152_v56 }
 0x2e7   :  { %2279 = vperm.xlu1 %2839, %v3006_v19  }
 0x2e8   :  { %v3982_v56 = vpop.permute.xlu1 %1443 }
 0x2e9   :  { %v2770_v53 = vpop.f32.mrb[16].mxu0  ;;  %v1439_v15 = vpop.permute.xlu0 %1438 }
 0x2ea   :  { %v3008_v12 = vpop.eup %3007  ;;  %v3929_v52 = vadd.f32 %v2770_v53, %v1463_v27  ;;  %v1554_v23 = vpop.f32.mrb[17].mxu0 }
 0x2eb   :  { %v3010_v51 = vpop.eup %3009  ;;  %v3932_v44 = vadd.f32 %v1554_v23, %v1461_v34  ;;  %v2771_v2 = vpop.f32.mrb[18].mxu0  ;;  %2269 = vperm.xlu1 %2839, %v3008_v12   ;;  %v1479_v34 = vmul.f32 0.0, %v1434_v33 }
 0x2ec   :  { %v1557_v49 = vpop.f32.mrb[19].mxu0  ;;  %2284 = vperm.xlu0 %2840, %v3010_v51   ;;  %v1454_v53 = vpop.permute.xlu1 %1453  ;;  %v1480_v2 = vmul.f32 0.0, %v1439_v15 }
 0x2ed   :  { %v3934_v7 = vadd.f32 %v1557_v49, %v1462_v29  ;;  %v3980_v25 = vpop.permute.xlu0 %1448 }
 0x2ee   :  { %v3012_v6 = vpop.eup %3011  ;;  %v2778_v26 = vpop.f32.mrb[16].mxu1 }
 0x2ef   :  { %v3014_v60 = vpop.eup %3013  ;;  %2289 = vperm.xlu1 %2839, %v3012_v6   ;;  %v3938_v24 = vadd.f32 %v2778_v26, %v1466_v63  ;;  %v1620_v18 = vpop.f32.mrb[17].mxu1 }
 0x2f0   :  { %2274 = vperm.xlu0 %2840, %v3014_v60   ;;  %v3941_v54 = vadd.f32 %v1620_v18, %v1464_v20  ;;  %v2779_v22 = vpop.f32.mrb[18].mxu1  ;;  %v3016_v46 = vpop.eup %3015  ;;  %v1483_v20 = vmul.f32 0.0, %v1454_v53 }
 0x2f1   :  { %v1623_v4 = vpop.f32.mrb[19].mxu1  ;;  %v1459_v27 = vpop.permute.xlu0 %1458 }
 0x2f2   :  { %v3943_v57 = vadd.f32 %v1623_v4, %v1465_v35  ;;  %v1484_v12 = vmul.f32 0.0, %v1459_v27 }
 0x2f4   :  { %2294 = vperm.xlu0 %2840, %v3016_v46  }
 0x2f9   :  { %v2786_v59 = vpop.f32.mrb[20].mxu0 }
 0x2fa   :  { %v3947_v5 = vadd.f32 %v2786_v59, %v1469_v42  ;;  %v1686_v48 = vpop.f32.mrb[21].mxu0 }
 0x2fb   :  { %v3950_v10 = vadd.f32 %v1686_v48, %v1467_v50  ;;  %v2787_v21 = vpop.f32.mrb[22].mxu0 }
 0x2fc   :  { %v1689_v47 = vpop.f32.mrb[23].mxu0 }
 0x2fd   :  { %v3955_v11 = vadd.f32 %v1689_v47, %v1468_v14 }
 0x2fe   :  { %v2794_v40 = vpop.f32.mrb[20].mxu1 }
 0x2ff   :  { %v3958_v31 = vadd.f32 %v2794_v40, %v1472_v8  ;;  %v1752_v28 = vpop.f32.mrb[21].mxu1 }
 0x300   :  { %v2039_v13 = vadd.f32 %v1752_v28, %v1470_v62  ;;  %v2795_v30 = vpop.f32.mrb[22].mxu1 }
 0x301   :  { %v1755_v9 = vpop.f32.mrb[23].mxu1 }
 0x302   :  { %v3961_v43 = vadd.f32 %v1755_v9, %v1471_v41 }
 0x306   :  { %v3968_v0 = vpop.f32.mrb[24].mxu0 }
 0x307   :  { %v1818_v38 = vpop.f32.mrb[25].mxu0 }
 0x308   :  { %v3970_v1 = vadd.f32 %v1818_v38, %v1473_v37  ;;  %v2803_v55 = vpop.f32.mrb[26].mxu0 }
 0x309   :  { %v3972_v16 = vpop.f32.mrb[27].mxu0 }
 0x30a   :  { %v3974_v45 = vpop.f32.mrb[24].mxu1 }
 0x30b   :  { %v3976_v58 = vpop.f32.mrb[25].mxu1 }
 0x30c   :  { %v2811_v17 = vpop.f32.mrb[26].mxu1 }
 0x30d   :  { %v3978_v19 = vpop.f32.mrb[27].mxu1 }
 0x318   :  { %v3984_v23 = vpop.f32.mrb[28].mxu0 }
 0x319   :  { %v1950_v51 = vpop.f32.mrb[29].mxu0  ;;  %v2826_v29 = vpop.f32.mrb[28].mxu1 }
 0x31a   :  { %v3986_v49 = vadd.f32 %v1950_v51, %v1479_v34  ;;  %v3988_v6 = vadd.f32 %v2826_v29, %v1484_v12  ;;  %v2819_v63 = vpop.f32.mrb[30].mxu0  ;;  %v3990_v60 = vpop.f32.mrb[29].mxu1  ;;  %v1475_v51 = vmul.f32 0.0, %v3878_v39  ;;  %v1476_v29 = vmul.f32 0.0, %v3953_v36 }
 0x31b   :  { %v1953_v26 = vpop.f32.mrb[31].mxu0  ;;  %v2827_v18 = vpop.f32.mrb[30].mxu1 }
 0x31c   :  { %v3992_v35 = vadd.f32 %v1953_v26, %v1480_v2  ;;  %v2019_v22 = vpop.f32.mrb[31].mxu1  ;;  %v2044_v2 = vadd.f32 %v3968_v0, %v1475_v51  ;;  %v2045_v63 = vadd.f32 %v3976_v58, %v1476_v29 }
 0x31d   :  { %v3994_v4 = vadd.f32 %v2019_v22, %v1483_v20 }
 0x32a   :  { %v2190_v42 = vpop.permute.xlu1 %2189 }
 0x32b   :  { %v2299_v59 = vmul.f32 %v2190_v42, %v3929_v52 }
 0x32e   :  { %v2205_v46 = vpop.permute.xlu0 %2204 }
 0x32f   :  { %v2302_v28 = vmul.f32 %v2205_v46, %v3938_v24 }
 0x332   :  { %v2180_v48 = vpop.permute.xlu1 %2179 }
 0x333   :  { %v2297_v8 = vmul.f32 %v2180_v48, %v3932_v44 }
 0x336   :  { %v2195_v50 = vpop.permute.xlu0 %2194 }
 0x337   :  { %v2300_v14 = vmul.f32 %v2195_v50, %v3941_v54  ;;  %v1482_v50 = vmul.f32 0.0, %v3980_v25 }
 0x339   :  { %v2573_v21 = vpack.c.bf16 %v2300_v14, %v2299_v59  ;;  %v2051_v48 = vadd.f32 %v3990_v60, %v1482_v50 }
 0x33a   :  { %v2185_v47 = vpop.permute.xlu0 %2184 }
 0x33b   :  { %2625 = vst [vmem:[%s4065_s3 + $0x8] sm:$0xff] %v2573_v21   ;;  %v2298_v62 = vmul.f32 %v2185_v47, %v3934_v7  ;;  %v2200_v40 = vpop.permute.xlu1 %2199 }
 0x33c   :  { %v2301_v41 = vmul.f32 %v2200_v40, %v3943_v57 }
 0x33d   :  { %v2568_v30 = vpack.c.bf16 %v2298_v62, %v2297_v8 }
 0x33e   :  { %v2578_v52 = vpack.c.bf16 %v2302_v28, %v2301_v41  ;;  %v2235_v9 = vpop.permute.xlu0 %2234 }
 0x33f   :  { %2569 = vst [vmem:[%s4065_s3] sm:$0xff] %v2568_v30   ;;  %v2220_v54 = vpop.permute.xlu1 %2219 }
 0x340   :  { %2626 = vst [vmem:[%s4065_s3 + $0x10] sm:$0xff] %v2578_v52   ;;  %v2305_v7 = vmul.f32 %v2220_v54, %v3947_v5  ;;  %v2308_v5 = vmul.f32 %v2235_v9, %v3958_v31 }
 0x342   :  { %v2225_v44 = vpop.permute.xlu0 %2224 }
 0x343   :  { %v2306_v37 = vmul.f32 %v2225_v44, %v2039_v13  ;;  %v2210_v38 = vpop.permute.xlu1 %2209 }
 0x344   :  { %v2303_v57 = vmul.f32 %v2210_v38, %v3950_v10  ;;  %v1477_v10 = vmul.f32 0.0, %v3966_v61  ;;  %v1474_v61 = vmul.f32 0.0, %v3875_v32 }
 0x345   :  { %v2588_v24 = vpack.c.bf16 %v2306_v37, %v2305_v7 }
 0x346   :  { %v2215_v55 = vpop.permute.xlu0 %2214  ;;  %v2043_v39 = vadd.f32 %v3972_v16, %v1474_v61  ;;  %v1481_v16 = vmul.f32 0.0, %v3982_v56 }
 0x347   :  { %2628 = vst [vmem:[%s4065_s3 + $0x20] sm:$0xff] %v2588_v24   ;;  %v2304_v15 = vmul.f32 %v2215_v55, %v3955_v11  ;;  %v1478_v11 = vmul.f32 0.0, %v3963_v3 }
 0x348   :  { %v2050_v59 = vadd.f32 %v3984_v23, %v1481_v16 }
 0x349   :  { %v2583_v33 = vpack.c.bf16 %v2304_v15, %v2303_v57  ;;  %v2047_v31 = vadd.f32 %v3974_v45, %v1478_v11 }
 0x34a   :  { %v2265_v12 = vpop.permute.xlu0 %2264 }
 0x34b   :  { %2627 = vst [vmem:[%s4065_s3 + $0x18] sm:$0xff] %v2583_v33   ;;  %v2230_v17 = vpop.permute.xlu1 %2229  ;;  %v2314_v26 = vmul.f32 %v2265_v12, %v2047_v31 }
 0x34c   :  { %v2307_v13 = vmul.f32 %v2230_v17, %v3961_v43  ;;  %v2046_v43 = vadd.f32 %v3978_v19, %v1477_v10 }
 0x34e   :  { %v2593_v27 = vpack.c.bf16 %v2308_v5, %v2307_v13 }
 0x34f   :  { %v2250_v34 = vpop.permute.xlu1 %2249 }
 0x350   :  { %2629 = vst [vmem:[%s4065_s3 + $0x28] sm:$0xff] %v2593_v27   ;;  %v2311_v3 = vmul.f32 %v2250_v34, %v2044_v2 }
 0x353   :  { %v2240_v53 = vpop.permute.xlu1 %2239 }
 0x354   :  { %v2309_v0 = vmul.f32 %v2240_v53, %v3970_v1 }
 0x357   :  { %v2260_v20 = vpop.permute.xlu1 %2259 }
 0x358   :  { %v2255_v18 = vpop.permute.xlu0 %2254  ;;  %v2313_v22 = vmul.f32 %v2260_v20, %v2046_v43 }
 0x359   :  { %v2312_v46 = vmul.f32 %v2255_v18, %v2045_v63 }
 0x35a   :  { %v2608_v42 = vpack.c.bf16 %v2314_v26, %v2313_v22 }
 0x35b   :  { %v2603_v36 = vpack.c.bf16 %v2312_v46, %v2311_v3 }
 0x35c   :  { %2632 = vst [vmem:[%s4065_s3 + $0x40] sm:$0xff] %v2608_v42   ;;  %v2245_v45 = vpop.permute.xlu0 %2244 }
 0x35d   :  { %2631 = vst [vmem:[%s4065_s3 + $0x38] sm:$0xff] %v2603_v36   ;;  %v2310_v58 = vmul.f32 %v2245_v45, %v2043_v39 }
 0x35f   :  { %v2598_v19 = vpack.c.bf16 %v2310_v58, %v2309_v0 }
 0x361   :  { %2630 = vst [vmem:[%s4065_s3 + $0x30] sm:$0xff] %v2598_v19  }
 0x366   :  { %v2280_v32 = vpop.permute.xlu1 %2279 }
 0x367   :  { %v2317_v21 = vmul.f32 %v2280_v32, %v2050_v59 }
 0x36a   :  { %v2270_v1 = vpop.permute.xlu1 %2269 }
 0x36b   :  { %v2285_v14 = vpop.permute.xlu0 %2284  ;;  %v2315_v40 = vmul.f32 %v2270_v1, %v3986_v49 }
 0x36c   :  { %v2318_v47 = vmul.f32 %v2285_v14, %v2051_v48 }
 0x36e   :  { %v2618_v8 = vpack.c.bf16 %v2318_v47, %v2317_v21  ;;  %v2290_v28 = vpop.permute.xlu1 %2289 }
 0x36f   :  { %v2275_v62 = vpop.permute.xlu0 %2274  ;;  %v2319_v23 = vmul.f32 %v2290_v28, %v3994_v4 }
 0x370   :  { %2634 = vst [vmem:[%s4065_s3 + $0x50] sm:$0xff] %v2618_v8   ;;  %v2316_v56 = vmul.f32 %v2275_v62, %v3992_v35 }
 0x372   :  { %v2613_v25 = vpack.c.bf16 %v2316_v56, %v2315_v40 }
 0x373   :  { %v2295_v41 = vpop.permute.xlu0 %2294 }
 0x374   :  { %2633 = vst [vmem:[%s4065_s3 + $0x48] sm:$0xff] %v2613_v25   ;;  %v2320_v60 = vmul.f32 %v2295_v41, %v3988_v6 }
 0x376   :  { %v2623_v30 = vpack.c.bf16 %v2320_v60, %v2319_v23 }
 0x378   :  { %2635 = vst [vmem:[%s4065_s3 + $0x58] sm:$0xff] %v2623_v30  }

</bundles_post_ra>
